<compile_context>
chip_gen: v7x
topology: tpu7x:2x2x1
jax: 0.10.0
libtpu: 0.0.40
codegen_flags: <defaults>
</compile_context>

<pallas_src>
import inspect

import jax
import jax.numpy as jnp
from jax.experimental import pallas as pl
from jax.experimental.pallas import tpu as pltpu

NODELEN = 393
INPUT_DIM = NODELEN * 2          # 786
EMBEDDING_DIM = 128
HIDDEN_DIM2 = 192
HIDDEN_PAD = 256                 # 192 zero-padded to 2*128 lanes (math unchanged)


def _round_up(x, m):
    return ((x + m - 1) // m) * m


def _vmem_capacity_bytes():
    """Physical VMEM bytes of the attached TPU, or None if unknown."""
    try:
        info = pltpu.get_tpu_info()
    except Exception:
        return None
    for name in ("vmem_capacity_bytes", "vmem_size_bytes", "vmem_bytes"):
        val = getattr(info, name, None)
        if val:
            return int(val)
    return None


# Does this JAX version support single-buffered (constant-index) BlockSpecs?
try:
    _HAS_SINGLE_BUFFER = hasattr(pl, "Buffered") and (
        "pipeline_mode" in inspect.signature(pl.BlockSpec).parameters)
except (TypeError, ValueError):
    _HAS_SINGLE_BUFFER = False


def autoencoder_kernel(x_ref,
                       w1_ref, b1_ref,
                       w2_ref, b2_ref,
                       w3_ref, b3_ref,
                       w4_ref, b4_ref,
                       enc_ref, dec_ref):
    """Whole forward chain on one batch tile: 4 MXU matmuls + f32 bias/ReLU."""
    wdt = w1_ref.dtype                      # MXU operand dtype (bf16 by default)
    x = x_ref[...].astype(wdt)              # cast f32 x tile -> operand dtype in VMEM

    # encoder_fc1 + ReLU  (dropout = identity in eval mode)
    h1 = jnp.dot(x, w1_ref[...], preferred_element_type=jnp.float32) + b1_ref[...]
    h1 = jnp.maximum(h1, 0.0)

    # encoder_fc3 -> encoded
    enc = jnp.dot(h1.astype(wdt), w2_ref[...],
                  preferred_element_type=jnp.float32) + b2_ref[...]
    enc_ref[...] = enc.astype(enc_ref.dtype)

    # decoder_fc1 + ReLU  (dropout = identity in eval mode)
    h2 = jnp.dot(enc.astype(wdt), w3_ref[...],
                 preferred_element_type=jnp.float32) + b3_ref[...]
    h2 = jnp.maximum(h2, 0.0)

    # decoder_fc3 -> decoded (native 786 lanes; trailing lanes are masked stores)
    dec = jnp.dot(h2.astype(wdt), w4_ref[...],
                  preferred_element_type=jnp.float32) + b4_ref[...]
    dec_ref[...] = dec.astype(dec_ref.dtype)


def prepare_params(params, compute_dtype=jnp.bfloat16):
    """Pad hidden dim 192 -> 256 (zero pad; exact math) and cast weights once.

    Call once at model-load time and reuse for every forward call so the pad/cast
    stays off the hot path.  Weights are stored (in, out) = transpose of PyTorch's
    (out, in); biases are (1, out) and stay f32 (added after f32 accumulation).
    """
    w1, b1, w2, b2, w3, b3, w4, b4 = params

    def pad_cols(a, cols):
        return jnp.pad(a, ((0, 0), (0, cols - a.shape[1])))

    def pad_rows(a, rows):
        return jnp.pad(a, ((0, rows - a.shape[0]), (0, 0)))

    w1p = pad_cols(w1, HIDDEN_PAD).astype(compute_dtype)    # (786, 256)
    b1p = pad_cols(b1, HIDDEN_PAD).astype(jnp.float32)      # (1, 256)
    w2p = pad_rows(w2, HIDDEN_PAD).astype(compute_dtype)    # (256, 128)
    b2p = b2.astype(jnp.float32)                            # (1, 128)
    w3p = pad_cols(w3, HIDDEN_PAD).astype(compute_dtype)    # (128, 256)
    b3p = pad_cols(b3, HIDDEN_PAD).astype(jnp.float32)      # (1, 256)
    w4p = pad_rows(w4, HIDDEN_PAD).astype(compute_dtype)    # (256, 786)
    b4p = b4.astype(jnp.float32)                            # (1, 786)
    return (w1p, b1p, w2p, b2p, w3p, b3p, w4p, b4p)


def _select_tile_and_vmem(B, tile_b):
    """Pick batch-tile rows and a VMEM limit per TPU generation."""
    vmem = _vmem_capacity_bytes()
    big_vmem = vmem is not None and vmem >= 100 * 1024 * 1024   # v5e / v6e (128 MiB)
    if tile_b is None:
        # ~20 KB/row double-buffered working set: 2048 rows ~ 45 MiB (fits 128 MiB
        # VMEM parts), 1024 rows ~ 25 MiB (fits v7x's 64 MiB with headroom).
        tile_b = 2048 if big_vmem else 1024
    b8 = _round_up(max(B, 1), 8)
    tile = _round_up(min(tile_b, b8), 8)
    # Large batches: guarantee >= 2 grid steps so the "parallel" grid axis can be
    # sharded across both TensorCores on multi-TC parts (v7x).
    if B > 1024 and pl.cdiv(b8, tile) < 2:
        tile = _round_up(pl.cdiv(b8, 2), 8)
    vmem_limit = (96 if big_vmem else 52) * 1024 * 1024
    return tile, vmem_limit


def autoencoder_forward(x, prepared_params, *, tile_b=None, out_dtype=jnp.float32):
    """x: (B, 786) float32.  prepared_params: output of prepare_params().

    Returns (encoded (B, 128), decoded (B, 786)) in out_dtype (f32 by default;
    bf16 halves output write bandwidth if the consumer tolerates it).
    """
    B, D = x.shape
    assert D == INPUT_DIM
    tile, vmem_limit = _select_tile_and_vmem(B, tile_b)
    grid = (pl.cdiv(B, tile),)   # remainder blocks handled by boundary masking

    x_spec = pl.BlockSpec((tile, INPUT_DIM), lambda i: (i, 0))
    enc_spec = pl.BlockSpec((tile, EMBEDDING_DIM), lambda i: (i, 0))
    dec_spec = pl.BlockSpec((tile, INPUT_DIM), lambda i: (i, 0))

    def param_spec(p, single_buffer):
        # Constant block index -> parameter stays resident across grid steps.
        if single_buffer:
            return pl.BlockSpec(p.shape, lambda i: (0, 0),
                                pipeline_mode=pl.Buffered(1))
        return pl.BlockSpec(p.shape, lambda i: (0, 0))

    def run(single_buffer):
        return pl.pallas_call(
            autoencoder_kernel,
            out_shape=(
                jax.ShapeDtypeStruct((B, EMBEDDING_DIM), out_dtype),
                jax.ShapeDtypeStruct((B, INPUT_DIM), out_dtype),
            ),
            grid_spec=pltpu.PrefetchScalarGridSpec(
                num_scalar_prefetch=0,
                grid=grid,
                in_specs=[x_spec] + [param_spec(p, single_buffer)
                                     for p in prepared_params],
                out_specs=(enc_spec, dec_spec),
            ),
            compiler_params=pltpu.CompilerParams(
                dimension_semantics=("parallel",),
                vmem_limit_bytes=vmem_limit,
            ),
        )(x, *prepared_params)

    if _HAS_SINGLE_BUFFER:
        try:
            return run(True)
        except Exception:
            pass   # fall back to default double-buffered parameter specs
    return run(False)


def init_params(key):
    """Deterministic init mimicking nn.Linear default (uniform +-1/sqrt(fan_in)).

    Weights stored as (in, out) = transpose of PyTorch's (out, in); biases (1, out).
    """
    def linear(k, fan_in, fan_out):
        kw, kb = jax.random.split(k)
        bound = 1.0 / jnp.sqrt(jnp.float32(fan_in))
        w = jax.random.uniform(kw, (fan_in, fan_out), jnp.float32, -bound, bound)
        b = jax.random.uniform(kb, (1, fan_out), jnp.float32, -bound, bound)
        return w, b

    k1, k2, k3, k4 = jax.random.split(key, 4)
    w1, b1 = linear(k1, INPUT_DIM, HIDDEN_DIM2)       # encoder_fc1
    w2, b2 = linear(k2, HIDDEN_DIM2, EMBEDDING_DIM)   # encoder_fc3
    w3, b3 = linear(k3, EMBEDDING_DIM, HIDDEN_DIM2)   # decoder_fc1
    w4, b4 = linear(k4, HIDDEN_DIM2, INPUT_DIM)       # decoder_fc3
    return (w1, b1, w2, b2, w3, b3, w4, b4)


def reference_forward(x, params):
    w1, b1, w2, b2, w3, b3, w4, b4 = params
    h1 = jnp.maximum(x @ w1 + b1, 0.0)
    enc = h1 @ w2 + b2
    h2 = jnp.maximum(enc @ w3 + b3, 0.0)
    dec = h2 @ w4 + b4
    return enc, dec


if __name__ == "__main__":
    key = jax.random.PRNGKey(0)
    k_params, k_x = jax.random.split(key)
    params = init_params(k_params)

    # Padded / cast params, prepared once off the per-call hot path.
    params_bf16 = prepare_params(params, compute_dtype=jnp.bfloat16)  # default path
    params_f32 = prepare_params(params, compute_dtype=jnp.float32)    # parity path

    # Small smoke-test batch.
    B = 8
    x = jax.random.normal(k_x, (B, INPUT_DIM), jnp.float32)
    enc_ref, dec_ref = reference_forward(x, params)

    # f32 MXU-operand path: exact-ish numerical parity with the reference.
    enc_f32, dec_f32 = autoencoder_forward(x, params_f32)
    enc_f32, dec_f32 = jax.block_until_ready((enc_f32, dec_f32))
    assert enc_f32.shape == (B, EMBEDDING_DIM)
    assert dec_f32.shape == (B, INPUT_DIM)
    assert jnp.allclose(enc_f32, enc_ref, atol=1e-4, rtol=1e-4)
    assert jnp.allclose(dec_f32, dec_ref, atol=1e-4, rtol=1e-4)

    # Default bf16 MXU-operand path (f32 accumulation/bias/ReLU); looser tolerance.
    enc_bf, dec_bf = autoencoder_forward(x, params_bf16)
    enc_bf, dec_bf = jax.block_until_ready((enc_bf, dec_bf))
    assert enc_bf.shape == (B, EMBEDDING_DIM)
    assert dec_bf.shape == (B, INPUT_DIM)
    assert jnp.allclose(enc_bf, enc_ref, atol=1e-1, rtol=1e-1)
    assert jnp.allclose(dec_bf, dec_ref, atol=1e-1, rtol=1e-1)

    # Multi-tile grid (3 batch tiles of 32 rows) to exercise the index maps.
    B2 = 96
    x2 = jax.random.normal(jax.random.PRNGKey(1), (B2, INPUT_DIM), jnp.float32)
    enc2_ref, dec2_ref = reference_forward(x2, params)
    enc2, dec2 = autoencoder_forward(x2, params_bf16, tile_b=32)
    enc2, dec2 = jax.block_until_ready((enc2, dec2))
    assert enc2.shape == (B2, EMBEDDING_DIM)
    assert dec2.shape == (B2, INPUT_DIM)
    assert jnp.allclose(enc2, enc2_ref, atol=1e-1, rtol=1e-1)
    assert jnp.allclose(dec2, dec2_ref, atol=1e-1, rtol=1e-1)

    print("KERNEL_OK")
</pallas_src>

<mosaic_0001>
module attributes {stable_mosaic.version = 11 : i64} {
  func.func @autoencoder_kernel(%arg0: i32, %arg1: memref<8x786xf32, #tpu.memory_space<vmem>>, %arg2: memref<786x256xf32, #tpu.memory_space<vmem>>, %arg3: memref<1x256xf32, #tpu.memory_space<vmem>>, %arg4: memref<256x128xf32, #tpu.memory_space<vmem>>, %arg5: memref<1x128xf32, #tpu.memory_space<vmem>>, %arg6: memref<128x256xf32, #tpu.memory_space<vmem>>, %arg7: memref<1x256xf32, #tpu.memory_space<vmem>>, %arg8: memref<256x786xf32, #tpu.memory_space<vmem>>, %arg9: memref<1x786xf32, #tpu.memory_space<vmem>>, %arg10: memref<8x128xf32, #tpu.memory_space<vmem>>, %arg11: memref<8x786xf32, #tpu.memory_space<vmem>>) attributes {dimension_semantics = [#tpu.dimension_semantics<parallel>], iteration_bounds = array<i64: 1>, scalar_prefetch = 0 : i64, scratch_operands = 0 : i64, tpu.core_type = #tpu.core_type<tc>, window_params = [{transform_indices = @transform_0, window_bounds = array<i64: 8, 786>}, {pipeline_mode = #tpu.pipeline_mode<synchronous>, transform_indices = @transform_1, window_bounds = array<i64: 786, 256>}, {pipeline_mode = #tpu.pipeline_mode<synchronous>, transform_indices = @transform_2, window_bounds = array<i64: 1, 256>}, {pipeline_mode = #tpu.pipeline_mode<synchronous>, transform_indices = @transform_3, window_bounds = array<i64: 256, 128>}, {pipeline_mode = #tpu.pipeline_mode<synchronous>, transform_indices = @transform_4, window_bounds = array<i64: 1, 128>}, {pipeline_mode = #tpu.pipeline_mode<synchronous>, transform_indices = @transform_5, window_bounds = array<i64: 128, 256>}, {pipeline_mode = #tpu.pipeline_mode<synchronous>, transform_indices = @transform_6, window_bounds = array<i64: 1, 256>}, {pipeline_mode = #tpu.pipeline_mode<synchronous>, transform_indices = @transform_7, window_bounds = array<i64: 256, 786>}, {pipeline_mode = #tpu.pipeline_mode<synchronous>, transform_indices = @transform_8, window_bounds = array<i64: 1, 786>}, {transform_indices = @transform_9, window_bounds = array<i64: 8, 128>}, {transform_indices = @transform_10, window_bounds = array<i64: 8, 786>}]} {
    %c0 = arith.constant 0 : index
    %c0_0 = arith.constant 0 : index
    %0 = vector.load %arg1[%c0, %c0_0] : memref<8x786xf32, #tpu.memory_space<vmem>>, vector<8x786xf32>
    %c0_1 = arith.constant 0 : index
    %c0_2 = arith.constant 0 : index
    %1 = vector.load %arg2[%c0_1, %c0_2] : memref<786x256xf32, #tpu.memory_space<vmem>>, vector<786x256xf32>
    %cst = arith.constant dense<0.000000e+00> : vector<8x256xf32>
    %2 = tpu.matmul %0, %1, %cst {dimension_numbers = #tpu.dot_dimension_numbers<[1], [0], [0], [1], [0, 0, 1, 1], [], []>} : vector<8x786xf32>, vector<786x256xf32>, vector<8x256xf32> -> vector<8x256xf32>
    %c0_3 = arith.constant 0 : index
    %c0_4 = arith.constant 0 : index
    %3 = vector.load %arg3[%c0_3, %c0_4] : memref<1x256xf32, #tpu.memory_space<vmem>>, vector<1x256xf32>
    %4 = vector.broadcast %3 : vector<1x256xf32> to vector<8x256xf32>
    %5 = arith.addf %2, %4 : vector<8x256xf32>
    %cst_5 = arith.constant 0.000000e+00 : f32
    %6 = vector.broadcast %cst_5 : f32 to vector<8x256xf32>
    %7 = arith.maximumf %5, %6 : vector<8x256xf32>
    %c0_6 = arith.constant 0 : index
    %c0_7 = arith.constant 0 : index
    %8 = vector.load %arg4[%c0_6, %c0_7] : memref<256x128xf32, #tpu.memory_space<vmem>>, vector<256x128xf32>
    %cst_8 = arith.constant dense<0.000000e+00> : vector<8x128xf32>
    %9 = tpu.matmul %7, %8, %cst_8 {dimension_numbers = #tpu.dot_dimension_numbers<[1], [0], [0], [1], [0, 0, 1, 1], [], []>} : vector<8x256xf32>, vector<256x128xf32>, vector<8x128xf32> -> vector<8x128xf32>
    %c0_9 = arith.constant 0 : index
    %c0_10 = arith.constant 0 : index
    %10 = vector.load %arg5[%c0_9, %c0_10] : memref<1x128xf32, #tpu.memory_space<vmem>>, vector<1x128xf32>
    %11 = vector.broadcast %10 : vector<1x128xf32> to vector<8x128xf32>
    %12 = arith.addf %9, %11 : vector<8x128xf32>
    %c0_11 = arith.constant 0 : index
    %c0_12 = arith.constant 0 : index
    %13 = vector.load %arg10[%c0_11, %c0_12] : memref<8x128xf32, #tpu.memory_space<vmem>>, vector<8x128xf32>
    tpu.vector_store %arg10[%c0_11, %c0_12], %12 {strides = array<i32>} : memref<8x128xf32, #tpu.memory_space<vmem>>, vector<8x128xf32>,
    %c0_13 = arith.constant 0 : index
    %c0_14 = arith.constant 0 : index
    %14 = vector.load %arg6[%c0_13, %c0_14] : memref<128x256xf32, #tpu.memory_space<vmem>>, vector<128x256xf32>
    %cst_15 = arith.constant dense<0.000000e+00> : vector<8x256xf32>
    %15 = tpu.matmul %12, %14, %cst_15 {dimension_numbers = #tpu.dot_dimension_numbers<[1], [0], [0], [1], [0, 0, 1, 1], [], []>} : vector<8x128xf32>, vector<128x256xf32>, vector<8x256xf32> -> vector<8x256xf32>
    %c0_16 = arith.constant 0 : index
    %c0_17 = arith.constant 0 : index
    %16 = vector.load %arg7[%c0_16, %c0_17] : memref<1x256xf32, #tpu.memory_space<vmem>>, vector<1x256xf32>
    %17 = vector.broadcast %16 : vector<1x256xf32> to vector<8x256xf32>
    %18 = arith.addf %15, %17 : vector<8x256xf32>
    %cst_18 = arith.constant 0.000000e+00 : f32
    %19 = vector.broadcast %cst_18 : f32 to vector<8x256xf32>
    %20 = arith.maximumf %18, %19 : vector<8x256xf32>
    %c0_19 = arith.constant 0 : index
    %c0_20 = arith.constant 0 : index
    %21 = vector.load %arg8[%c0_19, %c0_20] : memref<256x786xf32, #tpu.memory_space<vmem>>, vector<256x786xf32>
    %cst_21 = arith.constant dense<0.000000e+00> : vector<8x786xf32>
    %22 = tpu.matmul %20, %21, %cst_21 {dimension_numbers = #tpu.dot_dimension_numbers<[1], [0], [0], [1], [0, 0, 1, 1], [], []>} : vector<8x256xf32>, vector<256x786xf32>, vector<8x786xf32> -> vector<8x786xf32>
    %c0_22 = arith.constant 0 : index
    %c0_23 = arith.constant 0 : index
    %23 = vector.load %arg9[%c0_22, %c0_23] : memref<1x786xf32, #tpu.memory_space<vmem>>, vector<1x786xf32>
    %24 = vector.broadcast %23 : vector<1x786xf32> to vector<8x786xf32>
    %25 = arith.addf %22, %24 : vector<8x786xf32>
    %c0_24 = arith.constant 0 : index
    %c0_25 = arith.constant 0 : index
    %26 = vector.load %arg11[%c0_24, %c0_25] : memref<8x786xf32, #tpu.memory_space<vmem>>, vector<8x786xf32>
    tpu.vector_store %arg11[%c0_24, %c0_25], %25 {strides = array<i32>} : memref<8x786xf32, #tpu.memory_space<vmem>>, vector<8x786xf32>,
    return
  }
  func.func @transform_0(%arg0: i32) -> (i32, i32) {
    %c0_i32 = arith.constant 0 : i32
    %c0_i32_0 = arith.constant 0 : i32
    return %arg0, %c0_i32 : i32, i32
  }
  func.func @transform_1(%arg0: i32) -> (i32, i32) {
    %c0_i32 = arith.constant 0 : i32
    %c0_i32_0 = arith.constant 0 : i32
    %c0_i32_1 = arith.constant 0 : i32
    return %c0_i32, %c0_i32_0 : i32, i32
  }
  func.func @transform_2(%arg0: i32) -> (i32, i32) {
    %c0_i32 = arith.constant 0 : i32
    %c0_i32_0 = arith.constant 0 : i32
    %c0_i32_1 = arith.constant 0 : i32
    return %c0_i32, %c0_i32_0 : i32, i32
  }
  func.func @transform_3(%arg0: i32) -> (i32, i32) {
    %c0_i32 = arith.constant 0 : i32
    %c0_i32_0 = arith.constant 0 : i32
    %c0_i32_1 = arith.constant 0 : i32
    return %c0_i32, %c0_i32_0 : i32, i32
  }
  func.func @transform_4(%arg0: i32) -> (i32, i32) {
    %c0_i32 = arith.constant 0 : i32
    %c0_i32_0 = arith.constant 0 : i32
    %c0_i32_1 = arith.constant 0 : i32
    return %c0_i32, %c0_i32_0 : i32, i32
  }
  func.func @transform_5(%arg0: i32) -> (i32, i32) {
    %c0_i32 = arith.constant 0 : i32
    %c0_i32_0 = arith.constant 0 : i32
    %c0_i32_1 = arith.constant 0 : i32
    return %c0_i32, %c0_i32_0 : i32, i32
  }
  func.func @transform_6(%arg0: i32) -> (i32, i32) {
    %c0_i32 = arith.constant 0 : i32
    %c0_i32_0 = arith.constant 0 : i32
    %c0_i32_1 = arith.constant 0 : i32
    return %c0_i32, %c0_i32_0 : i32, i32
  }
  func.func @transform_7(%arg0: i32) -> (i32, i32) {
    %c0_i32 = arith.constant 0 : i32
    %c0_i32_0 = arith.constant 0 : i32
    %c0_i32_1 = arith.constant 0 : i32
    return %c0_i32, %c0_i32_0 : i32, i32
  }
  func.func @transform_8(%arg0: i32) -> (i32, i32) {
    %c0_i32 = arith.constant 0 : i32
    %c0_i32_0 = arith.constant 0 : i32
    %c0_i32_1 = arith.constant 0 : i32
    return %c0_i32, %c0_i32_0 : i32, i32
  }
  func.func @transform_9(%arg0: i32) -> (i32, i32) {
    %c0_i32 = arith.constant 0 : i32
    %c0_i32_0 = arith.constant 0 : i32
    return %arg0, %c0_i32 : i32, i32
  }
  func.func @transform_10(%arg0: i32) -> (i32, i32) {
    %c0_i32 = arith.constant 0 : i32
    %c0_i32_0 = arith.constant 0 : i32
    return %arg0, %c0_i32 : i32, i32
  }
}

module attributes {stable_mosaic.version = 11 : i64} {
  func.func @autoencoder_kernel(%arg0: i32, %arg1: memref<8x786xf32, #tpu.memory_space<vmem>>, %arg2: memref<786x256xf32, #tpu.memory_space<vmem>>, %arg3: memref<1x256xf32, #tpu.memory_space<vmem>>, %arg4: memref<256x128xf32, #tpu.memory_space<vmem>>, %arg5: memref<1x128xf32, #tpu.memory_space<vmem>>, %arg6: memref<128x256xf32, #tpu.memory_space<vmem>>, %arg7: memref<1x256xf32, #tpu.memory_space<vmem>>, %arg8: memref<256x786xf32, #tpu.memory_space<vmem>>, %arg9: memref<1x786xf32, #tpu.memory_space<vmem>>, %arg10: memref<8x128xf32, #tpu.memory_space<vmem>>, %arg11: memref<8x786xf32, #tpu.memory_space<vmem>>) attributes {dimension_semantics = [#tpu.dimension_semantics<parallel>], iteration_bounds = array<i64: 1>, scalar_prefetch = 0 : i64, scratch_operands = 0 : i64, tpu.core_type = #tpu.core_type<tc>, window_params = [{transform_indices = @transform_0, window_bounds = array<i64: 8, 786>}, {pipeline_mode = #tpu.pipeline_mode<synchronous>, transform_indices = @transform_1, window_bounds = array<i64: 786, 256>}, {pipeline_mode = #tpu.pipeline_mode<synchronous>, transform_indices = @transform_2, window_bounds = array<i64: 1, 256>}, {pipeline_mode = #tpu.pipeline_mode<synchronous>, transform_indices = @transform_3, window_bounds = array<i64: 256, 128>}, {pipeline_mode = #tpu.pipeline_mode<synchronous>, transform_indices = @transform_4, window_bounds = array<i64: 1, 128>}, {pipeline_mode = #tpu.pipeline_mode<synchronous>, transform_indices = @transform_5, window_bounds = array<i64: 128, 256>}, {pipeline_mode = #tpu.pipeline_mode<synchronous>, transform_indices = @transform_6, window_bounds = array<i64: 1, 256>}, {pipeline_mode = #tpu.pipeline_mode<synchronous>, transform_indices = @transform_7, window_bounds = array<i64: 256, 786>}, {pipeline_mode = #tpu.pipeline_mode<synchronous>, transform_indices = @transform_8, window_bounds = array<i64: 1, 786>}, {transform_indices = @transform_9, window_bounds = array<i64: 8, 128>}, {transform_indices = @transform_10, window_bounds = array<i64: 8, 786>}]} {
    %c0 = arith.constant 0 : index
    %c0_0 = arith.constant 0 : index
    %0 = vector.load %arg1[%c0, %c0_0] : memref<8x786xf32, #tpu.memory_space<vmem>>, vector<8x786xf32>
    %c0_1 = arith.constant 0 : index
    %c0_2 = arith.constant 0 : index
    %1 = vector.load %arg2[%c0_1, %c0_2] : memref<786x256xf32, #tpu.memory_space<vmem>>, vector<786x256xf32>
    %cst = arith.constant dense<0.000000e+00> : vector<8x256xf32>
    %2 = tpu.matmul %0, %1, %cst {dimension_numbers = #tpu.dot_dimension_numbers<[1], [0], [0], [1], [0, 0, 1, 1], [], []>} : vector<8x786xf32>, vector<786x256xf32>, vector<8x256xf32> -> vector<8x256xf32>
    %c0_3 = arith.constant 0 : index
    %c0_4 = arith.constant 0 : index
    %3 = vector.load %arg3[%c0_3, %c0_4] : memref<1x256xf32, #tpu.memory_space<vmem>>, vector<1x256xf32>
    %4 = vector.broadcast %3 : vector<1x256xf32> to vector<8x256xf32>
    %5 = arith.addf %2, %4 : vector<8x256xf32>
    %cst_5 = arith.constant 0.000000e+00 : f32
    %6 = vector.broadcast %cst_5 : f32 to vector<8x256xf32>
    %7 = arith.maximumf %5, %6 : vector<8x256xf32>
    %c0_6 = arith.constant 0 : index
    %c0_7 = arith.constant 0 : index
    %8 = vector.load %arg4[%c0_6, %c0_7] : memref<256x128xf32, #tpu.memory_space<vmem>>, vector<256x128xf32>
    %cst_8 = arith.constant dense<0.000000e+00> : vector<8x128xf32>
    %9 = tpu.matmul %7, %8, %cst_8 {dimension_numbers = #tpu.dot_dimension_numbers<[1], [0], [0], [1], [0, 0, 1, 1], [], []>} : vector<8x256xf32>, vector<256x128xf32>, vector<8x128xf32> -> vector<8x128xf32>
    %c0_9 = arith.constant 0 : index
    %c0_10 = arith.constant 0 : index
    %10 = vector.load %arg5[%c0_9, %c0_10] : memref<1x128xf32, #tpu.memory_space<vmem>>, vector<1x128xf32>
    %11 = vector.broadcast %10 : vector<1x128xf32> to vector<8x128xf32>
    %12 = arith.addf %9, %11 : vector<8x128xf32>
    %c0_11 = arith.constant 0 : index
    %c0_12 = arith.constant 0 : index
    %13 = vector.load %arg10[%c0_11, %c0_12] : memref<8x128xf32, #tpu.memory_space<vmem>>, vector<8x128xf32>
    tpu.vector_store %arg10[%c0_11, %c0_12], %12 {strides = array<i32>} : memref<8x128xf32, #tpu.memory_space<vmem>>, vector<8x128xf32>,
    %c0_13 = arith.constant 0 : index
    %c0_14 = arith.constant 0 : index
    %14 = vector.load %arg6[%c0_13, %c0_14] : memref<128x256xf32, #tpu.memory_space<vmem>>, vector<128x256xf32>
    %cst_15 = arith.constant dense<0.000000e+00> : vector<8x256xf32>
    %15 = tpu.matmul %12, %14, %cst_15 {dimension_numbers = #tpu.dot_dimension_numbers<[1], [0], [0], [1], [0, 0, 1, 1], [], []>} : vector<8x128xf32>, vector<128x256xf32>, vector<8x256xf32> -> vector<8x256xf32>
    %c0_16 = arith.constant 0 : index
    %c0_17 = arith.constant 0 : index
    %16 = vector.load %arg7[%c0_16, %c0_17] : memref<1x256xf32, #tpu.memory_space<vmem>>, vector<1x256xf32>
    %17 = vector.broadcast %16 : vector<1x256xf32> to vector<8x256xf32>
    %18 = arith.addf %15, %17 : vector<8x256xf32>
    %cst_18 = arith.constant 0.000000e+00 : f32
    %19 = vector.broadcast %cst_18 : f32 to vector<8x256xf32>
    %20 = arith.maximumf %18, %19 : vector<8x256xf32>
    %c0_19 = arith.constant 0 : index
    %c0_20 = arith.constant 0 : index
    %21 = vector.load %arg8[%c0_19, %c0_20] : memref<256x786xf32, #tpu.memory_space<vmem>>, vector<256x786xf32>
    %cst_21 = arith.constant dense<0.000000e+00> : vector<8x786xf32>
    %22 = tpu.matmul %20, %21, %cst_21 {dimension_numbers = #tpu.dot_dimension_numbers<[1], [0], [0], [1], [0, 0, 1, 1], [], []>} : vector<8x256xf32>, vector<256x786xf32>, vector<8x786xf32> -> vector<8x786xf32>
    %c0_22 = arith.constant 0 : index
    %c0_23 = arith.constant 0 : index
    %23 = vector.load %arg9[%c0_22, %c0_23] : memref<1x786xf32, #tpu.memory_space<vmem>>, vector<1x786xf32>
    %24 = vector.broadcast %23 : vector<1x786xf32> to vector<8x786xf32>
    %25 = arith.addf %22, %24 : vector<8x786xf32>
    %c0_24 = arith.constant 0 : index
    %c0_25 = arith.constant 0 : index
    %26 = vector.load %arg11[%c0_24, %c0_25] : memref<8x786xf32, #tpu.memory_space<vmem>>, vector<8x786xf32>
    tpu.vector_store %arg11[%c0_24, %c0_25], %25 {strides = array<i32>} : memref<8x786xf32, #tpu.memory_space<vmem>>, vector<8x786xf32>,
    return
  }
  func.func @transform_0(%arg0: i32) -> (i32, i32) {
    %c0_i32 = arith.constant 0 : i32
    %c0_i32_0 = arith.constant 0 : i32
    return %arg0, %c0_i32 : i32, i32
  }
  func.func @transform_1(%arg0: i32) -> (i32, i32) {
    %c0_i32 = arith.constant 0 : i32
    %c0_i32_0 = arith.constant 0 : i32
    %c0_i32_1 = arith.constant 0 : i32
    return %c0_i32, %c0_i32_0 : i32, i32
  }
  func.func @transform_2(%arg0: i32) -> (i32, i32) {
    %c0_i32 = arith.constant 0 : i32
    %c0_i32_0 = arith.constant 0 : i32
    %c0_i32_1 = arith.constant 0 : i32
    return %c0_i32, %c0_i32_0 : i32, i32
  }
  func.func @transform_3(%arg0: i32) -> (i32, i32) {
    %c0_i32 = arith.constant 0 : i32
    %c0_i32_0 = arith.constant 0 : i32
    %c0_i32_1 = arith.constant 0 : i32
    return %c0_i32, %c0_i32_0 : i32, i32
  }
  func.func @transform_4(%arg0: i32) -> (i32, i32) {
    %c0_i32 = arith.constant 0 : i32
    %c0_i32_0 = arith.constant 0 : i32
    %c0_i32_1 = arith.constant 0 : i32
    return %c0_i32, %c0_i32_0 : i32, i32
  }
  func.func @transform_5(%arg0: i32) -> (i32, i32) {
    %c0_i32 = arith.constant 0 : i32
    %c0_i32_0 = arith.constant 0 : i32
    %c0_i32_1 = arith.constant 0 : i32
    return %c0_i32, %c0_i32_0 : i32, i32
  }
  func.func @transform_6(%arg0: i32) -> (i32, i32) {
    %c0_i32 = arith.constant 0 : i32
    %c0_i32_0 = arith.constant 0 : i32
    %c0_i32_1 = arith.constant 0 : i32
    return %c0_i32, %c0_i32_0 : i32, i32
  }
  func.func @transform_7(%arg0: i32) -> (i32, i32) {
    %c0_i32 = arith.constant 0 : i32
    %c0_i32_0 = arith.constant 0 : i32
    %c0_i32_1 = arith.constant 0 : i32
    return %c0_i32, %c0_i32_0 : i32, i32
  }
  func.func @transform_8(%arg0: i32) -> (i32, i32) {
    %c0_i32 = arith.constant 0 : i32
    %c0_i32_0 = arith.constant 0 : i32
    %c0_i32_1 = arith.constant 0 : i32
    return %c0_i32, %c0_i32_0 : i32, i32
  }
  func.func @transform_9(%arg0: i32) -> (i32, i32) {
    %c0_i32 = arith.constant 0 : i32
    %c0_i32_0 = arith.constant 0 : i32
    return %arg0, %c0_i32 : i32, i32
  }
  func.func @transform_10(%arg0: i32) -> (i32, i32) {
    %c0_i32 = arith.constant 0 : i32
    %c0_i32_0 = arith.constant 0 : i32
    return %arg0, %c0_i32 : i32, i32
  }
}

</mosaic_0001>

<bundles_post_ra>
// kernel: tpu_custom_call.1
= control target key start
LH: loop header
LB: loop body
LE: loop exit
PB: predicated region body
PF: predicated region fallthrough
CT: control target
= control target key end

     0   :  { %16 = vsyncpa [#allocation3], 0  ;;  %s3579_s0 = inlined_call_operand.vmem [shape: f32[8,786], index: 0, kind: input, shape index: {}]   ;;  %s3580_s1 = inlined_call_operand.vmem [shape: f32[786,256], index: 1, kind: input, shape index: {}]   ;;  %s3581_s2 = inlined_call_operand.vmem [shape: f32[1,256], index: 2, kind: input, shape index: {}]   ;;  %s3582_s3 = inlined_call_operand.vmem [shape: f32[256,128], index: 3, kind: input, shape index: {}]   ;;  %s3583_s4 = inlined_call_operand.vmem [shape: f32[1,128], index: 4, kind: input, shape index: {}]   ;;  %s3584_s5 = inlined_call_operand.vmem [shape: f32[128,256], index: 5, kind: input, shape index: {}]   ;;  %s3585_s6 = inlined_call_operand.vmem [shape: f32[1,256], index: 6, kind: input, shape index: {}]   ;;  %s3586_s7 = inlined_call_operand.vmem [shape: f32[256,786], index: 7, kind: input, shape index: {}]   ;;  %s3587_s8 = inlined_call_operand.vmem [shape: f32[1,786], index: 8, kind: input, shape index: {}]   ;;  %s3588_s9 = inlined_call_operand.hbm [shape: f32[8,128], index: 9, kind: output, shape index: {0}]   ;;  %s3589_s10 = inlined_call_operand.hbm [shape: f32[8,786], index: 10, kind: output, shape index: {1}]  }
   0x1   :  { %v44_v0 = vld [vmem:[%s3580_s1 + $0x8] sm:$0xff]  ;;  %v46_v1 = vld [vmem:[%s3580_s1 + $0x18] sm:$0xff]  ;;  %v43_v2 = vld [vmem:[%s3580_s1] sm:$0xff] }
   0x2   :  { %v1430_v3 = vpack.c.bf16 %v46_v1, %v44_v0  ;;  %v45_v4 = vld [vmem:[%s3580_s1 + $0x10] sm:$0xff]  ;;  %v48_v5 = vld [vmem:[%s3580_s1 + $0x28] sm:$0xff]  ;;  %v50_v6 = vld [vmem:[%s3580_s1 + $0x38] sm:$0xff] }
   0x3   :  { %v1432_v7 = vpack.c.bf16 %v45_v4, %v43_v2  ;;  %v1434_v8 = vpack.c.bf16 %v50_v6, %v48_v5  ;;  %v47_v9 = vld [vmem:[%s3580_s1 + $0x20] sm:$0xff]  ;;  %v49_v10 = vld [vmem:[%s3580_s1 + $0x30] sm:$0xff]  ;;  %v52_v11 = vld [vmem:[%s3580_s1 + $0x48] sm:$0xff] }
   0x4   :  { %1431 = vmatprep.subr.bf16.mxu0 %v1430_v3  ;;  %v54_v12 = vld [vmem:[%s3580_s1 + $0x58] sm:$0xff]  ;;  %v1436_v13 = vpack.c.bf16 %v49_v10, %v47_v9  ;;  %v51_v15 = vld [vmem:[%s3580_s1 + $0x40] sm:$0xff]  ;;  %v53_v16 = vld [vmem:[%s3580_s1 + $0x50] sm:$0xff] }
   0x5   :  { %1433 = vmatpush1.bf16.msra.mxu0 %v1432_v7  ;;  %v1438_v14 = vpack.c.bf16 %v54_v12, %v52_v11  ;;  %v56_v17 = vld [vmem:[%s3580_s1 + $0x68] sm:$0xff]  ;;  %v58_v18 = vld [vmem:[%s3580_s1 + $0x78] sm:$0xff]  ;;  %v1440_v19 = vpack.c.bf16 %v53_v16, %v51_v15  ;;  %v55_v21 = vld [vmem:[%s3580_s1 + $0x60] sm:$0xff] }
   0x6   :  { %1435 = vmatprep.subr.bf16.mxu0 %v1434_v8  ;;  %v1442_v20 = vpack.c.bf16 %v58_v18, %v56_v17  ;;  %v57_v22 = vld [vmem:[%s3580_s1 + $0x70] sm:$0xff]  ;;  %v60_v23 = vld [vmem:[%s3580_s1 + $0x88] sm:$0xff]  ;;  %v62_v24 = vld [vmem:[%s3580_s1 + $0x98] sm:$0xff] }
   0x7   :  { %v1444_v25 = vpack.c.bf16 %v57_v22, %v55_v21  ;;  %v1446_v26 = vpack.c.bf16 %v62_v24, %v60_v23  ;;  %v59_v27 = vld [vmem:[%s3580_s1 + $0x80] sm:$0xff]  ;;  %v61_v28 = vld [vmem:[%s3580_s1 + $0x90] sm:$0xff]  ;;  %v64_v29 = vld [vmem:[%s3580_s1 + $0xa8] sm:$0xff] }
   0x8   :  { %v66_v30 = vld [vmem:[%s3580_s1 + $0xb8] sm:$0xff]  ;;  %v1448_v31 = vpack.c.bf16 %v61_v28, %v59_v27  ;;  %v63_v33 = vld [vmem:[%s3580_s1 + $0xa0] sm:$0xff]  ;;  %v65_v34 = vld [vmem:[%s3580_s1 + $0xb0] sm:$0xff] }
   0x9   :  { %1437 = vmatpush1.bf16.msra.mxu0 %v1436_v13  ;;  %v1450_v32 = vpack.c.bf16 %v66_v30, %v64_v29  ;;  %v68_v35 = vld [vmem:[%s3580_s1 + $0xc8] sm:$0xff]  ;;  %v70_v36 = vld [vmem:[%s3580_s1 + $0xd8] sm:$0xff]  ;;  %v1452_v37 = vpack.c.bf16 %v65_v34, %v63_v33  ;;  %v67_v39 = vld [vmem:[%s3580_s1 + $0xc0] sm:$0xff] }
   0xa   :  { %1439 = vmatprep.subr.bf16.mxu0 %v1438_v14  ;;  %v1454_v38 = vpack.c.bf16 %v70_v36, %v68_v35  ;;  %v69_v40 = vld [vmem:[%s3580_s1 + $0xd0] sm:$0xff]  ;;  %v37_v41 = vld [vmem:[%s3579_s0 + $0x8] sm:$0xff]  ;;  %v74_v43 = vld [vmem:[%s3580_s1 + $0xf8] sm:$0xff] }
   0xb   :  { %v72_v42 = vld [vmem:[%s3580_s1 + $0xe8] sm:$0xff]  ;;  %328 = vmatprep.mubr.f32.mxu0 %v37_v41  ;;  %v1456_v44 = vpack.c.bf16 %v69_v40, %v67_v39  ;;  %v71_v46 = vld [vmem:[%s3580_s1 + $0xe0] sm:$0xff]  ;;  %v73_v47 = vld [vmem:[%s3580_s1 + $0xf0] sm:$0xff] }
   0xc   :  { %v1458_v45 = vpack.c.bf16 %v74_v43, %v72_v42  ;;  %v76_v48 = vld [vmem:[%s3580_s1 + $0x108] sm:$0xff]  ;;  %v78_v49 = vld [vmem:[%s3580_s1 + $0x118] sm:$0xff]  ;;  %v1460_v50 = vpack.c.bf16 %v73_v47, %v71_v46  ;;  %v75_v52 = vld [vmem:[%s3580_s1 + $0x100] sm:$0xff] }
   0xd   :  { %1441 = vmatpush1.bf16.msra.mxu0 %v1440_v19  ;;  %v1462_v51 = vpack.c.bf16 %v78_v49, %v76_v48  ;;  %v77_v53 = vld [vmem:[%s3580_s1 + $0x110] sm:$0xff]  ;;  %v80_v54 = vld [vmem:[%s3580_s1 + $0x128] sm:$0xff]  ;;  %v82_v55 = vld [vmem:[%s3580_s1 + $0x138] sm:$0xff] }
   0xe   :  { %1443 = vmatprep.subr.bf16.mxu0 %v1442_v20  ;;  %v1464_v56 = vpack.c.bf16 %v77_v53, %v75_v52  ;;  %v1466_v57 = vpack.c.bf16 %v82_v55, %v80_v54  ;;  %v79_v58 = vld [vmem:[%s3580_s1 + $0x120] sm:$0xff]  ;;  %v81_v59 = vld [vmem:[%s3580_s1 + $0x130] sm:$0xff]  ;;  %v84_v60 = vld [vmem:[%s3580_s1 + $0x148] sm:$0xff] }
   0xf   :  { %v86_v61 = vld [vmem:[%s3580_s1 + $0x158] sm:$0xff]  ;;  %v1468_v62 = vpack.c.bf16 %v81_v59, %v79_v58  ;;  %v83_v0 = vld [vmem:[%s3580_s1 + $0x140] sm:$0xff]  ;;  %v85_v1 = vld [vmem:[%s3580_s1 + $0x150] sm:$0xff] }
  0x10   :  { %v1470_v63 = vpack.c.bf16 %v86_v61, %v84_v60  ;;  %v88_v2 = vld [vmem:[%s3580_s1 + $0x168] sm:$0xff]  ;;  %v90_v3 = vld [vmem:[%s3580_s1 + $0x178] sm:$0xff]  ;;  %v1472_v4 = vpack.c.bf16 %v85_v1, %v83_v0  ;;  %v87_v6 = vld [vmem:[%s3580_s1 + $0x160] sm:$0xff] }
  0x11   :  { %1445 = vmatpush1.bf16.msra.mxu0 %v1444_v25  ;;  %v1474_v5 = vpack.c.bf16 %v90_v3, %v88_v2  ;;  %v89_v7 = vld [vmem:[%s3580_s1 + $0x170] sm:$0xff]  ;;  %v92_v8 = vld [vmem:[%s3580_s1 + $0x188] sm:$0xff]  ;;  %v94_v9 = vld [vmem:[%s3580_s1 + $0x198] sm:$0xff] }
  0x12   :  { %1447 = vmatprep.subr.bf16.mxu0 %v1446_v26  ;;  %v1476_v10 = vpack.c.bf16 %v89_v7, %v87_v6  ;;  %v1478_v11 = vpack.c.bf16 %v94_v9, %v92_v8  ;;  %v91_v12 = vld [vmem:[%s3580_s1 + $0x180] sm:$0xff]  ;;  %v93_v13 = vld [vmem:[%s3580_s1 + $0x190] sm:$0xff]  ;;  %v96_v14 = vld [vmem:[%s3580_s1 + $0x1a8] sm:$0xff] }
  0x13   :  { %v98_v15 = vld [vmem:[%s3580_s1 + $0x1b8] sm:$0xff]  ;;  %v1480_v16 = vpack.c.bf16 %v93_v13, %v91_v12  ;;  %v95_v18 = vld [vmem:[%s3580_s1 + $0x1a0] sm:$0xff]  ;;  %v97_v19 = vld [vmem:[%s3580_s1 + $0x1b0] sm:$0xff] }
  0x14   :  { %v1482_v17 = vpack.c.bf16 %v98_v15, %v96_v14  ;;  %v100_v20 = vld [vmem:[%s3580_s1 + $0x1c8] sm:$0xff]  ;;  %v102_v21 = vld [vmem:[%s3580_s1 + $0x1d8] sm:$0xff]  ;;  %v1484_v22 = vpack.c.bf16 %v97_v19, %v95_v18  ;;  %v99_v24 = vld [vmem:[%s3580_s1 + $0x1c0] sm:$0xff] }
  0x15   :  { %1449 = vmatpush1.bf16.msra.mxu0 %v1448_v31  ;;  %v1486_v23 = vpack.c.bf16 %v102_v21, %v100_v20  ;;  %v101_v25 = vld [vmem:[%s3580_s1 + $0x1d0] sm:$0xff]  ;;  %v104_v26 = vld [vmem:[%s3580_s1 + $0x1e8] sm:$0xff]  ;;  %v106_v27 = vld [vmem:[%s3580_s1 + $0x1f8] sm:$0xff] }
  0x16   :  { %1451 = vmatprep.subr.bf16.mxu0 %v1450_v32  ;;  %v1488_v28 = vpack.c.bf16 %v101_v25, %v99_v24  ;;  %v1490_v29 = vpack.c.bf16 %v106_v27, %v104_v26  ;;  %v103_v30 = vld [vmem:[%s3580_s1 + $0x1e0] sm:$0xff]  ;;  %v105_v31 = vld [vmem:[%s3580_s1 + $0x1f0] sm:$0xff]  ;;  %v108_v32 = vld [vmem:[%s3580_s1 + $0x208] sm:$0xff] }
  0x17   :  { %v110_v33 = vld [vmem:[%s3580_s1 + $0x218] sm:$0xff]  ;;  %v1492_v34 = vpack.c.bf16 %v105_v31, %v103_v30  ;;  %v107_v36 = vld [vmem:[%s3580_s1 + $0x200] sm:$0xff]  ;;  %v116_v46 = vld [vmem:[%s3580_s1 + $0x248] sm:$0xff] }
  0x18   :  { %v1494_v35 = vpack.c.bf16 %v110_v33, %v108_v32  ;;  %v114_v39 = vld [vmem:[%s3580_s1 + $0x238] sm:$0xff]  ;;  %v36_v40 = vld [vmem:[%s3579_s0] sm:$0xff] }
  0x19   :  { %1453 = vmatpush1.bf16.msra.mxu0 %v1452_v37  ;;  %v109_v37 = vld [vmem:[%s3580_s1 + $0x210] sm:$0xff]  ;;  %v111_v43 = vld [vmem:[%s3580_s1 + $0x220] sm:$0xff]  ;;  %v118_v47 = vld [vmem:[%s3580_s1 + $0x258] sm:$0xff] }
  0x1a   :  { %1455 = vmatprep.subr.bf16.mxu0 %v1454_v38  ;;  %v112_v38 = vld [vmem:[%s3580_s1 + $0x228] sm:$0xff]  ;;  %v1496_v41 = vpack.c.bf16 %v109_v37, %v107_v36 }
  0x1b   :  { %v1498_v42 = vpack.c.bf16 %v114_v39, %v112_v38 }
  0x1d   :  { %1457 = vmatpush1.bf16.msra.mxu0 %v1456_v44  ;;  %v113_v44 = vld [vmem:[%s3580_s1 + $0x230] sm:$0xff] }
  0x1e   :  { %1459 = vmatprep.subr.bf16.mxu0 %v1458_v45  ;;  %v39_v45 = vld [vmem:[%s3579_s0 + $0x18] sm:$0xff] }
  0x21   :  { %1461 = vmatpush1.bf16.msra.mxu0 %v1460_v50 }
  0x22   :  { %1463 = vmatprep.subr.bf16.mxu0 %v1462_v51 }
  0x25   :  { %1465 = vmatpush1.bf16.msra.mxu0 %v1464_v56 }
  0x26   :  { %1467 = vmatprep.subr.bf16.mxu0 %v1466_v57 }
  0x29   :  { %1469 = vmatpush1.bf16.msra.mxu0 %v1468_v62 }
  0x2a   :  { %1471 = vmatprep.subr.bf16.mxu0 %v1470_v63 }
  0x2d   :  { %1473 = vmatpush1.bf16.msra.mxu0 %v1472_v4 }
  0x2e   :  { %1475 = vmatprep.subr.bf16.mxu0 %v1474_v5 }
  0x31   :  { %1477 = vmatpush1.bf16.msra.mxu0 %v1476_v10 }
  0x32   :  { %1479 = vmatprep.subr.bf16.mxu0 %v1478_v11 }
  0x35   :  { %1481 = vmatpush1.bf16.msra.mxu0 %v1480_v16 }
  0x36   :  { %1483 = vmatprep.subr.bf16.mxu0 %v1482_v17 }
  0x39   :  { %1485 = vmatpush1.bf16.msra.mxu0 %v1484_v22 }
  0x3a   :  { %1487 = vmatprep.subr.bf16.mxu0 %v1486_v23 }
  0x3d   :  { %1489 = vmatpush1.bf16.msra.mxu0 %v1488_v28 }
  0x3e   :  { %1491 = vmatprep.subr.bf16.mxu0 %v1490_v29 }
  0x41   :  { %1493 = vmatpush1.bf16.msra.mxu0 %v1492_v34 }
  0x42   :  { %1495 = vmatprep.subr.bf16.mxu0 %v1494_v35 }
  0x43   :  { %17 = vsyncpa [#allocation5], 0  ;;  %v1500_v48 = vpack.c.bf16 %v113_v44, %v111_v43  ;;  %v1502_v49 = vpack.c.bf16 %v118_v47, %v116_v46  ;;  %v115_v50 = vld [vmem:[%s3580_s1 + $0x240] sm:$0xff]  ;;  %v117_v51 = vld [vmem:[%s3580_s1 + $0x250] sm:$0xff]  ;;  %vm257_vm0 = vcmask 1041408   ;;  %vm253_vm1 = vcmask 146432  }
  0x44   :  { %329 = vmatmul.mubr.f32.vlgmr.msra.gmra.mrb[0].mxu0 %v36_v40  ;;  %v120_v52 = vld [vmem:[%s3580_s1 + $0x268] sm:$0xff]  ;;  %v122_v53 = vld [vmem:[%s3580_s1 + $0x278] sm:$0xff]  ;;  %v1504_v54 = vpack.c.bf16 %v117_v51, %v115_v50  ;;  %v119_v56 = vld [vmem:[%s3580_s1 + $0x260] sm:$0xff] }
  0x45   :  { %1497 = vmatpush1.bf16.msra.mxu0 %v1496_v41  ;;  %399 = vmatprep.mubr.f32.mxu0 %v39_v45  ;;  %v1506_v55 = vpack.c.bf16 %v122_v53, %v120_v52  ;;  %v121_v57 = vld [vmem:[%s3580_s1 + $0x270] sm:$0xff]  ;;  %v124_v58 = vld [vmem:[%s3580_s1 + $0x288] sm:$0xff]  ;;  %v126_v59 = vld [vmem:[%s3580_s1 + $0x298] sm:$0xff] }
  0x46   :  { %1499 = vmatprep.subr.bf16.mxu0 %v1498_v42  ;;  %v123_v60 = vld [vmem:[%s3580_s1 + $0x280] sm:$0xff]  ;;  %v125_v61 = vld [vmem:[%s3580_s1 + $0x290] sm:$0xff]  ;;  %v567_v63 = vld [vmem:[%s3582_s3 + $0x88] sm:$0xff]  ;;  %v1508_v1 = vpack.c.bf16 %v121_v57, %v119_v56  ;;  %v1510_v6 = vpack.c.bf16 %v126_v59, %v124_v58 }
  0x47   :  { %v566_v62 = vld [vmem:[%s3582_s3 + $0x80] sm:$0xff]  ;;  %v551_v3 = vld [vmem:[%s3582_s3 + $0x8] sm:$0xff]  ;;  %v568_v4 = vld [vmem:[%s3582_s3 + $0x90] sm:$0xff]  ;;  %v1512_v16 = vpack.c.bf16 %v125_v61, %v123_v60 }
  0x48   :  { %v550_v0 = vld [vmem:[%s3582_s3] sm:$0xff]  ;;  %v1626_v2 = vpack.c.bf16 %v567_v63, %v566_v62  ;;  %v569_v5 = vld [vmem:[%s3582_s3 + $0x98] sm:$0xff]  ;;  %v552_v9 = vld [vmem:[%s3582_s3 + $0x10] sm:$0xff] }
  0x49   :  { %1501 = vmatpush1.bf16.msra.mxu0 %v1500_v48  ;;  %v1628_v7 = vpack.c.bf16 %v551_v3, %v550_v0  ;;  %v1630_v8 = vpack.c.bf16 %v569_v5, %v568_v4  ;;  %v553_v10 = vld [vmem:[%s3582_s3 + $0x18] sm:$0xff]  ;;  %v570_v11 = vld [vmem:[%s3582_s3 + $0xa0] sm:$0xff]  ;;  %v128_v12 = vld [vmem:[%s3580_s1 + $0x2a8] sm:$0xff] }
  0x4a   :  { %1503 = vmatprep.subr.bf16.mxu0 %v1502_v49  ;;  %v130_v13 = vld [vmem:[%s3580_s1 + $0x2b8] sm:$0xff]  ;;  %1627 = vmatprep.subr.bf16.mxu1 %v1626_v2  ;;  %v571_v14 = vld [vmem:[%s3582_s3 + $0xa8] sm:$0xff]  ;;  %v1632_v15 = vpack.c.bf16 %v553_v10, %v552_v9  ;;  %v127_v17 = vld [vmem:[%s3580_s1 + $0x2a0] sm:$0xff] }
  0x4b   :  { %1629 = vmatpush3.bf16.msra.mxu1 %v1628_v7  ;;  %v1634_v18 = vpack.c.bf16 %v571_v14, %v570_v11  ;;  %v554_v19 = vld [vmem:[%s3582_s3 + $0x20] sm:$0xff]  ;;  %v555_v20 = vld [vmem:[%s3582_s3 + $0x28] sm:$0xff]  ;;  %v1514_v21 = vpack.c.bf16 %v130_v13, %v128_v12  ;;  %v129_v22 = vld [vmem:[%s3580_s1 + $0x2b0] sm:$0xff] }
  0x4c   :  { %1631 = vmatprep.subr.bf16.mxu1 %v1630_v8  ;;  %v572_v23 = vld [vmem:[%s3582_s3 + $0xb0] sm:$0xff]  ;;  %v573_v24 = vld [vmem:[%s3582_s3 + $0xb8] sm:$0xff]  ;;  %v132_v25 = vld [vmem:[%s3580_s1 + $0x2c8] sm:$0xff]  ;;  %v1636_v27 = vpack.c.bf16 %v555_v20, %v554_v19  ;;  %v1516_v28 = vpack.c.bf16 %v129_v22, %v127_v17 }
  0x4d   :  { %1505 = vmatpush1.bf16.msra.mxu0 %v1504_v54  ;;  %v134_v26 = vld [vmem:[%s3580_s1 + $0x2d8] sm:$0xff]  ;;  %v131_v29 = vld [vmem:[%s3580_s1 + $0x2c0] sm:$0xff]  ;;  %v1638_v30 = vpack.c.bf16 %v573_v24, %v572_v23  ;;  %v556_v31 = vld [vmem:[%s3582_s3 + $0x30] sm:$0xff] }
  0x4e   :  { %1507 = vmatprep.subr.bf16.mxu0 %v1506_v55  ;;  %v557_v32 = vld [vmem:[%s3582_s3 + $0x38] sm:$0xff]  ;;  %v1518_v33 = vpack.c.bf16 %v134_v26, %v132_v25  ;;  %v133_v34 = vld [vmem:[%s3580_s1 + $0x2d0] sm:$0xff]  ;;  %v574_v35 = vld [vmem:[%s3582_s3 + $0xc0] sm:$0xff] }
  0x4f   :  { %1633 = vmatpush3.bf16.msra.mxu1 %v1632_v15  ;;  %v575_v36 = vld [vmem:[%s3582_s3 + $0xc8] sm:$0xff]  ;;  %v138_v38 = vld [vmem:[%s3580_s1 + $0x2f8] sm:$0xff]  ;;  %v1640_v39 = vpack.c.bf16 %v557_v32, %v556_v31  ;;  %v1520_v40 = vpack.c.bf16 %v133_v34, %v131_v29  ;;  %v135_v41 = vld [vmem:[%s3580_s1 + $0x2e0] sm:$0xff] }
  0x50   :  { %1635 = vmatprep.subr.bf16.mxu1 %v1634_v18  ;;  %v136_v37 = vld [vmem:[%s3580_s1 + $0x2e8] sm:$0xff]  ;;  %v1642_v42 = vpack.c.bf16 %v575_v36, %v574_v35  ;;  %v558_v43 = vld [vmem:[%s3582_s3 + $0x40] sm:$0xff]  ;;  %v137_v46 = vld [vmem:[%s3580_s1 + $0x2f0] sm:$0xff] }
  0x51   :  { %1509 = vmatpush1.bf16.msra.mxu0 %v1508_v1  ;;  %v559_v44 = vld [vmem:[%s3582_s3 + $0x48] sm:$0xff]  ;;  %v1522_v45 = vpack.c.bf16 %v138_v38, %v136_v37  ;;  %v576_v47 = vld [vmem:[%s3582_s3 + $0xd0] sm:$0xff]  ;;  %v577_v48 = vld [vmem:[%s3582_s3 + $0xd8] sm:$0xff]  ;;  %v1524_v52 = vpack.c.bf16 %v137_v46, %v135_v41 }
  0x52   :  { %1511 = vmatprep.subr.bf16.mxu0 %v1510_v6  ;;  %v140_v49 = vld [vmem:[%s3580_s1 + $0x308] sm:$0xff]  ;;  %v142_v50 = vld [vmem:[%s3580_s1 + $0x318] sm:$0xff]  ;;  %v1644_v51 = vpack.c.bf16 %v559_v44, %v558_v43  ;;  %v139_v53 = vld [vmem:[%s3580_s1 + $0x300] sm:$0xff]  ;;  %v1646_v54 = vpack.c.bf16 %v577_v48, %v576_v47 }
  0x53   :  { %1637 = vmatpush3.bf16.msra.mxu1 %v1636_v27  ;;  %v560_v55 = vld [vmem:[%s3582_s3 + $0x50] sm:$0xff]  ;;  %v561_v56 = vld [vmem:[%s3582_s3 + $0x58] sm:$0xff]  ;;  %v1526_v57 = vpack.c.bf16 %v142_v50, %v140_v49  ;;  %v578_v59 = vld [vmem:[%s3582_s3 + $0xe0] sm:$0xff] }
  0x54   :  { %1639 = vmatprep.subr.bf16.mxu1 %v1638_v30  ;;  %v141_v58 = vld [vmem:[%s3580_s1 + $0x310] sm:$0xff]  ;;  %v579_v60 = vld [vmem:[%s3582_s3 + $0xe8] sm:$0xff]  ;;  %v146_v62 = vld [vmem:[%s3580_s1 + $0x338] sm:$0xff]  ;;  %v1648_v63 = vpack.c.bf16 %v561_v56, %v560_v55 }
  0x55   :  { %1513 = vmatpush1.bf16.msra.mxu0 %v1512_v16  ;;  %v144_v61 = vld [vmem:[%s3580_s1 + $0x328] sm:$0xff]  ;;  %v1528_v0 = vpack.c.bf16 %v141_v58, %v139_v53  ;;  %v1650_v1 = vpack.c.bf16 %v579_v60, %v578_v59  ;;  %v143_v3 = vld [vmem:[%s3580_s1 + $0x320] sm:$0xff]  ;;  %v145_v4 = vld [vmem:[%s3580_s1 + $0x330] sm:$0xff] }
  0x56   :  { %1515 = vmatprep.subr.bf16.mxu0 %v1514_v21  ;;  %v1530_v2 = vpack.c.bf16 %v146_v62, %v144_v61  ;;  %v148_v5 = vld [vmem:[%s3580_s1 + $0x348] sm:$0xff]  ;;  %v150_v6 = vld [vmem:[%s3580_s1 + $0x358] sm:$0xff]  ;;  %v1532_v7 = vpack.c.bf16 %v145_v4, %v143_v3  ;;  %v147_v9 = vld [vmem:[%s3580_s1 + $0x340] sm:$0xff] }
  0x57   :  { %1641 = vmatpush3.bf16.msra.mxu1 %v1640_v39  ;;  %v1534_v8 = vpack.c.bf16 %v150_v6, %v148_v5  ;;  %v149_v10 = vld [vmem:[%s3580_s1 + $0x350] sm:$0xff]  ;;  %v152_v11 = vld [vmem:[%s3580_s1 + $0x368] sm:$0xff]  ;;  %v154_v12 = vld [vmem:[%s3580_s1 + $0x378] sm:$0xff] }
  0x58   :  { %1643 = vmatprep.subr.bf16.mxu1 %v1642_v42  ;;  %v1536_v13 = vpack.c.bf16 %v149_v10, %v147_v9  ;;  %v1538_v14 = vpack.c.bf16 %v154_v12, %v152_v11  ;;  %v151_v15 = vld [vmem:[%s3580_s1 + $0x360] sm:$0xff]  ;;  %v153_v16 = vld [vmem:[%s3580_s1 + $0x370] sm:$0xff]  ;;  %v156_v17 = vld [vmem:[%s3580_s1 + $0x388] sm:$0xff] }
  0x59   :  { %1517 = vmatpush1.bf16.msra.mxu0 %v1516_v28  ;;  %v158_v18 = vld [vmem:[%s3580_s1 + $0x398] sm:$0xff]  ;;  %v1540_v19 = vpack.c.bf16 %v153_v16, %v151_v15  ;;  %v155_v21 = vld [vmem:[%s3580_s1 + $0x380] sm:$0xff]  ;;  %v157_v22 = vld [vmem:[%s3580_s1 + $0x390] sm:$0xff] }
  0x5a   :  { %1519 = vmatprep.subr.bf16.mxu0 %v1518_v33  ;;  %v1542_v20 = vpack.c.bf16 %v158_v18, %v156_v17  ;;  %v160_v23 = vld [vmem:[%s3580_s1 + $0x3a8] sm:$0xff]  ;;  %v162_v24 = vld [vmem:[%s3580_s1 + $0x3b8] sm:$0xff]  ;;  %v1544_v25 = vpack.c.bf16 %v157_v22, %v155_v21  ;;  %v159_v27 = vld [vmem:[%s3580_s1 + $0x3a0] sm:$0xff] }
  0x5b   :  { %1645 = vmatpush3.bf16.msra.mxu1 %v1644_v51  ;;  %v1546_v26 = vpack.c.bf16 %v162_v24, %v160_v23  ;;  %v161_v28 = vld [vmem:[%s3580_s1 + $0x3b0] sm:$0xff]  ;;  %v164_v29 = vld [vmem:[%s3580_s1 + $0x3c8] sm:$0xff]  ;;  %v166_v30 = vld [vmem:[%s3580_s1 + $0x3d8] sm:$0xff] }
  0x5c   :  { %1647 = vmatprep.subr.bf16.mxu1 %v1646_v54  ;;  %v1548_v31 = vpack.c.bf16 %v161_v28, %v159_v27  ;;  %v1550_v32 = vpack.c.bf16 %v166_v30, %v164_v29  ;;  %v163_v33 = vld [vmem:[%s3580_s1 + $0x3c0] sm:$0xff]  ;;  %v165_v34 = vld [vmem:[%s3580_s1 + $0x3d0] sm:$0xff]  ;;  %v168_v35 = vld [vmem:[%s3580_s1 + $0x3e8] sm:$0xff] }
  0x5d   :  { %1521 = vmatpush1.bf16.msra.mxu0 %v1520_v40  ;;  %v170_v36 = vld [vmem:[%s3580_s1 + $0x3f8] sm:$0xff]  ;;  %v1552_v37 = vpack.c.bf16 %v165_v34, %v163_v33  ;;  %v167_v39 = vld [vmem:[%s3580_s1 + $0x3e0] sm:$0xff]  ;;  %v169_v40 = vld [vmem:[%s3580_s1 + $0x3f0] sm:$0xff] }
  0x5e   :  { %1523 = vmatprep.subr.bf16.mxu0 %v1522_v45  ;;  %v1554_v38 = vpack.c.bf16 %v170_v36, %v168_v35  ;;  %v172_v41 = vld [vmem:[%s3580_s1 + $0x408] sm:$0xff]  ;;  %v174_v42 = vld [vmem:[%s3580_s1 + $0x418] sm:$0xff]  ;;  %v1556_v43 = vpack.c.bf16 %v169_v40, %v167_v39  ;;  %v171_v45 = vld [vmem:[%s3580_s1 + $0x400] sm:$0xff] }
  0x5f   :  { %1649 = vmatpush3.bf16.msra.mxu1 %v1648_v63  ;;  %v1558_v44 = vpack.c.bf16 %v174_v42, %v172_v41  ;;  %v173_v46 = vld [vmem:[%s3580_s1 + $0x410] sm:$0xff]  ;;  %v176_v47 = vld [vmem:[%s3580_s1 + $0x428] sm:$0xff]  ;;  %v178_v48 = vld [vmem:[%s3580_s1 + $0x438] sm:$0xff] }
  0x60   :  { %1651 = vmatprep.subr.bf16.mxu1 %v1650_v1  ;;  %v38_v49 = vld [vmem:[%s3579_s0 + $0x10] sm:$0xff]  ;;  %v1560_v50 = vpack.c.bf16 %v173_v46, %v171_v45  ;;  %v1562_v51 = vpack.c.bf16 %v178_v48, %v176_v47  ;;  %v41_v54 = vld [vmem:[%s3579_s0 + $0x28] sm:$0xff]  ;;  %v182_v56 = vld [vmem:[%s3580_s1 + $0x458] sm:$0xff] }
  0x61   :  { %1525 = vmatpush1.bf16.msra.mxu0 %v1524_v52  ;;  %v175_v52 = vld [vmem:[%s3580_s1 + $0x420] sm:$0xff]  ;;  %v177_v53 = vld [vmem:[%s3580_s1 + $0x430] sm:$0xff]  ;;  %v180_v55 = vld [vmem:[%s3580_s1 + $0x448] sm:$0xff] }
  0x62   :  { %1527 = vmatprep.subr.bf16.mxu0 %v1526_v57  ;;  %v1564_v57 = vpack.c.bf16 %v177_v53, %v175_v52  ;;  %v1566_v58 = vpack.c.bf16 %v182_v56, %v180_v55  ;;  %v179_v59 = vld [vmem:[%s3580_s1 + $0x440] sm:$0xff]  ;;  %v181_v60 = vld [vmem:[%s3580_s1 + $0x450] sm:$0xff]  ;;  %v184_v61 = vld [vmem:[%s3580_s1 + $0x468] sm:$0xff] }
  0x63   :  { %v186_v62 = vld [vmem:[%s3580_s1 + $0x478] sm:$0xff]  ;;  %v1568_v63 = vpack.c.bf16 %v181_v60, %v179_v59  ;;  %v183_v1 = vld [vmem:[%s3580_s1 + $0x460] sm:$0xff]  ;;  %v188_v3 = vld [vmem:[%s3580_s1 + $0x488] sm:$0xff] }
  0x64   :  { %v190_v4 = vld [vmem:[%s3580_s1 + $0x498] sm:$0xff]  ;;  %v192_v9 = vld [vmem:[%s3580_s1 + $0x4a8] sm:$0xff]  ;;  %v219_v55 = vld [vmem:[%s3580_s1 + $0x580] sm:$0xff] }
  0x65   :  { %1529 = vmatpush1.bf16.msra.mxu0 %v1528_v0  ;;  %v1570_v0 = vpack.c.bf16 %v186_v62, %v184_v61  ;;  %v1574_v6 = vpack.c.bf16 %v190_v4, %v188_v3  ;;  %v194_v10 = vld [vmem:[%s3580_s1 + $0x4b8] sm:$0xff]  ;;  %v196_v15 = vld [vmem:[%s3580_s1 + $0x4c8] sm:$0xff]  ;;  %v221_v56 = vld [vmem:[%s3580_s1 + $0x590] sm:$0xff] }
  0x66   :  { %1531 = vmatprep.subr.bf16.mxu0 %v1530_v2  ;;  %v185_v2 = vld [vmem:[%s3580_s1 + $0x470] sm:$0xff]  ;;  %v1578_v12 = vpack.c.bf16 %v194_v10, %v192_v9  ;;  %v198_v16 = vld [vmem:[%s3580_s1 + $0x4d8] sm:$0xff]  ;;  %v200_v21 = vld [vmem:[%s3580_s1 + $0x4e8] sm:$0xff]  ;;  %v1608_v59 = vpack.c.bf16 %v221_v56, %v219_v55 }
  0x67   :  { %v1572_v5 = vpack.c.bf16 %v185_v2, %v183_v1  ;;  %v1582_v18 = vpack.c.bf16 %v198_v16, %v196_v15  ;;  %v202_v22 = vld [vmem:[%s3580_s1 + $0x4f8] sm:$0xff]  ;;  %v204_v27 = vld [vmem:[%s3580_s1 + $0x508] sm:$0xff]  ;;  %v223_v61 = vld [vmem:[%s3580_s1 + $0x5a0] sm:$0xff] }
  0x68   :  { %v1586_v24 = vpack.c.bf16 %v202_v22, %v200_v21  ;;  %v206_v28 = vld [vmem:[%s3580_s1 + $0x518] sm:$0xff]  ;;  %v208_v33 = vld [vmem:[%s3580_s1 + $0x528] sm:$0xff]  ;;  %v225_v62 = vld [vmem:[%s3580_s1 + $0x5b0] sm:$0xff] }
  0x69   :  { %1533 = vmatpush1.bf16.msra.mxu0 %v1532_v7  ;;  %v187_v7 = vld [vmem:[%s3580_s1 + $0x480] sm:$0xff]  ;;  %v1590_v30 = vpack.c.bf16 %v206_v28, %v204_v27  ;;  %v210_v34 = vld [vmem:[%s3580_s1 + $0x538] sm:$0xff]  ;;  %v212_v39 = vld [vmem:[%s3580_s1 + $0x548] sm:$0xff]  ;;  %v1612_v1 = vpack.c.bf16 %v225_v62, %v223_v61 }
  0x6a   :  { %1535 = vmatprep.subr.bf16.mxu0 %v1534_v8  ;;  %v189_v8 = vld [vmem:[%s3580_s1 + $0x490] sm:$0xff]  ;;  %v1594_v36 = vpack.c.bf16 %v210_v34, %v208_v33  ;;  %v214_v40 = vld [vmem:[%s3580_s1 + $0x558] sm:$0xff]  ;;  %v216_v45 = vld [vmem:[%s3580_s1 + $0x568] sm:$0xff] }
  0x6b   :  { %v1576_v11 = vpack.c.bf16 %v189_v8, %v187_v7  ;;  %v1598_v42 = vpack.c.bf16 %v214_v40, %v212_v39  ;;  %v218_v46 = vld [vmem:[%s3580_s1 + $0x578] sm:$0xff]  ;;  %v227_v3 = vld [vmem:[%s3580_s1 + $0x5c0] sm:$0xff]  ;;  %v229_v4 = vld [vmem:[%s3580_s1 + $0x5d0] sm:$0xff] }
  0x6c   :  { %v1602_v48 = vpack.c.bf16 %v218_v46, %v216_v45  ;;  %v222_v52 = vld [vmem:[%s3580_s1 + $0x598] sm:$0xff]  ;;  %v1616_v7 = vpack.c.bf16 %v229_v4, %v227_v3  ;;  %v231_v9 = vld [vmem:[%s3580_s1 + $0x5e0] sm:$0xff]  ;;  %v233_v10 = vld [vmem:[%s3580_s1 + $0x5f0] sm:$0xff] }
  0x6d   :  { %1537 = vmatpush1.bf16.msra.mxu0 %v1536_v13  ;;  %v191_v13 = vld [vmem:[%s3580_s1 + $0x4a0] sm:$0xff]  ;;  %v237_v16 = vld [vmem:[%s3580_s1 + $0x610] sm:$0xff]  ;;  %v581_v27 = vld [vmem:[%s3582_s3 + $0xf8] sm:$0xff] }
  0x6e   :  { %1539 = vmatprep.subr.bf16.mxu0 %v1538_v14  ;;  %v193_v14 = vld [vmem:[%s3580_s1 + $0x4b0] sm:$0xff]  ;;  %v235_v15 = vld [vmem:[%s3580_s1 + $0x600] sm:$0xff]  ;;  %v663_v33 = vld [vmem:[%s3584_s5 + $0x18] sm:$0xff] }
  0x6f   :  { %v1580_v17 = vpack.c.bf16 %v193_v14, %v191_v13  ;;  %v1620_v13 = vpack.c.bf16 %v233_v10, %v231_v9  ;;  %v239_v21 = vld [vmem:[%s3580_s1 + $0x620] sm:$0x3]  ;;  %v42_v22 = vld [vmem:[%s3579_s0 + $0x30] sm:$0xff]  ;;  %v669_v56 = vld [vmem:[%s3584_s5 + $0x48] sm:$0xff] }
  0x70   :  { %v660_v45 = vld [vmem:[%s3584_s5] sm:$0xff]  ;;  %v662_v46 = vld [vmem:[%s3584_s5 + $0x10] sm:$0xff]  ;;  %v673_v62 = vld [vmem:[%s3584_s5 + $0x68] sm:$0xff] }
  0x71   :  { %1541 = vmatpush1.bf16.msra.mxu0 %v1540_v19  ;;  %v195_v19 = vld [vmem:[%s3580_s1 + $0x4c0] sm:$0xff]  ;;  %v666_v55 = vld [vmem:[%s3584_s5 + $0x30] sm:$0xff]  ;;  %v677_v4 = vld [vmem:[%s3584_s5 + $0x88] sm:$0xff] }
  0x72   :  { %1543 = vmatprep.subr.bf16.mxu0 %v1542_v20  ;;  %v197_v20 = vld [vmem:[%s3580_s1 + $0x4d0] sm:$0xff]  ;;  %v681_v10 = vld [vmem:[%s3584_s5 + $0xa8] sm:$0xff] }
  0x73   :  { %v1584_v23 = vpack.c.bf16 %v197_v20, %v195_v19  ;;  %v240_v19 = vld [vmem:[%s3580_s1 + $0x628] sm:$0x3]  ;;  %v1973_v20 = vmov 0.0   ;;  %v670_v61 = vld [vmem:[%s3584_s5 + $0x50] sm:$0xff] }
  0x74   :  { %v674_v3 = vld [vmem:[%s3584_s5 + $0x70] sm:$0xff] }
  0x75   :  { %1545 = vmatpush1.bf16.msra.mxu0 %v1544_v25  ;;  %v199_v25 = vld [vmem:[%s3580_s1 + $0x4e0] sm:$0xff]  ;;  %v678_v9 = vld [vmem:[%s3584_s5 + $0x90] sm:$0xff] }
  0x76   :  { %1547 = vmatprep.subr.bf16.mxu0 %v1546_v26  ;;  %v201_v26 = vld [vmem:[%s3580_s1 + $0x4f0] sm:$0xff] }
  0x77   :  { %v1588_v29 = vpack.c.bf16 %v201_v26, %v199_v25  ;;  %v580_v26 = vld [vmem:[%s3582_s3 + $0xf0] sm:$0xff] }
  0x78   :  { %v1654_v28 = vpack.c.bf16 %v581_v27, %v580_v26  ;;  %v688_v26 = vld [vmem:[%s3584_s5 + $0xe0] sm:$0xff]  ;;  %v690_v27 = vld [vmem:[%s3584_s5 + $0xf0] sm:$0xff] }
  0x79   :  { %1549 = vmatpush1.bf16.msra.mxu0 %v1548_v31  ;;  %v203_v31 = vld [vmem:[%s3580_s1 + $0x500] sm:$0xff] }
  0x7a   :  { %1551 = vmatprep.subr.bf16.mxu0 %v1550_v32  ;;  %v205_v32 = vld [vmem:[%s3580_s1 + $0x510] sm:$0xff] }
  0x7b   :  { %v1592_v35 = vpack.c.bf16 %v205_v32, %v203_v31  ;;  %v661_v32 = vld [vmem:[%s3584_s5 + $0x8] sm:$0xff] }
  0x7c   :  { %v1658_v34 = vpack.c.bf16 %v663_v33, %v661_v32  ;;  %v895_v32 = vld [vmem:[%s3586_s7 + $0x3b0] sm:$0xff]  ;;  %v902_v33 = vld [vmem:[%s3586_s7 + $0x3e8] sm:$0xff] }
  0x7d   :  { %1553 = vmatpush1.bf16.msra.mxu0 %v1552_v37  ;;  %v207_v37 = vld [vmem:[%s3580_s1 + $0x520] sm:$0xff] }
  0x7e   :  { %1555 = vmatprep.subr.bf16.mxu0 %v1554_v38  ;;  %v209_v38 = vld [vmem:[%s3580_s1 + $0x530] sm:$0xff] }
  0x7f   :  { %v1596_v41 = vpack.c.bf16 %v209_v38, %v207_v37  ;;  %v241_v38 = vld [vmem:[%s3581_s2] sm:$0x3] }
  0x81   :  { %1557 = vmatpush1.bf16.msra.mxu0 %v1556_v43  ;;  %v211_v43 = vld [vmem:[%s3580_s1 + $0x540] sm:$0xff] }
  0x82   :  { %1559 = vmatprep.subr.bf16.mxu0 %v1558_v44  ;;  %v213_v44 = vld [vmem:[%s3580_s1 + $0x550] sm:$0xff] }
  0x83   :  { %v1600_v47 = vpack.c.bf16 %v213_v44, %v211_v43 }
  0x84   :  { %400 = vmatmul.mubr.f32.vlgmr.msra.gmra.mrb[0].mxu0 %v38_v49  ;;  %v215_v49 = vld [vmem:[%s3580_s1 + $0x560] sm:$0xff] }
  0x85   :  { %1561 = vmatpush1.bf16.msra.mxu0 %v1560_v50  ;;  %470 = vmatprep.mubr.f32.mxu0 %v41_v54  ;;  %v217_v50 = vld [vmem:[%s3580_s1 + $0x570] sm:$0xff] }
  0x86   :  { %1563 = vmatprep.subr.bf16.mxu0 %v1562_v51  ;;  %v220_v51 = vld [vmem:[%s3580_s1 + $0x588] sm:$0xff]  ;;  %v1604_v53 = vpack.c.bf16 %v217_v50, %v215_v49  ;;  %v667_v49 = vld [vmem:[%s3584_s5 + $0x38] sm:$0xff] }
  0x87   :  { %v1606_v54 = vpack.c.bf16 %v222_v52, %v220_v51  ;;  %v1660_v51 = vpack.c.bf16 %v662_v46, %v660_v45  ;;  %v804_v45 = vld [vmem:[%s3586_s7 + $0xd8] sm:$0xff] }
  0x89   :  { %1565 = vmatpush1.bf16.msra.mxu0 %v1564_v57  ;;  %v224_v57 = vld [vmem:[%s3580_s1 + $0x5a8] sm:$0xff] }
  0x8a   :  { %1567 = vmatprep.subr.bf16.mxu0 %v1566_v58  ;;  %v226_v58 = vld [vmem:[%s3580_s1 + $0x5b8] sm:$0xff] }
  0x8b   :  { %v1610_v60 = vpack.c.bf16 %v226_v58, %v224_v57  ;;  %v671_v57 = vld [vmem:[%s3584_s5 + $0x58] sm:$0xff] }
  0x8d   :  { %1569 = vmatpush1.bf16.msra.mxu0 %v1568_v63  ;;  %v228_v63 = vld [vmem:[%s3580_s1 + $0x5c8] sm:$0xff] }
  0x8e   :  { %1571 = vmatprep.subr.bf16.mxu0 %v1570_v0  ;;  %v230_v0 = vld [vmem:[%s3580_s1 + $0x5d8] sm:$0xff] }
  0x8f   :  { %v1614_v2 = vpack.c.bf16 %v230_v0, %v228_v63  ;;  %v675_v63 = vld [vmem:[%s3584_s5 + $0x78] sm:$0xff] }
  0x91   :  { %1573 = vmatpush1.bf16.msra.mxu0 %v1572_v5  ;;  %v232_v5 = vld [vmem:[%s3580_s1 + $0x5e8] sm:$0xff] }
  0x92   :  { %1575 = vmatprep.subr.bf16.mxu0 %v1574_v6  ;;  %v234_v6 = vld [vmem:[%s3580_s1 + $0x5f8] sm:$0xff] }
  0x93   :  { %v1618_v8 = vpack.c.bf16 %v234_v6, %v232_v5  ;;  %v679_v5 = vld [vmem:[%s3584_s5 + $0x98] sm:$0xff] }
  0x95   :  { %1577 = vmatpush1.bf16.msra.mxu0 %v1576_v11  ;;  %v236_v11 = vld [vmem:[%s3580_s1 + $0x608] sm:$0xff] }
  0x96   :  { %1579 = vmatprep.subr.bf16.mxu0 %v1578_v12  ;;  %v238_v12 = vld [vmem:[%s3580_s1 + $0x618] sm:$0xff] }
  0x97   :  { %v1622_v14 = vpack.c.bf16 %v238_v12, %v236_v11  ;;  %v683_v11 = vld [vmem:[%s3584_s5 + $0xb8] sm:$0xff] }
  0x99   :  { %1581 = vmatpush1.bf16.msra.mxu0 %v1580_v17  ;;  %v40_v17 = vld [vmem:[%s3579_s0 + $0x20] sm:$0xff] }
  0x9a   :  { %1583 = vmatprep.subr.bf16.mxu0 %v1582_v18  ;;  %v1624_v18 = vpack.c.bf16 %v237_v16, %v235_v15  ;;  %v682_v15 = vld [vmem:[%s3584_s5 + $0xb0] sm:$0xff]  ;;  %v685_v16 = vld [vmem:[%s3584_s5 + $0xc8] sm:$0xff] }
  0x9d   :  { %1585 = vmatpush1.bf16.msra.mxu0 %v1584_v23  ;;  %v562_v23 = vld [vmem:[%s3582_s3 + $0x60] sm:$0xff] }
  0x9e   :  { %1587 = vmatprep.subr.bf16.mxu0 %v1586_v24  ;;  %v563_v24 = vld [vmem:[%s3582_s3 + $0x68] sm:$0xff] }
  0x9f   :  { %v1652_v25 = vpack.c.bf16 %v563_v24, %v562_v23  ;;  %v689_v23 = vld [vmem:[%s3584_s5 + $0xe8] sm:$0xff]  ;;  %v691_v24 = vld [vmem:[%s3584_s5 + $0xf8] sm:$0xff] }
  0xa1   :  { %1589 = vmatpush1.bf16.msra.mxu0 %v1588_v29  ;;  %1653 = vmatpush3.bf16.msra.mxu1 %v1652_v25  ;;  %v564_v29 = vld [vmem:[%s3582_s3 + $0x70] sm:$0xff]  ;;  %v1686_v25 = vpack.c.bf16 %v691_v24, %v689_v23  ;;  %v806_v23 = vld [vmem:[%s3586_s7 + $0xe8] sm:$0xff]  ;;  %v813_v24 = vld [vmem:[%s3586_s7 + $0x120] sm:$0xff] }
  0xa2   :  { %1591 = vmatprep.subr.bf16.mxu0 %v1590_v30  ;;  %v565_v30 = vld [vmem:[%s3582_s3 + $0x78] sm:$0xff]  ;;  %1655 = vmatprep.subr.bf16.mxu1 %v1654_v28  ;;  %v1688_v28 = vpack.c.bf16 %v690_v27, %v688_v26  ;;  %v1698_v26 = vpack.c.bf16 %v813_v24, %v806_v23  ;;  %v805_v27 = vld [vmem:[%s3586_s7 + $0xe0] sm:$0xff] }
  0xa3   :  { %v1656_v31 = vpack.c.bf16 %v565_v30, %v564_v29  ;;  %v778_v29 = vld [vmem:[%s3586_s7 + $0x8] sm:$0xff]  ;;  %v785_v30 = vld [vmem:[%s3586_s7 + $0x40] sm:$0xff] }
  0xa4   :  { %v953_v23 = vld [vmem:[%s3586_s7 + $0x580] sm:$0xff] }
  0xa5   :  { %1593 = vmatpush1.bf16.msra.mxu0 %v1592_v35  ;;  %1657 = vmatpush3.bf16.msra.mxu1 %v1656_v31  ;;  %v243_v35 = vlaneseq  ;;  %v1690_v31 = vpack.c.bf16 %v785_v30, %v778_v29  ;;  %v820_v29 = vld [vmem:[%s3586_s7 + $0x158] sm:$0xff]  ;;  %v827_v30 = vld [vmem:[%s3586_s7 + $0x190] sm:$0xff] }
  0xa6   :  { %1595 = vmatprep.subr.bf16.mxu0 %v1594_v36  ;;  %1659 = vmatprep.subr.bf16.mxu1 %v1658_v34  ;;  %v783_v34 = vld [vmem:[%s3586_s7 + $0x30] sm:$0xff] }
  0xa7   :  { %v2749_v36 = vshrl.u32 %v243_v35, 7  ;;  %v1882_v35 = vpack.c.bf16 %v902_v33, %v895_v32  ;;  %v1702_v32 = vpack.c.bf16 %v827_v30, %v820_v29  ;;  %v819_v33 = vld [vmem:[%s3586_s7 + $0x150] sm:$0xff] }
  0xa8   :  { %v967_v29 = vld [vmem:[%s3586_s7 + $0x5f0] sm:$0xff] }
  0xa9   :  { %1597 = vmatpush1.bf16.msra.mxu0 %v1596_v41  ;;  %v2752_v37 = vsub.s32 0, %v2749_v36  ;;  %v2758_v39 = vsub.s32 1, %v2749_v36 }
  0xaa   :  { %1599 = vmatprep.subr.bf16.mxu0 %v1598_v42 }
  0xab   :  { %v246_v40 = vrot.slane %v241_v38, %v2752_v37  ;;  %v250_v41 = vrot.slane %v241_v38, %v2758_v39  ;;  %v790_v38 = vld [vmem:[%s3586_s7 + $0x68] sm:$0xff] }
  0xad   :  { %1601 = vmatpush1.bf16.msra.mxu0 %v1600_v47 }
  0xae   :  { %1603 = vmatprep.subr.bf16.mxu0 %v1602_v48  ;;  %v665_v48 = vld [vmem:[%s3584_s5 + $0x28] sm:$0xff] }
  0xb1   :  { %1605 = vmatpush1.bf16.msra.mxu0 %v1604_v53  ;;  %v1662_v53 = vpack.c.bf16 %v667_v49, %v665_v48  ;;  %v930_v48 = vld [vmem:[%s3586_s7 + $0x4c8] sm:$0xff]  ;;  %v811_v49 = vld [vmem:[%s3586_s7 + $0x110] sm:$0xff] }
  0xb2   :  { %1607 = vmatprep.subr.bf16.mxu0 %v1606_v54  ;;  %v664_v54 = vld [vmem:[%s3584_s5 + $0x20] sm:$0xff] }
  0xb3   :  { %v1664_v58 = vpack.c.bf16 %v666_v55, %v664_v54  ;;  %v944_v54 = vld [vmem:[%s3586_s7 + $0x538] sm:$0xff]  ;;  %v825_v55 = vld [vmem:[%s3586_s7 + $0x180] sm:$0xff] }
  0xb5   :  { %1609 = vmatpush1.bf16.msra.mxu0 %v1608_v59  ;;  %v1666_v59 = vpack.c.bf16 %v671_v57, %v669_v56  ;;  %v832_v57 = vld [vmem:[%s3586_s7 + $0x1b8] sm:$0xff] }
  0xb6   :  { %1611 = vmatprep.subr.bf16.mxu0 %v1610_v60  ;;  %v668_v60 = vld [vmem:[%s3584_s5 + $0x40] sm:$0xff] }
  0xb7   :  { %v1668_v0 = vpack.c.bf16 %v670_v61, %v668_v60  ;;  %v958_v60 = vld [vmem:[%s3586_s7 + $0x5a8] sm:$0xff]  ;;  %v839_v61 = vld [vmem:[%s3586_s7 + $0x1f0] sm:$0xff] }
  0xb9   :  { %1613 = vmatpush1.bf16.msra.mxu0 %v1612_v1  ;;  %v1670_v1 = vpack.c.bf16 %v675_v63, %v673_v62  ;;  %v846_v63 = vld [vmem:[%s3586_s7 + $0x228] sm:$0xff] }
  0xba   :  { %1615 = vmatprep.subr.bf16.mxu0 %v1614_v2  ;;  %v672_v2 = vld [vmem:[%s3584_s5 + $0x60] sm:$0xff] }
  0xbb   :  { %v1672_v6 = vpack.c.bf16 %v674_v3, %v672_v2  ;;  %v972_v2 = vld [vmem:[%s3586_s7 + $0x618] sm:$0xff]  ;;  %v853_v3 = vld [vmem:[%s3586_s7 + $0x260] sm:$0xff] }
  0xbd   :  { %1617 = vmatpush1.bf16.msra.mxu0 %v1616_v7  ;;  %v1674_v7 = vpack.c.bf16 %v679_v5, %v677_v4  ;;  %v860_v5 = vld [vmem:[%s3586_s7 + $0x298] sm:$0xff] }
  0xbe   :  { %1619 = vmatprep.subr.bf16.mxu0 %v1618_v8  ;;  %v676_v8 = vld [vmem:[%s3584_s5 + $0x80] sm:$0xff] }
  0xbf   :  { %v1676_v12 = vpack.c.bf16 %v678_v9, %v676_v8  ;;  %v986_v8 = vld [vmem:[%s3586_s7 + $0x688] sm:$0xff] }
  0xc1   :  { %1621 = vmatpush1.bf16.msra.mxu0 %v1620_v13  ;;  %v1678_v13 = vpack.c.bf16 %v683_v11, %v681_v10  ;;  %v777_v11 = vld [vmem:[%s3586_s7] sm:$0xff] }
  0xc2   :  { %1623 = vmatprep.subr.bf16.mxu0 %v1622_v14  ;;  %v680_v14 = vld [vmem:[%s3584_s5 + $0xa0] sm:$0xff] }
  0xc4   :  { %471 = vmatmul.mubr.f32.vlgmr.msra.gmra.mrb[0].mxu0 %v40_v17  ;;  %v687_v17 = vld [vmem:[%s3584_s5 + $0xd8] sm:$0xff] }
  0xc5   :  { %1625 = vmatpush1.bf16.msra.mxu0 %v1624_v18  ;;  %541 = vmatprep.mubr.f32.mxu0 %v1973_v20  ;;  %v1680_v18 = vpack.c.bf16 %v682_v15, %v680_v14  ;;  %v792_v15 = vld [vmem:[%s3586_s7 + $0x78] sm:$0xff] }
  0xc6   :  { %1356 = vmatprep.subr.msk.mxu0 %vm257_vm0, %v240_v19  ;;  %v1682_v19 = vpack.c.bf16 %v687_v17, %v685_v16  ;;  %v799_v16 = vld [vmem:[%s3586_s7 + $0xb0] sm:$0xff] }
  0xc9   :  { %1357 = vmatpush1.msk.msra.mxu0 %vm257_vm0, %v239_v21  ;;  %v686_v21 = vld [vmem:[%s3584_s5 + $0xd0] sm:$0xff] }
  0xca   :  { %1883 = vmatprep.subr.bf16.mxu0 %v1882_v35  ;;  %v834_v35 = vld [vmem:[%s3586_s7 + $0x1c8] sm:$0xff] }
  0xcc   :  { %1358 = vmatmul.mubr.msk.f32.vlgmr.msra.gmra.mrb[0].mxu0 %vm253_vm1, %v42_v22 }
 0x19f   :  { %v543_v42 = vpop.f32.mrb[0].mxu0 }
 0x1a0   :  { %v1914_v43 = vadd.f32 %v543_v42, %v246_v40  ;;  %v545_v44 = vpop.f32.mrb[1].mxu0  ;;  %v1884_v40 = vpack.c.bf16 %v790_v38, %v783_v34  ;;  %v916_v42 = vld [vmem:[%s3586_s7 + $0x458] sm:$0xff]  ;;  %v826_v34 = vld [vmem:[%s3586_s7 + $0x188] sm:$0xff]  ;;  %v841_v38 = vld [vmem:[%s3586_s7 + $0x200] sm:$0xff] }
 0x1a1   :  { %v1915_v47 = vadd.f32 %v545_v44, %v250_v41  ;;  %v909_v41 = vld [vmem:[%s3586_s7 + $0x420] sm:$0xff] }
 0x1a2   :  { %v548_v52 = vmax.f32 %v1914_v43, 0.0  ;;  %1885 = vmatpush3.bf16.msra.mxu0 %v1884_v40  ;;  %v797_v43 = vld [vmem:[%s3586_s7 + $0xa0] sm:$0xff]  ;;  %v1886_v44 = vpack.c.bf16 %v916_v42, %v909_v41  ;;  %v1704_v40 = vpack.c.bf16 %v826_v34, %v819_v33  ;;  %v1706_v41 = vpack.c.bf16 %v841_v38, %v834_v35  ;;  %v966_v33 = vld [vmem:[%s3586_s7 + $0x5e8] sm:$0xff] }
 0x1a3   :  { %v549_v50 = vmax.f32 %v1915_v47, 0.0  ;;  %v1888_v46 = vpack.c.bf16 %v804_v45, %v797_v43  ;;  %v923_v47 = vld [vmem:[%s3586_s7 + $0x490] sm:$0xff]  ;;  %v833_v42 = vld [vmem:[%s3586_s7 + $0x1c0] sm:$0xff]  ;;  %v840_v43 = vld [vmem:[%s3586_s7 + $0x1f8] sm:$0xff] }
 0x1a4   :  { %1887 = vmatprep.subr.bf16.mxu0 %v1886_v44  ;;  %v848_v44 = vld [vmem:[%s3586_s7 + $0x238] sm:$0xff]  ;;  %v855_v45 = vld [vmem:[%s3586_s7 + $0x270] sm:$0xff]  ;;  %v974_v34 = vld [vmem:[%s3586_s7 + $0x628] sm:$0xff] }
 0x1a5   :  { %653 = vmatprep.mubr.f32.mxu1 %v549_v50  ;;  %v1890_v50 = vpack.c.bf16 %v930_v48, %v923_v47  ;;  %v1710_v47 = vpack.c.bf16 %v855_v45, %v848_v44  ;;  %v847_v48 = vld [vmem:[%s3586_s7 + $0x230] sm:$0xff]  ;;  %v981_v35 = vld [vmem:[%s3586_s7 + $0x660] sm:$0xff]  ;;  %v874_v45 = vld [vmem:[%s3586_s7 + $0x308] sm:$0xff] }
 0x1a6   :  { %654 = vmatmul.mubr.f32.vlgmr.msra.gmra.mrb[0].mxu1 %v548_v52  ;;  %1889 = vmatpush3.bf16.msra.mxu0 %v1888_v46  ;;  %v1708_v46 = vpack.c.bf16 %v840_v43, %v833_v42  ;;  %v980_v42 = vld [vmem:[%s3586_s7 + $0x658] sm:$0xff]  ;;  %v867_v44 = vld [vmem:[%s3586_s7 + $0x2d0] sm:$0xff] }
 0x1a7   :  { %1661 = vmatpush1.bf16.msra.mxu1 %v1660_v51  ;;  %768 = vmatprep.mubr.f32.mxu1 %v1973_v20  ;;  %v684_v20 = vld [vmem:[%s3584_s5 + $0xc0] sm:$0xff]  ;;  %v818_v51 = vld [vmem:[%s3586_s7 + $0x148] sm:$0xff] }
 0x1a8   :  { %1663 = vmatprep.subr.bf16.mxu1 %v1662_v53  ;;  %v1684_v22 = vpack.c.bf16 %v686_v21, %v684_v20  ;;  %v1892_v52 = vpack.c.bf16 %v818_v51, %v811_v49  ;;  %1891 = vmatprep.subr.bf16.mxu0 %v1890_v50  ;;  %v937_v53 = vld [vmem:[%s3586_s7 + $0x500] sm:$0xff]  ;;  %v1694_v20 = vpack.c.bf16 %v799_v16, %v792_v15  ;;  %v791_v21 = vld [vmem:[%s3586_s7 + $0x70] sm:$0xff]  ;;  %v854_v49 = vld [vmem:[%s3586_s7 + $0x268] sm:$0xff] }
 0x1a9   :  { %v1894_v56 = vpack.c.bf16 %v944_v54, %v937_v53  ;;  %v862_v50 = vld [vmem:[%s3586_s7 + $0x2a8] sm:$0xff]  ;;  %v869_v51 = vld [vmem:[%s3586_s7 + $0x2e0] sm:$0xff]  ;;  %v924_v15 = vld [vmem:[%s3586_s7 + $0x498] sm:$0xff] }
 0x1aa   :  { %1893 = vmatpush3.bf16.msra.mxu0 %v1892_v52  ;;  %v1712_v52 = vpack.c.bf16 %v854_v49, %v847_v48  ;;  %v1714_v53 = vpack.c.bf16 %v869_v51, %v862_v50  ;;  %v861_v54 = vld [vmem:[%s3586_s7 + $0x2a0] sm:$0xff]  ;;  %v932_v16 = vld [vmem:[%s3586_s7 + $0x4d8] sm:$0xff]  ;;  %v995_v48 = vld [vmem:[%s3586_s7 + $0x6d0] sm:$0xff] }
 0x1ab   :  { %1665 = vmatpush1.bf16.msra.mxu1 %v1664_v58  ;;  %v1896_v58 = vpack.c.bf16 %v832_v57, %v825_v55  ;;  %1895 = vmatprep.subr.bf16.mxu0 %v1894_v56  ;;  %v868_v55 = vld [vmem:[%s3586_s7 + $0x2d8] sm:$0xff]  ;;  %v883_v57 = vld [vmem:[%s3586_s7 + $0x350] sm:$0xff]  ;;  %v994_v51 = vld [vmem:[%s3586_s7 + $0x6c8] sm:$0xff] }
 0x1ac   :  { %1667 = vmatprep.subr.bf16.mxu1 %v1666_v59  ;;  %v951_v59 = vld [vmem:[%s3586_s7 + $0x570] sm:$0xff]  ;;  %v876_v56 = vld [vmem:[%s3586_s7 + $0x318] sm:$0xff] }
 0x1ad   :  { %v1898_v62 = vpack.c.bf16 %v958_v60, %v951_v59  ;;  %v1718_v59 = vpack.c.bf16 %v883_v57, %v876_v56  ;;  %v875_v60 = vld [vmem:[%s3586_s7 + $0x310] sm:$0xff]  ;;  %v888_v56 = vld [vmem:[%s3586_s7 + $0x378] sm:$0xff] }
 0x1ae   :  { %1897 = vmatpush3.bf16.msra.mxu0 %v1896_v58  ;;  %v1716_v58 = vpack.c.bf16 %v868_v55, %v861_v54  ;;  %v987_v50 = vld [vmem:[%s3586_s7 + $0x690] sm:$0xff]  ;;  %v1000_v54 = vld [vmem:[%s3586_s7 + $0x6f8] sm:$0xff]  ;;  %v881_v55 = vld [vmem:[%s3586_s7 + $0x340] sm:$0xff] }
 0x1af   :  { %1669 = vmatpush1.bf16.msra.mxu1 %v1668_v0  ;;  %v1900_v0 = vpack.c.bf16 %v846_v63, %v839_v61  ;;  %1899 = vmatprep.subr.bf16.mxu0 %v1898_v62  ;;  %v882_v61 = vld [vmem:[%s3586_s7 + $0x348] sm:$0xff]  ;;  %v897_v63 = vld [vmem:[%s3586_s7 + $0x3c0] sm:$0xff] }
 0x1b0   :  { %1671 = vmatprep.subr.bf16.mxu1 %v1670_v1  ;;  %v965_v1 = vld [vmem:[%s3586_s7 + $0x5e0] sm:$0xff]  ;;  %v890_v62 = vld [vmem:[%s3586_s7 + $0x388] sm:$0xff] }
 0x1b1   :  { %v1902_v4 = vpack.c.bf16 %v972_v2, %v965_v1  ;;  %v1722_v1 = vpack.c.bf16 %v897_v63, %v890_v62  ;;  %v889_v2 = vld [vmem:[%s3586_s7 + $0x380] sm:$0xff] }
 0x1b2   :  { %1901 = vmatpush3.bf16.msra.mxu0 %v1900_v0  ;;  %v1720_v0 = vpack.c.bf16 %v882_v61, %v875_v60  ;;  %v787_v60 = vld [vmem:[%s3586_s7 + $0x50] sm:$0xff]  ;;  %v692_v62 = vld [vmem:[%s3585_s6] sm:$0x3] }
 0x1b3   :  { %1673 = vmatpush1.bf16.msra.mxu1 %v1672_v6  ;;  %v1904_v6 = vpack.c.bf16 %v860_v5, %v853_v3  ;;  %1903 = vmatprep.subr.bf16.mxu0 %v1902_v4  ;;  %v896_v3 = vld [vmem:[%s3586_s7 + $0x3b8] sm:$0xff]  ;;  %v911_v5 = vld [vmem:[%s3586_s7 + $0x430] sm:$0xff]  ;;  %v697_v63 = vrot.slane %v692_v62, %v2752_v37 }
 0x1b4   :  { %1675 = vmatprep.subr.bf16.mxu1 %v1674_v7  ;;  %v979_v7 = vld [vmem:[%s3586_s7 + $0x650] sm:$0xff]  ;;  %v904_v4 = vld [vmem:[%s3586_s7 + $0x3f8] sm:$0xff] }
 0x1b5   :  { %v1906_v9 = vpack.c.bf16 %v986_v8, %v979_v7  ;;  %v1726_v7 = vpack.c.bf16 %v911_v5, %v904_v4  ;;  %v903_v8 = vld [vmem:[%s3586_s7 + $0x3f0] sm:$0xff]  ;;  %v786_v5 = vld [vmem:[%s3586_s7 + $0x48] sm:$0xff] }
 0x1b6   :  { %1905 = vmatpush3.bf16.msra.mxu0 %v1904_v6  ;;  %v1724_v6 = vpack.c.bf16 %v896_v3, %v889_v2  ;;  %v779_v4 = vld [vmem:[%s3586_s7 + $0x10] sm:$0xff] }
 0x1b7   :  { %1677 = vmatpush1.bf16.msra.mxu1 %v1676_v12  ;;  %1907 = vmatprep.subr.bf16.mxu0 %v1906_v9  ;;  %v784_v12 = vld [vmem:[%s3586_s7 + $0x38] sm:$0xff]  ;;  %v910_v9 = vld [vmem:[%s3586_s7 + $0x428] sm:$0xff] }
 0x1b8   :  { %1679 = vmatprep.subr.bf16.mxu1 %v1678_v13  ;;  %v1359_v13 = vld [vmem:[%s3583_s4] ss:$0 sm:$0xff] }
 0x1bb   :  { %1681 = vmatpush1.bf16.msra.mxu1 %v1680_v18  ;;  %v1692_v18 = vpack.c.bf16 %v784_v12, %v777_v11  ;;  %v925_v11 = vld [vmem:[%s3586_s7 + $0x4a0] sm:$0xff]  ;;  %v1728_v12 = vpack.c.bf16 %v910_v9, %v903_v8 }
 0x1bc   :  { %1683 = vmatprep.subr.bf16.mxu1 %v1682_v19  ;;  %v801_v8 = vld [vmem:[%s3586_s7 + $0xc0] sm:$0xff] }
 0x1bf   :  { %1685 = vmatpush1.bf16.msra.mxu1 %v1684_v22  ;;  %v798_v22 = vld [vmem:[%s3586_s7 + $0xa8] sm:$0xff] }
 0x1c0   :  { %1687 = vmatprep.subr.bf16.mxu1 %v1686_v25  ;;  %v1696_v25 = vpack.c.bf16 %v798_v22, %v791_v21  ;;  %v938_v21 = vld [vmem:[%s3586_s7 + $0x508] sm:$0xff] }
 0x1c1   :  { %v946_v22 = vld [vmem:[%s3586_s7 + $0x548] sm:$0xff] }
 0x1c3   :  { %1689 = vmatpush1.bf16.msra.mxu1 %v1688_v28  ;;  %v812_v28 = vld [vmem:[%s3586_s7 + $0x118] sm:$0xff] }
 0x1c4   :  { %1691 = vmatprep.subr.bf16.mxu1 %v1690_v31  ;;  %v1700_v31 = vpack.c.bf16 %v812_v28, %v805_v27  ;;  %v952_v27 = vld [vmem:[%s3586_s7 + $0x578] sm:$0xff] }
 0x1c5   :  { %v960_v28 = vld [vmem:[%s3586_s7 + $0x5b8] sm:$0xff] }
 0x279   :  { %v1392_v10 = vpop.f32.mrb[0].mxu1 }
 0x27a   :  { %v1393_v14 = vpop.f32.mrb[1].mxu1 }
 0x27b   :  { %v1394_v17 = vadd.f32 %v1393_v14, %v1392_v10  ;;  %v918_v10 = vld [vmem:[%s3586_s7 + $0x468] sm:$0xff]  ;;  %v917_v14 = vld [vmem:[%s3586_s7 + $0x460] sm:$0xff] }
 0x27d   :  { %v656_v19 = vadd.f32 %v1394_v17, %v1359_v13  ;;  %v1730_v13 = vpack.c.bf16 %v925_v11, %v918_v10  ;;  %v939_v17 = vld [vmem:[%s3586_s7 + $0x510] sm:$0xff]  ;;  %v1756_v10 = vpack.c.bf16 %v786_v5, %v779_v4 }
 0x27f   :  { %659 = vst [vmem:[#allocation2] sm:$0xff] %v656_v19  ;;  %769 = vmatmul.mubr.f32.vlgmr.msra.gmra.mrb[2].mxu1 %v656_v19  ;;  %v1734_v19 = vpack.c.bf16 %v939_v17, %v932_v16  ;;  %v815_v16 = vld [vmem:[%s3586_s7 + $0x130] sm:$0xff] }
 0x280   :  { %1693 = vmatpush1.bf16.msra.mxu1 %v1692_v18  ;;  %v1732_v18 = vpack.c.bf16 %v924_v15, %v917_v14  ;;  %v800_v14 = vld [vmem:[%s3586_s7 + $0xb8] sm:$0xff] }
 0x281   :  { %1695 = vmatprep.subr.bf16.mxu1 %v1694_v20  ;;  %v931_v20 = vld [vmem:[%s3586_s7 + $0x4d0] sm:$0xff]  ;;  %v808_v15 = vld [vmem:[%s3586_s7 + $0xf8] sm:$0xff] }
 0x282   :  { %v1736_v24 = vpack.c.bf16 %v938_v21, %v931_v20  ;;  %v814_v20 = vld [vmem:[%s3586_s7 + $0x128] sm:$0xff] }
 0x283   :  { %v822_v21 = vld [vmem:[%s3586_s7 + $0x168] sm:$0xff] }
 0x284   :  { %1697 = vmatpush1.bf16.msra.mxu1 %v1696_v25  ;;  %v1738_v25 = vpack.c.bf16 %v953_v23, %v946_v22  ;;  %v829_v22 = vld [vmem:[%s3586_s7 + $0x1a0] sm:$0xff] }
 0x285   :  { %1699 = vmatprep.subr.bf16.mxu1 %v1698_v26  ;;  %v945_v26 = vld [vmem:[%s3586_s7 + $0x540] sm:$0xff] }
 0x286   :  { %v1740_v30 = vpack.c.bf16 %v952_v27, %v945_v26  ;;  %v828_v26 = vld [vmem:[%s3586_s7 + $0x198] sm:$0xff] }
 0x287   :  { %v836_v27 = vld [vmem:[%s3586_s7 + $0x1d8] sm:$0xff] }
 0x288   :  { %1701 = vmatpush1.bf16.msra.mxu1 %v1700_v31  ;;  %v1742_v31 = vpack.c.bf16 %v967_v29, %v960_v28  ;;  %v843_v28 = vld [vmem:[%s3586_s7 + $0x210] sm:$0xff] }
 0x289   :  { %1703 = vmatprep.subr.bf16.mxu1 %v1702_v32  ;;  %v959_v32 = vld [vmem:[%s3586_s7 + $0x5b0] sm:$0xff] }
 0x28a   :  { %v1744_v38 = vpack.c.bf16 %v966_v33, %v959_v32  ;;  %v842_v32 = vld [vmem:[%s3586_s7 + $0x208] sm:$0xff] }
 0x28b   :  { %v850_v33 = vld [vmem:[%s3586_s7 + $0x248] sm:$0xff] }
 0x28c   :  { %1705 = vmatpush1.bf16.msra.mxu1 %v1704_v40  ;;  %v1746_v40 = vpack.c.bf16 %v981_v35, %v974_v34  ;;  %v857_v34 = vld [vmem:[%s3586_s7 + $0x280] sm:$0xff] }
 0x28d   :  { %1707 = vmatprep.subr.bf16.mxu1 %v1706_v41  ;;  %v973_v41 = vld [vmem:[%s3586_s7 + $0x620] sm:$0xff] }
 0x28e   :  { %v1748_v43 = vpack.c.bf16 %v980_v42, %v973_v41  ;;  %v856_v41 = vld [vmem:[%s3586_s7 + $0x278] sm:$0xff] }
 0x28f   :  { %v864_v42 = vld [vmem:[%s3586_s7 + $0x2b8] sm:$0xff] }
 0x290   :  { %1709 = vmatpush1.bf16.msra.mxu1 %v1708_v46  ;;  %v1908_v46 = vpack.c.bf16 %v874_v45, %v867_v44 }
 0x291   :  { %1711 = vmatprep.subr.bf16.mxu1 %v1710_v47  ;;  %v988_v47 = vld [vmem:[%s3586_s7 + $0x698] sm:$0xff] }
 0x292   :  { %1909 = vmatpush3.bf16.msra.mxu0 %v1908_v46  ;;  %v1750_v49 = vpack.c.bf16 %v995_v48, %v988_v47  ;;  %v863_v46 = vld [vmem:[%s3586_s7 + $0x2b0] sm:$0xff]  ;;  %v870_v47 = vld [vmem:[%s3586_s7 + $0x2e8] sm:$0xff] }
 0x293   :  { %v878_v48 = vld [vmem:[%s3586_s7 + $0x328] sm:$0xff] }
 0x294   :  { %1713 = vmatpush1.bf16.msra.mxu1 %v1712_v52  ;;  %v993_v52 = vld [vmem:[%s3586_s7 + $0x6c0] sm:$0xff] }
 0x295   :  { %1715 = vmatprep.subr.bf16.mxu1 %v1714_v53  ;;  %v1752_v53 = vpack.c.bf16 %v994_v51, %v987_v50  ;;  %v1910_v57 = vpack.c.bf16 %v1000_v54, %v993_v52  ;;  %v1780_v50 = vpack.c.bf16 %v870_v47, %v863_v46  ;;  %v877_v52 = vld [vmem:[%s3586_s7 + $0x320] sm:$0xff]  ;;  %v892_v54 = vld [vmem:[%s3586_s7 + $0x398] sm:$0xff] }
 0x296   :  { %v781_v47 = vld [vmem:[%s3586_s7 + $0x20] sm:$0xff] }
 0x297   :  { %1911 = vmatprep.subr.bf16.mxu0 %v1910_v57 }
 0x298   :  { %1717 = vmatpush1.bf16.msra.mxu1 %v1716_v58  ;;  %v1912_v58 = vpack.c.bf16 %v888_v56, %v881_v55  ;;  %v899_v55 = vld [vmem:[%s3586_s7 + $0x3d0] sm:$0xff] }
 0x299   :  { %1719 = vmatprep.subr.bf16.mxu1 %v1718_v59  ;;  %v780_v59 = vld [vmem:[%s3586_s7 + $0x18] sm:$0xff]  ;;  %v1786_v57 = vpack.c.bf16 %v899_v55, %v892_v54  ;;  %v802_v54 = vld [vmem:[%s3586_s7 + $0xc8] sm:$0xff] }
 0x29a   :  { %v1754_v61 = vpack.c.bf16 %v787_v60, %v780_v59  ;;  %1913 = vmatpush3.bf16.msra.mxu0 %v1912_v58  ;;  %v891_v58 = vld [vmem:[%s3586_s7 + $0x390] sm:$0xff]  ;;  %v898_v59 = vld [vmem:[%s3586_s7 + $0x3c8] sm:$0xff] }
 0x29b   :  { %v906_v60 = vld [vmem:[%s3586_s7 + $0x408] sm:$0xff] }
 0x29c   :  { %1721 = vmatpush1.bf16.msra.mxu1 %v1720_v0  ;;  %v701_v0 = vrot.slane %v692_v62, %v2758_v39  ;;  %v1788_v62 = vpack.c.bf16 %v898_v59, %v891_v58  ;;  %v810_v55 = vld [vmem:[%s3586_s7 + $0x108] sm:$0xff]  ;;  %v809_v59 = vld [vmem:[%s3586_s7 + $0x100] sm:$0xff] }
 0x29d   :  { %1723 = vmatprep.subr.bf16.mxu1 %v1722_v1 }
 0x2a0   :  { %1725 = vmatpush1.bf16.msra.mxu1 %v1724_v6 }
 0x2a1   :  { %1727 = vmatprep.subr.bf16.mxu1 %v1726_v7  ;;  %v794_v7 = vld [vmem:[%s3586_s7 + $0x88] sm:$0xff] }
 0x2a4   :  { %1729 = vmatpush1.bf16.msra.mxu1 %v1728_v12  ;;  %v1758_v12 = vpack.c.bf16 %v801_v8, %v794_v7  ;;  %v926_v7 = vld [vmem:[%s3586_s7 + $0x4a8] sm:$0xff] }
 0x2a5   :  { %1731 = vmatprep.subr.bf16.mxu1 %v1730_v13  ;;  %v793_v13 = vld [vmem:[%s3586_s7 + $0x80] sm:$0xff]  ;;  %v934_v8 = vld [vmem:[%s3586_s7 + $0x4e8] sm:$0xff] }
 0x2a6   :  { %v1760_v17 = vpack.c.bf16 %v800_v14, %v793_v13  ;;  %v933_v14 = vld [vmem:[%s3586_s7 + $0x4e0] sm:$0xff] }
 0x2a8   :  { %1733 = vmatpush1.bf16.msra.mxu1 %v1732_v18  ;;  %v1762_v18 = vpack.c.bf16 %v815_v16, %v808_v15  ;;  %v940_v15 = vld [vmem:[%s3586_s7 + $0x518] sm:$0xff] }
 0x2a9   :  { %1735 = vmatprep.subr.bf16.mxu1 %v1734_v19  ;;  %v807_v19 = vld [vmem:[%s3586_s7 + $0xf0] sm:$0xff]  ;;  %v948_v16 = vld [vmem:[%s3586_s7 + $0x558] sm:$0xff] }
 0x2aa   :  { %v1764_v23 = vpack.c.bf16 %v814_v20, %v807_v19  ;;  %v947_v20 = vld [vmem:[%s3586_s7 + $0x550] sm:$0xff] }
 0x2ac   :  { %1737 = vmatpush1.bf16.msra.mxu1 %v1736_v24  ;;  %v1766_v24 = vpack.c.bf16 %v829_v22, %v822_v21  ;;  %v954_v21 = vld [vmem:[%s3586_s7 + $0x588] sm:$0xff] }
 0x2ad   :  { %1739 = vmatprep.subr.bf16.mxu1 %v1738_v25  ;;  %v821_v25 = vld [vmem:[%s3586_s7 + $0x160] sm:$0xff]  ;;  %v962_v22 = vld [vmem:[%s3586_s7 + $0x5c8] sm:$0xff] }
 0x2ae   :  { %v1768_v29 = vpack.c.bf16 %v828_v26, %v821_v25  ;;  %v961_v26 = vld [vmem:[%s3586_s7 + $0x5c0] sm:$0xff] }
 0x2b0   :  { %1741 = vmatpush1.bf16.msra.mxu1 %v1740_v30  ;;  %v1770_v30 = vpack.c.bf16 %v843_v28, %v836_v27  ;;  %v968_v27 = vld [vmem:[%s3586_s7 + $0x5f8] sm:$0xff] }
 0x2b1   :  { %1743 = vmatprep.subr.bf16.mxu1 %v1742_v31  ;;  %v835_v31 = vld [vmem:[%s3586_s7 + $0x1d0] sm:$0xff]  ;;  %v976_v28 = vld [vmem:[%s3586_s7 + $0x638] sm:$0xff] }
 0x2b2   :  { %v1772_v35 = vpack.c.bf16 %v842_v32, %v835_v31  ;;  %v975_v32 = vld [vmem:[%s3586_s7 + $0x630] sm:$0xff] }
 0x2b4   :  { %1745 = vmatpush1.bf16.msra.mxu1 %v1744_v38  ;;  %v1774_v38 = vpack.c.bf16 %v857_v34, %v850_v33  ;;  %v982_v33 = vld [vmem:[%s3586_s7 + $0x668] sm:$0xff] }
 0x2b5   :  { %1747 = vmatprep.subr.bf16.mxu1 %v1746_v40  ;;  %v849_v40 = vld [vmem:[%s3586_s7 + $0x240] sm:$0xff]  ;;  %v990_v34 = vld [vmem:[%s3586_s7 + $0x6a8] sm:$0xff] }
 0x2b6   :  { %v1776_v44 = vpack.c.bf16 %v856_v41, %v849_v40  ;;  %v989_v41 = vld [vmem:[%s3586_s7 + $0x6a0] sm:$0xff] }
 0x2b8   :  { %1749 = vmatpush1.bf16.msra.mxu1 %v1748_v43  ;;  %v871_v43 = vld [vmem:[%s3586_s7 + $0x2f0] sm:$0xff] }
 0x2b9   :  { %1751 = vmatprep.subr.bf16.mxu1 %v1750_v49  ;;  %v1778_v45 = vpack.c.bf16 %v871_v43, %v864_v42  ;;  %v885_v49 = vld [vmem:[%s3586_s7 + $0x360] sm:$0xff]  ;;  %v996_v42 = vld [vmem:[%s3586_s7 + $0x6d8] sm:$0xff]  ;;  %v782_v43 = vld [vmem:[%s3586_s7 + $0x28] sm:$0xff] }
 0x2ba   :  { %v1782_v51 = vpack.c.bf16 %v885_v49, %v878_v48  ;;  %v788_v48 = vld [vmem:[%s3586_s7 + $0x58] sm:$0xff] }
 0x2bb   :  { %v796_v49 = vld [vmem:[%s3586_s7 + $0x98] sm:$0xff] }
 0x2bc   :  { %1753 = vmatpush1.bf16.msra.mxu1 %v1752_v53  ;;  %v884_v53 = vld [vmem:[%s3586_s7 + $0x358] sm:$0xff] }
 0x2bd   :  { %1755 = vmatprep.subr.bf16.mxu1 %v1754_v61  ;;  %v1784_v56 = vpack.c.bf16 %v884_v53, %v877_v52  ;;  %v913_v61 = vld [vmem:[%s3586_s7 + $0x440] sm:$0xff]  ;;  %v795_v53 = vld [vmem:[%s3586_s7 + $0x90] sm:$0xff] }
 0x352   :  { %v770_v1 = vpop.f32.mrb[2].mxu1 }
 0x353   :  { %v771_v2 = vadd.f32 %v770_v1, %v697_v63  ;;  %v772_v3 = vpop.f32.mrb[3].mxu1  ;;  %v1790_v63 = vpack.c.bf16 %v913_v61, %v906_v60  ;;  %v912_v1 = vld [vmem:[%s3586_s7 + $0x438] sm:$0xff] }
 0x354   :  { %v773_v6 = vadd.f32 %v772_v3, %v701_v0  ;;  %v905_v0 = vld [vmem:[%s3586_s7 + $0x400] sm:$0xff]  ;;  %v927_v3 = vld [vmem:[%s3586_s7 + $0x4b0] sm:$0xff]  ;;  %v816_v60 = vld [vmem:[%s3586_s7 + $0x138] sm:$0xff] }
 0x355   :  { %v3168_v11 = vmax.f32 %v771_v2, 0.0  ;;  %v920_v2 = vld [vmem:[%s3586_s7 + $0x478] sm:$0xff]  ;;  %v1792_v4 = vpack.c.bf16 %v912_v1, %v905_v0  ;;  %v823_v0 = vld [vmem:[%s3586_s7 + $0x170] sm:$0xff]  ;;  %v830_v1 = vld [vmem:[%s3586_s7 + $0x1a8] sm:$0xff] }
 0x356   :  { %v3166_v9 = vmax.f32 %v773_v6, 0.0  ;;  %v1794_v5 = vpack.c.bf16 %v927_v3, %v920_v2  ;;  %v919_v6 = vld [vmem:[%s3586_s7 + $0x470] sm:$0xff]  ;;  %v824_v61 = vld [vmem:[%s3586_s7 + $0x178] sm:$0xff]  ;;  %v838_v2 = vld [vmem:[%s3586_s7 + $0x1e8] sm:$0xff] }
 0x357   :  { %v845_v3 = vld [vmem:[%s3586_s7 + $0x220] sm:$0xff] }
 0x358   :  { %1102 = vmatprep.mubr.f32.mxu1 %v3166_v9  ;;  %1315 = vmatprep.mubr.f32.mxu0 %v3166_v9 }
 0x359   :  { %1103 = vmatmul.mubr.f32.vlgmr.msra.gmra.mrb[4].mxu1 %v3168_v11  ;;  %1316 = vmatmul.mubr.f32.vlgmr.msra.gmra.mrb[2].mxu0 %v3168_v11 }
 0x35a   :  { %1757 = vmatpush1.bf16.msra.mxu1 %v1756_v10  ;;  %1173 = vmatprep.mubr.f32.mxu1 %v3166_v9  ;;  %v941_v10 = vld [vmem:[%s3586_s7 + $0x520] sm:$0xff] }
 0x35b   :  { %1759 = vmatprep.subr.bf16.mxu1 %v1758_v12  ;;  %v1796_v12 = vpack.c.bf16 %v926_v7, %v919_v6  ;;  %v1798_v13 = vpack.c.bf16 %v941_v10, %v934_v8  ;;  %v837_v6 = vld [vmem:[%s3586_s7 + $0x1e0] sm:$0xff]  ;;  %v844_v7 = vld [vmem:[%s3586_s7 + $0x218] sm:$0xff]  ;;  %v859_v10 = vld [vmem:[%s3586_s7 + $0x290] sm:$0xff] }
 0x35c   :  { %v852_v8 = vld [vmem:[%s3586_s7 + $0x258] sm:$0xff] }
 0x35e   :  { %1761 = vmatpush1.bf16.msra.mxu1 %v1760_v17  ;;  %v955_v17 = vld [vmem:[%s3586_s7 + $0x590] sm:$0xff] }
 0x35f   :  { %1763 = vmatprep.subr.bf16.mxu1 %v1762_v18  ;;  %v1800_v18 = vpack.c.bf16 %v940_v15, %v933_v14  ;;  %v1802_v19 = vpack.c.bf16 %v955_v17, %v948_v16  ;;  %v851_v14 = vld [vmem:[%s3586_s7 + $0x250] sm:$0xff]  ;;  %v858_v15 = vld [vmem:[%s3586_s7 + $0x288] sm:$0xff]  ;;  %v873_v17 = vld [vmem:[%s3586_s7 + $0x300] sm:$0xff] }
 0x360   :  { %v866_v16 = vld [vmem:[%s3586_s7 + $0x2c8] sm:$0xff] }
 0x362   :  { %1765 = vmatpush1.bf16.msra.mxu1 %v1764_v23  ;;  %v969_v23 = vld [vmem:[%s3586_s7 + $0x600] sm:$0xff] }
 0x363   :  { %1767 = vmatprep.subr.bf16.mxu1 %v1766_v24  ;;  %v1804_v24 = vpack.c.bf16 %v954_v21, %v947_v20  ;;  %v1806_v25 = vpack.c.bf16 %v969_v23, %v962_v22  ;;  %v865_v20 = vld [vmem:[%s3586_s7 + $0x2c0] sm:$0xff]  ;;  %v872_v21 = vld [vmem:[%s3586_s7 + $0x2f8] sm:$0xff]  ;;  %v887_v23 = vld [vmem:[%s3586_s7 + $0x370] sm:$0xff] }
 0x364   :  { %v880_v22 = vld [vmem:[%s3586_s7 + $0x338] sm:$0xff] }
 0x366   :  { %1769 = vmatpush1.bf16.msra.mxu1 %v1768_v29  ;;  %v983_v29 = vld [vmem:[%s3586_s7 + $0x670] sm:$0xff] }
 0x367   :  { %1771 = vmatprep.subr.bf16.mxu1 %v1770_v30  ;;  %v1808_v30 = vpack.c.bf16 %v968_v27, %v961_v26  ;;  %v1810_v31 = vpack.c.bf16 %v983_v29, %v976_v28  ;;  %v879_v26 = vld [vmem:[%s3586_s7 + $0x330] sm:$0xff]  ;;  %v886_v27 = vld [vmem:[%s3586_s7 + $0x368] sm:$0xff]  ;;  %v901_v29 = vld [vmem:[%s3586_s7 + $0x3e0] sm:$0xff] }
 0x368   :  { %v894_v28 = vld [vmem:[%s3586_s7 + $0x3a8] sm:$0xff] }
 0x36a   :  { %1773 = vmatpush1.bf16.msra.mxu1 %v1772_v35  ;;  %v997_v35 = vld [vmem:[%s3586_s7 + $0x6e0] sm:$0xff] }
 0x36b   :  { %1775 = vmatprep.subr.bf16.mxu1 %v1774_v38  ;;  %v1812_v38 = vpack.c.bf16 %v982_v33, %v975_v32  ;;  %v1814_v40 = vpack.c.bf16 %v997_v35, %v990_v34  ;;  %v893_v32 = vld [vmem:[%s3586_s7 + $0x3a0] sm:$0xff]  ;;  %v900_v33 = vld [vmem:[%s3586_s7 + $0x3d8] sm:$0xff]  ;;  %v915_v35 = vld [vmem:[%s3586_s7 + $0x450] sm:$0xff] }
 0x36c   :  { %v908_v34 = vld [vmem:[%s3586_s7 + $0x418] sm:$0xff] }
 0x36e   :  { %1777 = vmatpush1.bf16.msra.mxu1 %v1776_v44  ;;  %v789_v44 = vld [vmem:[%s3586_s7 + $0x60] sm:$0xff] }
 0x36f   :  { %1779 = vmatprep.subr.bf16.mxu1 %v1778_v45  ;;  %v1816_v45 = vpack.c.bf16 %v996_v42, %v989_v41  ;;  %v1818_v46 = vpack.c.bf16 %v789_v44, %v782_v43  ;;  %v907_v41 = vld [vmem:[%s3586_s7 + $0x410] sm:$0xff]  ;;  %v914_v42 = vld [vmem:[%s3586_s7 + $0x448] sm:$0xff]  ;;  %v929_v44 = vld [vmem:[%s3586_s7 + $0x4c0] sm:$0xff] }
 0x370   :  { %v922_v43 = vld [vmem:[%s3586_s7 + $0x488] sm:$0xff] }
 0x372   :  { %1781 = vmatpush1.bf16.msra.mxu1 %v1780_v50  ;;  %v803_v50 = vld [vmem:[%s3586_s7 + $0xd0] sm:$0xff] }
 0x373   :  { %1783 = vmatprep.subr.bf16.mxu1 %v1782_v51  ;;  %v1820_v51 = vpack.c.bf16 %v788_v48, %v781_v47  ;;  %v1822_v52 = vpack.c.bf16 %v803_v50, %v796_v49  ;;  %v921_v47 = vld [vmem:[%s3586_s7 + $0x480] sm:$0xff]  ;;  %v928_v48 = vld [vmem:[%s3586_s7 + $0x4b8] sm:$0xff]  ;;  %v943_v50 = vld [vmem:[%s3586_s7 + $0x530] sm:$0xff] }
 0x374   :  { %v936_v49 = vld [vmem:[%s3586_s7 + $0x4f8] sm:$0xff] }
 0x376   :  { %1785 = vmatpush1.bf16.msra.mxu1 %v1784_v56  ;;  %v817_v56 = vld [vmem:[%s3586_s7 + $0x140] sm:$0xff] }
 0x377   :  { %1787 = vmatprep.subr.bf16.mxu1 %v1786_v57  ;;  %v1824_v57 = vpack.c.bf16 %v802_v54, %v795_v53  ;;  %v1826_v58 = vpack.c.bf16 %v817_v56, %v810_v55  ;;  %v935_v53 = vld [vmem:[%s3586_s7 + $0x4f0] sm:$0xff]  ;;  %v942_v54 = vld [vmem:[%s3586_s7 + $0x528] sm:$0xff]  ;;  %v957_v56 = vld [vmem:[%s3586_s7 + $0x5a0] sm:$0xff] }
 0x378   :  { %v950_v55 = vld [vmem:[%s3586_s7 + $0x568] sm:$0xff] }
 0x37a   :  { %1789 = vmatpush1.bf16.msra.mxu1 %v1788_v62  ;;  %v831_v62 = vld [vmem:[%s3586_s7 + $0x1b0] sm:$0xff] }
 0x37b   :  { %1791 = vmatprep.subr.bf16.mxu1 %v1790_v63  ;;  %v1830_v63 = vpack.c.bf16 %v831_v62, %v824_v61  ;;  %v964_v61 = vld [vmem:[%s3586_s7 + $0x5d8] sm:$0xff]  ;;  %v971_v62 = vld [vmem:[%s3586_s7 + $0x610] sm:$0xff] }
 0x37e   :  { %1793 = vmatpush1.bf16.msra.mxu1 %v1792_v4  ;;  %v1832_v4 = vpack.c.bf16 %v830_v1, %v823_v0  ;;  %v963_v0 = vld [vmem:[%s3586_s7 + $0x5d0] sm:$0xff]  ;;  %v970_v1 = vld [vmem:[%s3586_s7 + $0x608] sm:$0xff] }
 0x37f   :  { %1795 = vmatprep.subr.bf16.mxu1 %v1794_v5  ;;  %v1834_v5 = vpack.c.bf16 %v845_v3, %v838_v2  ;;  %v978_v2 = vld [vmem:[%s3586_s7 + $0x648] sm:$0xff]  ;;  %v985_v3 = vld [vmem:[%s3586_s7 + $0x680] sm:$0xff] }
 0x382   :  { %1797 = vmatpush1.bf16.msra.mxu1 %v1796_v12  ;;  %v1836_v12 = vpack.c.bf16 %v844_v7, %v837_v6  ;;  %v977_v6 = vld [vmem:[%s3586_s7 + $0x640] sm:$0xff]  ;;  %v984_v7 = vld [vmem:[%s3586_s7 + $0x678] sm:$0xff] }
 0x383   :  { %1799 = vmatprep.subr.bf16.mxu1 %v1798_v13  ;;  %v1838_v13 = vpack.c.bf16 %v859_v10, %v852_v8  ;;  %v992_v8 = vld [vmem:[%s3586_s7 + $0x6b8] sm:$0xff]  ;;  %v999_v10 = vld [vmem:[%s3586_s7 + $0x6f0] sm:$0xff] }
 0x386   :  { %1801 = vmatpush1.bf16.msra.mxu1 %v1800_v18  ;;  %v1840_v18 = vpack.c.bf16 %v858_v15, %v851_v14  ;;  %v991_v14 = vld [vmem:[%s3586_s7 + $0x6b0] sm:$0xff]  ;;  %v998_v15 = vld [vmem:[%s3586_s7 + $0x6e8] sm:$0xff] }
 0x387   :  { %1803 = vmatprep.subr.bf16.mxu1 %v1802_v19  ;;  %v1842_v19 = vpack.c.bf16 %v873_v17, %v866_v16  ;;  %v1880_v16 = vpack.c.bf16 %v998_v15, %v991_v14  ;;  %v1001_v17 = vld [vmem:[%s3587_s8] sm:$0x7f] }
 0x38a   :  { %1805 = vmatpush1.bf16.msra.mxu1 %v1804_v24  ;;  %v1844_v24 = vpack.c.bf16 %v872_v21, %v865_v20  ;;  %v1010_v20 = vrot.slane %v1001_v17, %v2758_v39 }
 0x38b   :  { %1807 = vmatprep.subr.bf16.mxu1 %v1806_v25  ;;  %v1846_v25 = vpack.c.bf16 %v887_v23, %v880_v22 }
 0x38e   :  { %1809 = vmatpush1.bf16.msra.mxu1 %v1808_v30  ;;  %v1848_v30 = vpack.c.bf16 %v886_v27, %v879_v26 }
 0x38f   :  { %1811 = vmatprep.subr.bf16.mxu1 %v1810_v31  ;;  %v1850_v31 = vpack.c.bf16 %v901_v29, %v894_v28 }
 0x392   :  { %1813 = vmatpush1.bf16.msra.mxu1 %v1812_v38  ;;  %v1852_v38 = vpack.c.bf16 %v900_v33, %v893_v32 }
 0x393   :  { %1815 = vmatprep.subr.bf16.mxu1 %v1814_v40  ;;  %v1854_v40 = vpack.c.bf16 %v915_v35, %v908_v34 }
 0x396   :  { %1817 = vmatpush1.bf16.msra.mxu1 %v1816_v45  ;;  %v1856_v45 = vpack.c.bf16 %v914_v42, %v907_v41 }
 0x397   :  { %1819 = vmatprep.subr.bf16.mxu1 %v1818_v46  ;;  %v1858_v46 = vpack.c.bf16 %v929_v44, %v922_v43 }
 0x399   :  { %1174 = vmatmul.mubr.f32.vlgmr.msra.gmra.mrb[6].mxu1 %v3168_v11 }
 0x39a   :  { %1821 = vmatpush1.bf16.msra.mxu1 %v1820_v51  ;;  %1244 = vmatprep.mubr.f32.mxu1 %v3166_v9  ;;  %v1828_v9 = vpack.c.bf16 %v816_v60, %v809_v59  ;;  %v1860_v51 = vpack.c.bf16 %v928_v48, %v921_v47  ;;  %v949_v59 = vld [vmem:[%s3586_s7 + $0x560] sm:$0xff]  ;;  %v956_v60 = vld [vmem:[%s3586_s7 + $0x598] sm:$0xff]  ;;  %s1974_s7 = smov [#allocation2]  }
 0x39b   :  { %1823 = vmatprep.subr.bf16.mxu1 %v1822_v52  ;;  %v1862_v52 = vpack.c.bf16 %v943_v50, %v936_v49  ;;  %s1334_s23 = sshll.u32 %s1974_s7, 4  ;;  %s1335_s23 = int_to_ptr.vmem [resolvable:$true] %s1334_s23 }
 0x39c   :  { %s1925_s8 = scalar_lea.vmem %s1335_s23, 128  ;;  %p1930_p1 = scmp.lt.s32.totalorder %s1335_s23, %s1335_s23 }
 0x39d   :  { %p1926_p0 = scmp.ne.s32.totalorder %s1335_s23, %s1925_s8  ;;  %p1931_p2 = scmp.lt.s32.totalorder %s1925_s8, %s1925_s8 }
 0x39e   :  { %1825 = vmatpush1.bf16.msra.mxu1 %v1824_v57  ;;  %v1864_v57 = vpack.c.bf16 %v942_v54, %v935_v53 }
 0x39f   :  { %1827 = vmatprep.subr.bf16.mxu1 %v1826_v58  ;;  %v1866_v58 = vpack.c.bf16 %v957_v56, %v950_v55  ;;  %p1932_p3 = por %p1931_p2, %p1930_p1 }
 0x3a1   :  { %p1933_p4 = pnand %p1932_p3, %p1926_p0 }
 0x3a2   :  { %1829 = vmatpush1.bf16.msra.mxu1 %v1828_v9  ;;  %v1868_v9 = vpack.c.bf16 %v956_v60, %v949_v59 }
 0x3a3   :  { %1831 = vmatprep.subr.bf16.mxu1 %v1830_v63  ;;  %v1870_v63 = vpack.c.bf16 %v971_v62, %v964_v61 }
 0x3a6   :  { %1833 = vmatpush1.bf16.msra.mxu1 %v1832_v4  ;;  %v1872_v4 = vpack.c.bf16 %v970_v1, %v963_v0 }
 0x3a7   :  { %1835 = vmatprep.subr.bf16.mxu1 %v1834_v5  ;;  %v1874_v5 = vpack.c.bf16 %v985_v3, %v978_v2 }
 0x3aa   :  { %1837 = vmatpush1.bf16.msra.mxu1 %v1836_v12  ;;  %v1876_v12 = vpack.c.bf16 %v984_v7, %v977_v6 }
 0x3ab   :  { %1839 = vmatprep.subr.bf16.mxu1 %v1838_v13  ;;  %v1878_v13 = vpack.c.bf16 %v999_v10, %v992_v8 }
 0x3ae   :  { %1841 = vmatpush1.bf16.msra.mxu1 %v1840_v18  ;;  %v1029_v18 = vsub.s32 6, %v2749_v36 }
 0x3af   :  { %1843 = vmatprep.subr.bf16.mxu1 %v1842_v19  ;;  %v1006_v19 = vrot.slane %v1001_v17, %v2752_v37 }
 0x3b0   :  { %v1030_v23 = vrot.slane %v1001_v17, %v1029_v18 }
 0x3b2   :  { %1845 = vmatpush1.bf16.msra.mxu1 %v1844_v24 }
 0x3b3   :  { %1847 = vmatprep.subr.bf16.mxu1 %v1846_v25 }
 0x3b6   :  { %1849 = vmatpush1.bf16.msra.mxu1 %v1848_v30 }
 0x3b7   :  { %1851 = vmatprep.subr.bf16.mxu1 %v1850_v31 }
 0x3ba   :  { %1853 = vmatpush1.bf16.msra.mxu1 %v1852_v38 }
 0x3bb   :  { %1855 = vmatprep.subr.bf16.mxu1 %v1854_v40 }
 0x3be   :  { %1857 = vmatpush1.bf16.msra.mxu1 %v1856_v45 }
 0x3bf   :  { %1859 = vmatprep.subr.bf16.mxu1 %v1858_v46 }
 0x3c2   :  { %1861 = vmatpush1.bf16.msra.mxu1 %v1860_v51 }
 0x3c3   :  { %1863 = vmatprep.subr.bf16.mxu1 %v1862_v52 }
 0x3c6   :  { %1865 = vmatpush1.bf16.msra.mxu1 %v1864_v57 }
 0x3c7   :  { %1867 = vmatprep.subr.bf16.mxu1 %v1866_v58 }
 0x3ca   :  { %1869 = vmatpush1.bf16.msra.mxu1 %v1868_v9 }
 0x3cb   :  { %1871 = vmatprep.subr.bf16.mxu1 %v1870_v63 }
 0x3ce   :  { %1873 = vmatpush1.bf16.msra.mxu1 %v1872_v4 }
 0x3cf   :  { %1875 = vmatprep.subr.bf16.mxu1 %v1874_v5 }
 0x3d2   :  { %1877 = vmatpush1.bf16.msra.mxu1 %v1876_v12 }
 0x3d3   :  { %1879 = vmatprep.subr.bf16.mxu1 %v1878_v13 }
 0x3d6   :  { %1881 = vmatpush1.bf16.msra.mxu1 %v1880_v16 }
 0x3d9   :  { %1245 = vmatmul.mubr.f32.vlgmr.msra.gmra.mrb[8].mxu1 %v3168_v11 }
 0x42c   :  { %v1104_v21 = vpop.f32.mrb[4].mxu1  ;;  %v1427_v22 = vpop.f32.mrb[2].mxu0 }
 0x42d   :  { %v1105_v24 = vadd.f32 %v1104_v21, %v1006_v19  ;;  %v1106_v25 = vpop.f32.mrb[5].mxu1  ;;  %v1428_v26 = vpop.f32.mrb[3].mxu0 }
 0x42e   :  { %v1107_v27 = vadd.f32 %v1106_v25, %v1010_v20  ;;  %v1429_v28 = vadd.f32 %v1428_v26, %v1427_v22 }
 0x42f   :  { %1321 = vst [vmem:[#allocation4] sm:$0xff] %v1105_v24 }
 0x430   :  { %1322 = vst [vmem:[#allocation4 + $0x8] sm:$0xff] %v1107_v27  ;;  %v1318_v11 = vadd.f32 %v1429_v28, %v1030_v23 }
 0x431   :  { %1936 = shalt.err (!%p1933_p4)
}
 0x432   :  { %s1937_s26 = scalar_lea.hbm %s3588_s9, 128 }
 0x433   :  { %p1938_p5 = scmp.ne.s32.totalorder %s3588_s9, %s1937_s26  ;;  %p1941_p6 = scmp.lt.u32.totalorder %s1937_s26, %s3588_s9 }
 0x435   :  { %p1943_p7 = pnand %p1941_p6, %p1938_p5 }
 0x437   :  { %1946 = shalt.err (!%p1943_p7)
}
 0x438   :  { %1337 = dma.vmem_to_hbm [thread:$0]  %s1335_s23, 128, %s3588_s9, [#allocation3]   ;;  %1327 = vst.msk [vmem:[#allocation4 + $0x30] sm:$0xff] %vm253_vm1, %v1318_v11  ;;  %v1013_v37 = vsub.s32 2, %v2749_v36  ;;  %v1017_v39 = vsub.s32 3, %v2749_v36  ;;  %v1021_v35 = vsub.s32 4, %v2749_v36 }
 0x439   :  { %v1025_v38 = vsub.s32 5, %v2749_v36  ;;  %s1975_s9 = smov [#allocation4]  }
 0x43a   :  { %v1014_v29 = vrot.slane %v1001_v17, %v1013_v37  ;;  %v1018_v30 = vrot.slane %v1001_v17, %v1017_v39  ;;  %v1022_v40 = vrot.slane %v1001_v17, %v1021_v35  ;;  %s1344_s11 = sshll.u32 %s1975_s9, 4  ;;  %s1345_s11 = int_to_ptr.vmem [resolvable:$true] %s1344_s11 }
 0x43b   :  { %v1026_v41 = vrot.slane %v1001_v17, %v1025_v38  ;;  %s1947_s12 = scalar_lea.vmem %s1345_s11, 896  ;;  %p1952_p9 = scmp.lt.s32.totalorder %s1345_s11, %s1345_s11 }
 0x43c   :  { %p1948_p8 = scmp.ne.s32.totalorder %s1345_s11, %s1947_s12  ;;  %p1953_p10 = scmp.lt.s32.totalorder %s1947_s12, %s1947_s12 }
 0x43e   :  { %p1954_p11 = por %p1953_p10, %p1952_p9 }
 0x440   :  { %p1955_p12 = pnand %p1954_p11, %p1948_p8 }
 0x46c   :  { %v1175_v31 = vpop.f32.mrb[6].mxu1 }
 0x46d   :  { %v1176_v32 = vadd.f32 %v1175_v31, %v1014_v29  ;;  %v1177_v33 = vpop.f32.mrb[7].mxu1 }
 0x46e   :  { %v1178_v34 = vadd.f32 %v1177_v33, %v1018_v30 }
 0x46f   :  { %1323 = vst [vmem:[#allocation4 + $0x10] sm:$0xff] %v1176_v32 }
 0x470   :  { %1324 = vst [vmem:[#allocation4 + $0x18] sm:$0xff] %v1178_v34 }
 0x4ac   :  { %v1246_v42 = vpop.f32.mrb[8].mxu1 }
 0x4ad   :  { %v1247_v43 = vadd.f32 %v1246_v42, %v1022_v40  ;;  %v1248_v44 = vpop.f32.mrb[9].mxu1 }
 0x4ae   :  { %v1249_v45 = vadd.f32 %v1248_v44, %v1026_v41 }
 0x4af   :  { %1325 = vst [vmem:[#allocation4 + $0x20] sm:$0xff] %v1247_v43 }
 0x4b0   :  { %1326 = vst [vmem:[#allocation4 + $0x28] sm:$0xff] %v1249_v45 }
 0x4b1   :  { %1958 = shalt.err (!%p1955_p12)
}
 0x4b2   :  { %s1959_s14 = scalar_lea.hbm %s3589_s10, 896 }
 0x4b3   :  { %p1960_p13 = scmp.ne.s32.totalorder %s3589_s10, %s1959_s14  ;;  %p1963_p0 = scmp.lt.u32.totalorder %s1959_s14, %s3589_s10 }
 0x4b5   :  { %p1965_p1 = pnand %p1963_p0, %p1960_p13 }
 0x4b7   :  { %1968 = shalt.err (!%p1965_p1)
}
 0x4b8   :  { %1347 = dma.vmem_to_hbm [thread:$0]  %s1345_s11, 896, %s3589_s10, [#allocation5]  }
 0x4b9   :  { %1969 = dma.done.wait [#allocation3], 128  }
 0x4ba   :  { %1970 = vsyncadd [#allocation3], 4294967168 }
 0x4bb   :  { %1971 = dma.done.wait [#allocation5], 896  }
 0x4bc   :  { %1972 = vsyncadd [#allocation5], 4294966400 }
 0x4bd   :  { %1354 = vsyncpa [#allocation3], 1 }
 0x4be   :  { %1355 = vsyncpa [#allocation5], 1 }

// kernel: tpu_custom_call.1
= control target key start
LH: loop header
LB: loop body
LE: loop exit
PB: predicated region body
PF: predicated region fallthrough
CT: control target
= control target key end

     0   :  { %16 = vsyncpa [#allocation3], 0  ;;  %s3579_s0 = inlined_call_operand.vmem [shape: f32[8,786], index: 0, kind: input, shape index: {}]   ;;  %s3580_s1 = inlined_call_operand.vmem [shape: f32[786,256], index: 1, kind: input, shape index: {}]   ;;  %s3581_s2 = inlined_call_operand.vmem [shape: f32[1,256], index: 2, kind: input, shape index: {}]   ;;  %s3582_s3 = inlined_call_operand.vmem [shape: f32[256,128], index: 3, kind: input, shape index: {}]   ;;  %s3583_s4 = inlined_call_operand.vmem [shape: f32[1,128], index: 4, kind: input, shape index: {}]   ;;  %s3584_s5 = inlined_call_operand.vmem [shape: f32[128,256], index: 5, kind: input, shape index: {}]   ;;  %s3585_s6 = inlined_call_operand.vmem [shape: f32[1,256], index: 6, kind: input, shape index: {}]   ;;  %s3586_s7 = inlined_call_operand.vmem [shape: f32[256,786], index: 7, kind: input, shape index: {}]   ;;  %s3587_s8 = inlined_call_operand.vmem [shape: f32[1,786], index: 8, kind: input, shape index: {}]   ;;  %s3588_s9 = inlined_call_operand.hbm [shape: f32[8,128], index: 9, kind: output, shape index: {0}]   ;;  %s3589_s10 = inlined_call_operand.hbm [shape: f32[8,786], index: 10, kind: output, shape index: {1}]  }
   0x1   :  { %v44_v0 = vld [vmem:[%s3580_s1 + $0x8] sm:$0xff]  ;;  %v46_v1 = vld [vmem:[%s3580_s1 + $0x18] sm:$0xff]  ;;  %v43_v2 = vld [vmem:[%s3580_s1] sm:$0xff] }
   0x2   :  { %v1430_v3 = vpack.c.bf16 %v46_v1, %v44_v0  ;;  %v45_v4 = vld [vmem:[%s3580_s1 + $0x10] sm:$0xff]  ;;  %v48_v5 = vld [vmem:[%s3580_s1 + $0x28] sm:$0xff]  ;;  %v50_v6 = vld [vmem:[%s3580_s1 + $0x38] sm:$0xff] }
   0x3   :  { %v1432_v7 = vpack.c.bf16 %v45_v4, %v43_v2  ;;  %v1434_v8 = vpack.c.bf16 %v50_v6, %v48_v5  ;;  %v47_v9 = vld [vmem:[%s3580_s1 + $0x20] sm:$0xff]  ;;  %v49_v10 = vld [vmem:[%s3580_s1 + $0x30] sm:$0xff]  ;;  %v52_v11 = vld [vmem:[%s3580_s1 + $0x48] sm:$0xff] }
   0x4   :  { %1431 = vmatprep.subr.bf16.mxu0 %v1430_v3  ;;  %v54_v12 = vld [vmem:[%s3580_s1 + $0x58] sm:$0xff]  ;;  %v1436_v13 = vpack.c.bf16 %v49_v10, %v47_v9  ;;  %v51_v15 = vld [vmem:[%s3580_s1 + $0x40] sm:$0xff]  ;;  %v53_v16 = vld [vmem:[%s3580_s1 + $0x50] sm:$0xff] }
   0x5   :  { %1433 = vmatpush1.bf16.msra.mxu0 %v1432_v7  ;;  %v1438_v14 = vpack.c.bf16 %v54_v12, %v52_v11  ;;  %v56_v17 = vld [vmem:[%s3580_s1 + $0x68] sm:$0xff]  ;;  %v58_v18 = vld [vmem:[%s3580_s1 + $0x78] sm:$0xff]  ;;  %v1440_v19 = vpack.c.bf16 %v53_v16, %v51_v15  ;;  %v55_v21 = vld [vmem:[%s3580_s1 + $0x60] sm:$0xff] }
   0x6   :  { %1435 = vmatprep.subr.bf16.mxu0 %v1434_v8  ;;  %v1442_v20 = vpack.c.bf16 %v58_v18, %v56_v17  ;;  %v57_v22 = vld [vmem:[%s3580_s1 + $0x70] sm:$0xff]  ;;  %v60_v23 = vld [vmem:[%s3580_s1 + $0x88] sm:$0xff]  ;;  %v62_v24 = vld [vmem:[%s3580_s1 + $0x98] sm:$0xff] }
   0x7   :  { %v1444_v25 = vpack.c.bf16 %v57_v22, %v55_v21  ;;  %v1446_v26 = vpack.c.bf16 %v62_v24, %v60_v23  ;;  %v59_v27 = vld [vmem:[%s3580_s1 + $0x80] sm:$0xff]  ;;  %v61_v28 = vld [vmem:[%s3580_s1 + $0x90] sm:$0xff]  ;;  %v64_v29 = vld [vmem:[%s3580_s1 + $0xa8] sm:$0xff] }
   0x8   :  { %v66_v30 = vld [vmem:[%s3580_s1 + $0xb8] sm:$0xff]  ;;  %v1448_v31 = vpack.c.bf16 %v61_v28, %v59_v27  ;;  %v63_v33 = vld [vmem:[%s3580_s1 + $0xa0] sm:$0xff]  ;;  %v65_v34 = vld [vmem:[%s3580_s1 + $0xb0] sm:$0xff] }
   0x9   :  { %1437 = vmatpush1.bf16.msra.mxu0 %v1436_v13  ;;  %v1450_v32 = vpack.c.bf16 %v66_v30, %v64_v29  ;;  %v68_v35 = vld [vmem:[%s3580_s1 + $0xc8] sm:$0xff]  ;;  %v70_v36 = vld [vmem:[%s3580_s1 + $0xd8] sm:$0xff]  ;;  %v1452_v37 = vpack.c.bf16 %v65_v34, %v63_v33  ;;  %v67_v39 = vld [vmem:[%s3580_s1 + $0xc0] sm:$0xff] }
   0xa   :  { %1439 = vmatprep.subr.bf16.mxu0 %v1438_v14  ;;  %v1454_v38 = vpack.c.bf16 %v70_v36, %v68_v35  ;;  %v69_v40 = vld [vmem:[%s3580_s1 + $0xd0] sm:$0xff]  ;;  %v37_v41 = vld [vmem:[%s3579_s0 + $0x8] sm:$0xff]  ;;  %v74_v43 = vld [vmem:[%s3580_s1 + $0xf8] sm:$0xff] }
   0xb   :  { %v72_v42 = vld [vmem:[%s3580_s1 + $0xe8] sm:$0xff]  ;;  %328 = vmatprep.mubr.f32.mxu0 %v37_v41  ;;  %v1456_v44 = vpack.c.bf16 %v69_v40, %v67_v39  ;;  %v71_v46 = vld [vmem:[%s3580_s1 + $0xe0] sm:$0xff]  ;;  %v73_v47 = vld [vmem:[%s3580_s1 + $0xf0] sm:$0xff] }
   0xc   :  { %v1458_v45 = vpack.c.bf16 %v74_v43, %v72_v42  ;;  %v76_v48 = vld [vmem:[%s3580_s1 + $0x108] sm:$0xff]  ;;  %v78_v49 = vld [vmem:[%s3580_s1 + $0x118] sm:$0xff]  ;;  %v1460_v50 = vpack.c.bf16 %v73_v47, %v71_v46  ;;  %v75_v52 = vld [vmem:[%s3580_s1 + $0x100] sm:$0xff] }
   0xd   :  { %1441 = vmatpush1.bf16.msra.mxu0 %v1440_v19  ;;  %v1462_v51 = vpack.c.bf16 %v78_v49, %v76_v48  ;;  %v77_v53 = vld [vmem:[%s3580_s1 + $0x110] sm:$0xff]  ;;  %v80_v54 = vld [vmem:[%s3580_s1 + $0x128] sm:$0xff]  ;;  %v82_v55 = vld [vmem:[%s3580_s1 + $0x138] sm:$0xff] }
   0xe   :  { %1443 = vmatprep.subr.bf16.mxu0 %v1442_v20  ;;  %v1464_v56 = vpack.c.bf16 %v77_v53, %v75_v52  ;;  %v1466_v57 = vpack.c.bf16 %v82_v55, %v80_v54  ;;  %v79_v58 = vld [vmem:[%s3580_s1 + $0x120] sm:$0xff]  ;;  %v81_v59 = vld [vmem:[%s3580_s1 + $0x130] sm:$0xff]  ;;  %v84_v60 = vld [vmem:[%s3580_s1 + $0x148] sm:$0xff] }
   0xf   :  { %v86_v61 = vld [vmem:[%s3580_s1 + $0x158] sm:$0xff]  ;;  %v1468_v62 = vpack.c.bf16 %v81_v59, %v79_v58  ;;  %v83_v0 = vld [vmem:[%s3580_s1 + $0x140] sm:$0xff]  ;;  %v85_v1 = vld [vmem:[%s3580_s1 + $0x150] sm:$0xff] }
  0x10   :  { %v1470_v63 = vpack.c.bf16 %v86_v61, %v84_v60  ;;  %v88_v2 = vld [vmem:[%s3580_s1 + $0x168] sm:$0xff]  ;;  %v90_v3 = vld [vmem:[%s3580_s1 + $0x178] sm:$0xff]  ;;  %v1472_v4 = vpack.c.bf16 %v85_v1, %v83_v0  ;;  %v87_v6 = vld [vmem:[%s3580_s1 + $0x160] sm:$0xff] }
  0x11   :  { %1445 = vmatpush1.bf16.msra.mxu0 %v1444_v25  ;;  %v1474_v5 = vpack.c.bf16 %v90_v3, %v88_v2  ;;  %v89_v7 = vld [vmem:[%s3580_s1 + $0x170] sm:$0xff]  ;;  %v92_v8 = vld [vmem:[%s3580_s1 + $0x188] sm:$0xff]  ;;  %v94_v9 = vld [vmem:[%s3580_s1 + $0x198] sm:$0xff] }
  0x12   :  { %1447 = vmatprep.subr.bf16.mxu0 %v1446_v26  ;;  %v1476_v10 = vpack.c.bf16 %v89_v7, %v87_v6  ;;  %v1478_v11 = vpack.c.bf16 %v94_v9, %v92_v8  ;;  %v91_v12 = vld [vmem:[%s3580_s1 + $0x180] sm:$0xff]  ;;  %v93_v13 = vld [vmem:[%s3580_s1 + $0x190] sm:$0xff]  ;;  %v96_v14 = vld [vmem:[%s3580_s1 + $0x1a8] sm:$0xff] }
  0x13   :  { %v98_v15 = vld [vmem:[%s3580_s1 + $0x1b8] sm:$0xff]  ;;  %v1480_v16 = vpack.c.bf16 %v93_v13, %v91_v12  ;;  %v95_v18 = vld [vmem:[%s3580_s1 + $0x1a0] sm:$0xff]  ;;  %v97_v19 = vld [vmem:[%s3580_s1 + $0x1b0] sm:$0xff] }
  0x14   :  { %v1482_v17 = vpack.c.bf16 %v98_v15, %v96_v14  ;;  %v100_v20 = vld [vmem:[%s3580_s1 + $0x1c8] sm:$0xff]  ;;  %v102_v21 = vld [vmem:[%s3580_s1 + $0x1d8] sm:$0xff]  ;;  %v1484_v22 = vpack.c.bf16 %v97_v19, %v95_v18  ;;  %v99_v24 = vld [vmem:[%s3580_s1 + $0x1c0] sm:$0xff] }
  0x15   :  { %1449 = vmatpush1.bf16.msra.mxu0 %v1448_v31  ;;  %v1486_v23 = vpack.c.bf16 %v102_v21, %v100_v20  ;;  %v101_v25 = vld [vmem:[%s3580_s1 + $0x1d0] sm:$0xff]  ;;  %v104_v26 = vld [vmem:[%s3580_s1 + $0x1e8] sm:$0xff]  ;;  %v106_v27 = vld [vmem:[%s3580_s1 + $0x1f8] sm:$0xff] }
  0x16   :  { %1451 = vmatprep.subr.bf16.mxu0 %v1450_v32  ;;  %v1488_v28 = vpack.c.bf16 %v101_v25, %v99_v24  ;;  %v1490_v29 = vpack.c.bf16 %v106_v27, %v104_v26  ;;  %v103_v30 = vld [vmem:[%s3580_s1 + $0x1e0] sm:$0xff]  ;;  %v105_v31 = vld [vmem:[%s3580_s1 + $0x1f0] sm:$0xff]  ;;  %v108_v32 = vld [vmem:[%s3580_s1 + $0x208] sm:$0xff] }
  0x17   :  { %v110_v33 = vld [vmem:[%s3580_s1 + $0x218] sm:$0xff]  ;;  %v1492_v34 = vpack.c.bf16 %v105_v31, %v103_v30  ;;  %v107_v36 = vld [vmem:[%s3580_s1 + $0x200] sm:$0xff]  ;;  %v116_v46 = vld [vmem:[%s3580_s1 + $0x248] sm:$0xff] }
  0x18   :  { %v1494_v35 = vpack.c.bf16 %v110_v33, %v108_v32  ;;  %v114_v39 = vld [vmem:[%s3580_s1 + $0x238] sm:$0xff]  ;;  %v36_v40 = vld [vmem:[%s3579_s0] sm:$0xff] }
  0x19   :  { %1453 = vmatpush1.bf16.msra.mxu0 %v1452_v37  ;;  %v109_v37 = vld [vmem:[%s3580_s1 + $0x210] sm:$0xff]  ;;  %v111_v43 = vld [vmem:[%s3580_s1 + $0x220] sm:$0xff]  ;;  %v118_v47 = vld [vmem:[%s3580_s1 + $0x258] sm:$0xff] }
  0x1a   :  { %1455 = vmatprep.subr.bf16.mxu0 %v1454_v38  ;;  %v112_v38 = vld [vmem:[%s3580_s1 + $0x228] sm:$0xff]  ;;  %v1496_v41 = vpack.c.bf16 %v109_v37, %v107_v36 }
  0x1b   :  { %v1498_v42 = vpack.c.bf16 %v114_v39, %v112_v38 }
  0x1d   :  { %1457 = vmatpush1.bf16.msra.mxu0 %v1456_v44  ;;  %v113_v44 = vld [vmem:[%s3580_s1 + $0x230] sm:$0xff] }
  0x1e   :  { %1459 = vmatprep.subr.bf16.mxu0 %v1458_v45  ;;  %v39_v45 = vld [vmem:[%s3579_s0 + $0x18] sm:$0xff] }
  0x21   :  { %1461 = vmatpush1.bf16.msra.mxu0 %v1460_v50 }
  0x22   :  { %1463 = vmatprep.subr.bf16.mxu0 %v1462_v51 }
  0x25   :  { %1465 = vmatpush1.bf16.msra.mxu0 %v1464_v56 }
  0x26   :  { %1467 = vmatprep.subr.bf16.mxu0 %v1466_v57 }
  0x29   :  { %1469 = vmatpush1.bf16.msra.mxu0 %v1468_v62 }
  0x2a   :  { %1471 = vmatprep.subr.bf16.mxu0 %v1470_v63 }
  0x2d   :  { %1473 = vmatpush1.bf16.msra.mxu0 %v1472_v4 }
  0x2e   :  { %1475 = vmatprep.subr.bf16.mxu0 %v1474_v5 }
  0x31   :  { %1477 = vmatpush1.bf16.msra.mxu0 %v1476_v10 }
  0x32   :  { %1479 = vmatprep.subr.bf16.mxu0 %v1478_v11 }
  0x35   :  { %1481 = vmatpush1.bf16.msra.mxu0 %v1480_v16 }
  0x36   :  { %1483 = vmatprep.subr.bf16.mxu0 %v1482_v17 }
  0x39   :  { %1485 = vmatpush1.bf16.msra.mxu0 %v1484_v22 }
  0x3a   :  { %1487 = vmatprep.subr.bf16.mxu0 %v1486_v23 }
  0x3d   :  { %1489 = vmatpush1.bf16.msra.mxu0 %v1488_v28 }
  0x3e   :  { %1491 = vmatprep.subr.bf16.mxu0 %v1490_v29 }
  0x41   :  { %1493 = vmatpush1.bf16.msra.mxu0 %v1492_v34 }
  0x42   :  { %1495 = vmatprep.subr.bf16.mxu0 %v1494_v35 }
  0x43   :  { %17 = vsyncpa [#allocation5], 0  ;;  %v1500_v48 = vpack.c.bf16 %v113_v44, %v111_v43  ;;  %v1502_v49 = vpack.c.bf16 %v118_v47, %v116_v46  ;;  %v115_v50 = vld [vmem:[%s3580_s1 + $0x240] sm:$0xff]  ;;  %v117_v51 = vld [vmem:[%s3580_s1 + $0x250] sm:$0xff]  ;;  %vm257_vm0 = vcmask 1041408   ;;  %vm253_vm1 = vcmask 146432  }
  0x44   :  { %329 = vmatmul.mubr.f32.vlgmr.msra.gmra.mrb[0].mxu0 %v36_v40  ;;  %v120_v52 = vld [vmem:[%s3580_s1 + $0x268] sm:$0xff]  ;;  %v122_v53 = vld [vmem:[%s3580_s1 + $0x278] sm:$0xff]  ;;  %v1504_v54 = vpack.c.bf16 %v117_v51, %v115_v50  ;;  %v119_v56 = vld [vmem:[%s3580_s1 + $0x260] sm:$0xff] }
  0x45   :  { %1497 = vmatpush1.bf16.msra.mxu0 %v1496_v41  ;;  %399 = vmatprep.mubr.f32.mxu0 %v39_v45  ;;  %v1506_v55 = vpack.c.bf16 %v122_v53, %v120_v52  ;;  %v121_v57 = vld [vmem:[%s3580_s1 + $0x270] sm:$0xff]  ;;  %v124_v58 = vld [vmem:[%s3580_s1 + $0x288] sm:$0xff]  ;;  %v126_v59 = vld [vmem:[%s3580_s1 + $0x298] sm:$0xff] }
  0x46   :  { %1499 = vmatprep.subr.bf16.mxu0 %v1498_v42  ;;  %v123_v60 = vld [vmem:[%s3580_s1 + $0x280] sm:$0xff]  ;;  %v125_v61 = vld [vmem:[%s3580_s1 + $0x290] sm:$0xff]  ;;  %v567_v63 = vld [vmem:[%s3582_s3 + $0x88] sm:$0xff]  ;;  %v1508_v1 = vpack.c.bf16 %v121_v57, %v119_v56  ;;  %v1510_v6 = vpack.c.bf16 %v126_v59, %v124_v58 }
  0x47   :  { %v566_v62 = vld [vmem:[%s3582_s3 + $0x80] sm:$0xff]  ;;  %v551_v3 = vld [vmem:[%s3582_s3 + $0x8] sm:$0xff]  ;;  %v568_v4 = vld [vmem:[%s3582_s3 + $0x90] sm:$0xff]  ;;  %v1512_v16 = vpack.c.bf16 %v125_v61, %v123_v60 }
  0x48   :  { %v550_v0 = vld [vmem:[%s3582_s3] sm:$0xff]  ;;  %v1626_v2 = vpack.c.bf16 %v567_v63, %v566_v62  ;;  %v569_v5 = vld [vmem:[%s3582_s3 + $0x98] sm:$0xff]  ;;  %v552_v9 = vld [vmem:[%s3582_s3 + $0x10] sm:$0xff] }
  0x49   :  { %1501 = vmatpush1.bf16.msra.mxu0 %v1500_v48  ;;  %v1628_v7 = vpack.c.bf16 %v551_v3, %v550_v0  ;;  %v1630_v8 = vpack.c.bf16 %v569_v5, %v568_v4  ;;  %v553_v10 = vld [vmem:[%s3582_s3 + $0x18] sm:$0xff]  ;;  %v570_v11 = vld [vmem:[%s3582_s3 + $0xa0] sm:$0xff]  ;;  %v128_v12 = vld [vmem:[%s3580_s1 + $0x2a8] sm:$0xff] }
  0x4a   :  { %1503 = vmatprep.subr.bf16.mxu0 %v1502_v49  ;;  %v130_v13 = vld [vmem:[%s3580_s1 + $0x2b8] sm:$0xff]  ;;  %1627 = vmatprep.subr.bf16.mxu1 %v1626_v2  ;;  %v571_v14 = vld [vmem:[%s3582_s3 + $0xa8] sm:$0xff]  ;;  %v1632_v15 = vpack.c.bf16 %v553_v10, %v552_v9  ;;  %v127_v17 = vld [vmem:[%s3580_s1 + $0x2a0] sm:$0xff] }
  0x4b   :  { %1629 = vmatpush3.bf16.msra.mxu1 %v1628_v7  ;;  %v1634_v18 = vpack.c.bf16 %v571_v14, %v570_v11  ;;  %v554_v19 = vld [vmem:[%s3582_s3 + $0x20] sm:$0xff]  ;;  %v555_v20 = vld [vmem:[%s3582_s3 + $0x28] sm:$0xff]  ;;  %v1514_v21 = vpack.c.bf16 %v130_v13, %v128_v12  ;;  %v129_v22 = vld [vmem:[%s3580_s1 + $0x2b0] sm:$0xff] }
  0x4c   :  { %1631 = vmatprep.subr.bf16.mxu1 %v1630_v8  ;;  %v572_v23 = vld [vmem:[%s3582_s3 + $0xb0] sm:$0xff]  ;;  %v573_v24 = vld [vmem:[%s3582_s3 + $0xb8] sm:$0xff]  ;;  %v132_v25 = vld [vmem:[%s3580_s1 + $0x2c8] sm:$0xff]  ;;  %v1636_v27 = vpack.c.bf16 %v555_v20, %v554_v19  ;;  %v1516_v28 = vpack.c.bf16 %v129_v22, %v127_v17 }
  0x4d   :  { %1505 = vmatpush1.bf16.msra.mxu0 %v1504_v54  ;;  %v134_v26 = vld [vmem:[%s3580_s1 + $0x2d8] sm:$0xff]  ;;  %v131_v29 = vld [vmem:[%s3580_s1 + $0x2c0] sm:$0xff]  ;;  %v1638_v30 = vpack.c.bf16 %v573_v24, %v572_v23  ;;  %v556_v31 = vld [vmem:[%s3582_s3 + $0x30] sm:$0xff] }
  0x4e   :  { %1507 = vmatprep.subr.bf16.mxu0 %v1506_v55  ;;  %v557_v32 = vld [vmem:[%s3582_s3 + $0x38] sm:$0xff]  ;;  %v1518_v33 = vpack.c.bf16 %v134_v26, %v132_v25  ;;  %v133_v34 = vld [vmem:[%s3580_s1 + $0x2d0] sm:$0xff]  ;;  %v574_v35 = vld [vmem:[%s3582_s3 + $0xc0] sm:$0xff] }
  0x4f   :  { %1633 = vmatpush3.bf16.msra.mxu1 %v1632_v15  ;;  %v575_v36 = vld [vmem:[%s3582_s3 + $0xc8] sm:$0xff]  ;;  %v138_v38 = vld [vmem:[%s3580_s1 + $0x2f8] sm:$0xff]  ;;  %v1640_v39 = vpack.c.bf16 %v557_v32, %v556_v31  ;;  %v1520_v40 = vpack.c.bf16 %v133_v34, %v131_v29  ;;  %v135_v41 = vld [vmem:[%s3580_s1 + $0x2e0] sm:$0xff] }
  0x50   :  { %1635 = vmatprep.subr.bf16.mxu1 %v1634_v18  ;;  %v136_v37 = vld [vmem:[%s3580_s1 + $0x2e8] sm:$0xff]  ;;  %v1642_v42 = vpack.c.bf16 %v575_v36, %v574_v35  ;;  %v558_v43 = vld [vmem:[%s3582_s3 + $0x40] sm:$0xff]  ;;  %v137_v46 = vld [vmem:[%s3580_s1 + $0x2f0] sm:$0xff] }
  0x51   :  { %1509 = vmatpush1.bf16.msra.mxu0 %v1508_v1  ;;  %v559_v44 = vld [vmem:[%s3582_s3 + $0x48] sm:$0xff]  ;;  %v1522_v45 = vpack.c.bf16 %v138_v38, %v136_v37  ;;  %v576_v47 = vld [vmem:[%s3582_s3 + $0xd0] sm:$0xff]  ;;  %v577_v48 = vld [vmem:[%s3582_s3 + $0xd8] sm:$0xff]  ;;  %v1524_v52 = vpack.c.bf16 %v137_v46, %v135_v41 }
  0x52   :  { %1511 = vmatprep.subr.bf16.mxu0 %v1510_v6  ;;  %v140_v49 = vld [vmem:[%s3580_s1 + $0x308] sm:$0xff]  ;;  %v142_v50 = vld [vmem:[%s3580_s1 + $0x318] sm:$0xff]  ;;  %v1644_v51 = vpack.c.bf16 %v559_v44, %v558_v43  ;;  %v139_v53 = vld [vmem:[%s3580_s1 + $0x300] sm:$0xff]  ;;  %v1646_v54 = vpack.c.bf16 %v577_v48, %v576_v47 }
  0x53   :  { %1637 = vmatpush3.bf16.msra.mxu1 %v1636_v27  ;;  %v560_v55 = vld [vmem:[%s3582_s3 + $0x50] sm:$0xff]  ;;  %v561_v56 = vld [vmem:[%s3582_s3 + $0x58] sm:$0xff]  ;;  %v1526_v57 = vpack.c.bf16 %v142_v50, %v140_v49  ;;  %v578_v59 = vld [vmem:[%s3582_s3 + $0xe0] sm:$0xff] }
  0x54   :  { %1639 = vmatprep.subr.bf16.mxu1 %v1638_v30  ;;  %v141_v58 = vld [vmem:[%s3580_s1 + $0x310] sm:$0xff]  ;;  %v579_v60 = vld [vmem:[%s3582_s3 + $0xe8] sm:$0xff]  ;;  %v146_v62 = vld [vmem:[%s3580_s1 + $0x338] sm:$0xff]  ;;  %v1648_v63 = vpack.c.bf16 %v561_v56, %v560_v55 }
  0x55   :  { %1513 = vmatpush1.bf16.msra.mxu0 %v1512_v16  ;;  %v144_v61 = vld [vmem:[%s3580_s1 + $0x328] sm:$0xff]  ;;  %v1528_v0 = vpack.c.bf16 %v141_v58, %v139_v53  ;;  %v1650_v1 = vpack.c.bf16 %v579_v60, %v578_v59  ;;  %v143_v3 = vld [vmem:[%s3580_s1 + $0x320] sm:$0xff]  ;;  %v145_v4 = vld [vmem:[%s3580_s1 + $0x330] sm:$0xff] }
  0x56   :  { %1515 = vmatprep.subr.bf16.mxu0 %v1514_v21  ;;  %v1530_v2 = vpack.c.bf16 %v146_v62, %v144_v61  ;;  %v148_v5 = vld [vmem:[%s3580_s1 + $0x348] sm:$0xff]  ;;  %v150_v6 = vld [vmem:[%s3580_s1 + $0x358] sm:$0xff]  ;;  %v1532_v7 = vpack.c.bf16 %v145_v4, %v143_v3  ;;  %v147_v9 = vld [vmem:[%s3580_s1 + $0x340] sm:$0xff] }
  0x57   :  { %1641 = vmatpush3.bf16.msra.mxu1 %v1640_v39  ;;  %v1534_v8 = vpack.c.bf16 %v150_v6, %v148_v5  ;;  %v149_v10 = vld [vmem:[%s3580_s1 + $0x350] sm:$0xff]  ;;  %v152_v11 = vld [vmem:[%s3580_s1 + $0x368] sm:$0xff]  ;;  %v154_v12 = vld [vmem:[%s3580_s1 + $0x378] sm:$0xff] }
  0x58   :  { %1643 = vmatprep.subr.bf16.mxu1 %v1642_v42  ;;  %v1536_v13 = vpack.c.bf16 %v149_v10, %v147_v9  ;;  %v1538_v14 = vpack.c.bf16 %v154_v12, %v152_v11  ;;  %v151_v15 = vld [vmem:[%s3580_s1 + $0x360] sm:$0xff]  ;;  %v153_v16 = vld [vmem:[%s3580_s1 + $0x370] sm:$0xff]  ;;  %v156_v17 = vld [vmem:[%s3580_s1 + $0x388] sm:$0xff] }
  0x59   :  { %1517 = vmatpush1.bf16.msra.mxu0 %v1516_v28  ;;  %v158_v18 = vld [vmem:[%s3580_s1 + $0x398] sm:$0xff]  ;;  %v1540_v19 = vpack.c.bf16 %v153_v16, %v151_v15  ;;  %v155_v21 = vld [vmem:[%s3580_s1 + $0x380] sm:$0xff]  ;;  %v157_v22 = vld [vmem:[%s3580_s1 + $0x390] sm:$0xff] }
  0x5a   :  { %1519 = vmatprep.subr.bf16.mxu0 %v1518_v33  ;;  %v1542_v20 = vpack.c.bf16 %v158_v18, %v156_v17  ;;  %v160_v23 = vld [vmem:[%s3580_s1 + $0x3a8] sm:$0xff]  ;;  %v162_v24 = vld [vmem:[%s3580_s1 + $0x3b8] sm:$0xff]  ;;  %v1544_v25 = vpack.c.bf16 %v157_v22, %v155_v21  ;;  %v159_v27 = vld [vmem:[%s3580_s1 + $0x3a0] sm:$0xff] }
  0x5b   :  { %1645 = vmatpush3.bf16.msra.mxu1 %v1644_v51  ;;  %v1546_v26 = vpack.c.bf16 %v162_v24, %v160_v23  ;;  %v161_v28 = vld [vmem:[%s3580_s1 + $0x3b0] sm:$0xff]  ;;  %v164_v29 = vld [vmem:[%s3580_s1 + $0x3c8] sm:$0xff]  ;;  %v166_v30 = vld [vmem:[%s3580_s1 + $0x3d8] sm:$0xff] }
  0x5c   :  { %1647 = vmatprep.subr.bf16.mxu1 %v1646_v54  ;;  %v1548_v31 = vpack.c.bf16 %v161_v28, %v159_v27  ;;  %v1550_v32 = vpack.c.bf16 %v166_v30, %v164_v29  ;;  %v163_v33 = vld [vmem:[%s3580_s1 + $0x3c0] sm:$0xff]  ;;  %v165_v34 = vld [vmem:[%s3580_s1 + $0x3d0] sm:$0xff]  ;;  %v168_v35 = vld [vmem:[%s3580_s1 + $0x3e8] sm:$0xff] }
  0x5d   :  { %1521 = vmatpush1.bf16.msra.mxu0 %v1520_v40  ;;  %v170_v36 = vld [vmem:[%s3580_s1 + $0x3f8] sm:$0xff]  ;;  %v1552_v37 = vpack.c.bf16 %v165_v34, %v163_v33  ;;  %v167_v39 = vld [vmem:[%s3580_s1 + $0x3e0] sm:$0xff]  ;;  %v169_v40 = vld [vmem:[%s3580_s1 + $0x3f0] sm:$0xff] }
  0x5e   :  { %1523 = vmatprep.subr.bf16.mxu0 %v1522_v45  ;;  %v1554_v38 = vpack.c.bf16 %v170_v36, %v168_v35  ;;  %v172_v41 = vld [vmem:[%s3580_s1 + $0x408] sm:$0xff]  ;;  %v174_v42 = vld [vmem:[%s3580_s1 + $0x418] sm:$0xff]  ;;  %v1556_v43 = vpack.c.bf16 %v169_v40, %v167_v39  ;;  %v171_v45 = vld [vmem:[%s3580_s1 + $0x400] sm:$0xff] }
  0x5f   :  { %1649 = vmatpush3.bf16.msra.mxu1 %v1648_v63  ;;  %v1558_v44 = vpack.c.bf16 %v174_v42, %v172_v41  ;;  %v173_v46 = vld [vmem:[%s3580_s1 + $0x410] sm:$0xff]  ;;  %v176_v47 = vld [vmem:[%s3580_s1 + $0x428] sm:$0xff]  ;;  %v178_v48 = vld [vmem:[%s3580_s1 + $0x438] sm:$0xff] }
  0x60   :  { %1651 = vmatprep.subr.bf16.mxu1 %v1650_v1  ;;  %v38_v49 = vld [vmem:[%s3579_s0 + $0x10] sm:$0xff]  ;;  %v1560_v50 = vpack.c.bf16 %v173_v46, %v171_v45  ;;  %v1562_v51 = vpack.c.bf16 %v178_v48, %v176_v47  ;;  %v41_v54 = vld [vmem:[%s3579_s0 + $0x28] sm:$0xff]  ;;  %v182_v56 = vld [vmem:[%s3580_s1 + $0x458] sm:$0xff] }
  0x61   :  { %1525 = vmatpush1.bf16.msra.mxu0 %v1524_v52  ;;  %v175_v52 = vld [vmem:[%s3580_s1 + $0x420] sm:$0xff]  ;;  %v177_v53 = vld [vmem:[%s3580_s1 + $0x430] sm:$0xff]  ;;  %v180_v55 = vld [vmem:[%s3580_s1 + $0x448] sm:$0xff] }
  0x62   :  { %1527 = vmatprep.subr.bf16.mxu0 %v1526_v57  ;;  %v1564_v57 = vpack.c.bf16 %v177_v53, %v175_v52  ;;  %v1566_v58 = vpack.c.bf16 %v182_v56, %v180_v55  ;;  %v179_v59 = vld [vmem:[%s3580_s1 + $0x440] sm:$0xff]  ;;  %v181_v60 = vld [vmem:[%s3580_s1 + $0x450] sm:$0xff]  ;;  %v184_v61 = vld [vmem:[%s3580_s1 + $0x468] sm:$0xff] }
  0x63   :  { %v186_v62 = vld [vmem:[%s3580_s1 + $0x478] sm:$0xff]  ;;  %v1568_v63 = vpack.c.bf16 %v181_v60, %v179_v59  ;;  %v183_v1 = vld [vmem:[%s3580_s1 + $0x460] sm:$0xff]  ;;  %v188_v3 = vld [vmem:[%s3580_s1 + $0x488] sm:$0xff] }
  0x64   :  { %v190_v4 = vld [vmem:[%s3580_s1 + $0x498] sm:$0xff]  ;;  %v192_v9 = vld [vmem:[%s3580_s1 + $0x4a8] sm:$0xff]  ;;  %v219_v55 = vld [vmem:[%s3580_s1 + $0x580] sm:$0xff] }
  0x65   :  { %1529 = vmatpush1.bf16.msra.mxu0 %v1528_v0  ;;  %v1570_v0 = vpack.c.bf16 %v186_v62, %v184_v61  ;;  %v1574_v6 = vpack.c.bf16 %v190_v4, %v188_v3  ;;  %v194_v10 = vld [vmem:[%s3580_s1 + $0x4b8] sm:$0xff]  ;;  %v196_v15 = vld [vmem:[%s3580_s1 + $0x4c8] sm:$0xff]  ;;  %v221_v56 = vld [vmem:[%s3580_s1 + $0x590] sm:$0xff] }
  0x66   :  { %1531 = vmatprep.subr.bf16.mxu0 %v1530_v2  ;;  %v185_v2 = vld [vmem:[%s3580_s1 + $0x470] sm:$0xff]  ;;  %v1578_v12 = vpack.c.bf16 %v194_v10, %v192_v9  ;;  %v198_v16 = vld [vmem:[%s3580_s1 + $0x4d8] sm:$0xff]  ;;  %v200_v21 = vld [vmem:[%s3580_s1 + $0x4e8] sm:$0xff]  ;;  %v1608_v59 = vpack.c.bf16 %v221_v56, %v219_v55 }
  0x67   :  { %v1572_v5 = vpack.c.bf16 %v185_v2, %v183_v1  ;;  %v1582_v18 = vpack.c.bf16 %v198_v16, %v196_v15  ;;  %v202_v22 = vld [vmem:[%s3580_s1 + $0x4f8] sm:$0xff]  ;;  %v204_v27 = vld [vmem:[%s3580_s1 + $0x508] sm:$0xff]  ;;  %v223_v61 = vld [vmem:[%s3580_s1 + $0x5a0] sm:$0xff] }
  0x68   :  { %v1586_v24 = vpack.c.bf16 %v202_v22, %v200_v21  ;;  %v206_v28 = vld [vmem:[%s3580_s1 + $0x518] sm:$0xff]  ;;  %v208_v33 = vld [vmem:[%s3580_s1 + $0x528] sm:$0xff]  ;;  %v225_v62 = vld [vmem:[%s3580_s1 + $0x5b0] sm:$0xff] }
  0x69   :  { %1533 = vmatpush1.bf16.msra.mxu0 %v1532_v7  ;;  %v187_v7 = vld [vmem:[%s3580_s1 + $0x480] sm:$0xff]  ;;  %v1590_v30 = vpack.c.bf16 %v206_v28, %v204_v27  ;;  %v210_v34 = vld [vmem:[%s3580_s1 + $0x538] sm:$0xff]  ;;  %v212_v39 = vld [vmem:[%s3580_s1 + $0x548] sm:$0xff]  ;;  %v1612_v1 = vpack.c.bf16 %v225_v62, %v223_v61 }
  0x6a   :  { %1535 = vmatprep.subr.bf16.mxu0 %v1534_v8  ;;  %v189_v8 = vld [vmem:[%s3580_s1 + $0x490] sm:$0xff]  ;;  %v1594_v36 = vpack.c.bf16 %v210_v34, %v208_v33  ;;  %v214_v40 = vld [vmem:[%s3580_s1 + $0x558] sm:$0xff]  ;;  %v216_v45 = vld [vmem:[%s3580_s1 + $0x568] sm:$0xff] }
  0x6b   :  { %v1576_v11 = vpack.c.bf16 %v189_v8, %v187_v7  ;;  %v1598_v42 = vpack.c.bf16 %v214_v40, %v212_v39  ;;  %v218_v46 = vld [vmem:[%s3580_s1 + $0x578] sm:$0xff]  ;;  %v227_v3 = vld [vmem:[%s3580_s1 + $0x5c0] sm:$0xff]  ;;  %v229_v4 = vld [vmem:[%s3580_s1 + $0x5d0] sm:$0xff] }
  0x6c   :  { %v1602_v48 = vpack.c.bf16 %v218_v46, %v216_v45  ;;  %v222_v52 = vld [vmem:[%s3580_s1 + $0x598] sm:$0xff]  ;;  %v1616_v7 = vpack.c.bf16 %v229_v4, %v227_v3  ;;  %v231_v9 = vld [vmem:[%s3580_s1 + $0x5e0] sm:$0xff]  ;;  %v233_v10 = vld [vmem:[%s3580_s1 + $0x5f0] sm:$0xff] }
  0x6d   :  { %1537 = vmatpush1.bf16.msra.mxu0 %v1536_v13  ;;  %v191_v13 = vld [vmem:[%s3580_s1 + $0x4a0] sm:$0xff]  ;;  %v237_v16 = vld [vmem:[%s3580_s1 + $0x610] sm:$0xff]  ;;  %v581_v27 = vld [vmem:[%s3582_s3 + $0xf8] sm:$0xff] }
  0x6e   :  { %1539 = vmatprep.subr.bf16.mxu0 %v1538_v14  ;;  %v193_v14 = vld [vmem:[%s3580_s1 + $0x4b0] sm:$0xff]  ;;  %v235_v15 = vld [vmem:[%s3580_s1 + $0x600] sm:$0xff]  ;;  %v663_v33 = vld [vmem:[%s3584_s5 + $0x18] sm:$0xff] }
  0x6f   :  { %v1580_v17 = vpack.c.bf16 %v193_v14, %v191_v13  ;;  %v1620_v13 = vpack.c.bf16 %v233_v10, %v231_v9  ;;  %v239_v21 = vld [vmem:[%s3580_s1 + $0x620] sm:$0x3]  ;;  %v42_v22 = vld [vmem:[%s3579_s0 + $0x30] sm:$0xff]  ;;  %v669_v56 = vld [vmem:[%s3584_s5 + $0x48] sm:$0xff] }
  0x70   :  { %v660_v45 = vld [vmem:[%s3584_s5] sm:$0xff]  ;;  %v662_v46 = vld [vmem:[%s3584_s5 + $0x10] sm:$0xff]  ;;  %v673_v62 = vld [vmem:[%s3584_s5 + $0x68] sm:$0xff] }
  0x71   :  { %1541 = vmatpush1.bf16.msra.mxu0 %v1540_v19  ;;  %v195_v19 = vld [vmem:[%s3580_s1 + $0x4c0] sm:$0xff]  ;;  %v666_v55 = vld [vmem:[%s3584_s5 + $0x30] sm:$0xff]  ;;  %v677_v4 = vld [vmem:[%s3584_s5 + $0x88] sm:$0xff] }
  0x72   :  { %1543 = vmatprep.subr.bf16.mxu0 %v1542_v20  ;;  %v197_v20 = vld [vmem:[%s3580_s1 + $0x4d0] sm:$0xff]  ;;  %v681_v10 = vld [vmem:[%s3584_s5 + $0xa8] sm:$0xff] }
  0x73   :  { %v1584_v23 = vpack.c.bf16 %v197_v20, %v195_v19  ;;  %v240_v19 = vld [vmem:[%s3580_s1 + $0x628] sm:$0x3]  ;;  %v1973_v20 = vmov 0.0   ;;  %v670_v61 = vld [vmem:[%s3584_s5 + $0x50] sm:$0xff] }
  0x74   :  { %v674_v3 = vld [vmem:[%s3584_s5 + $0x70] sm:$0xff] }
  0x75   :  { %1545 = vmatpush1.bf16.msra.mxu0 %v1544_v25  ;;  %v199_v25 = vld [vmem:[%s3580_s1 + $0x4e0] sm:$0xff]  ;;  %v678_v9 = vld [vmem:[%s3584_s5 + $0x90] sm:$0xff] }
  0x76   :  { %1547 = vmatprep.subr.bf16.mxu0 %v1546_v26  ;;  %v201_v26 = vld [vmem:[%s3580_s1 + $0x4f0] sm:$0xff] }
  0x77   :  { %v1588_v29 = vpack.c.bf16 %v201_v26, %v199_v25  ;;  %v580_v26 = vld [vmem:[%s3582_s3 + $0xf0] sm:$0xff] }
  0x78   :  { %v1654_v28 = vpack.c.bf16 %v581_v27, %v580_v26  ;;  %v688_v26 = vld [vmem:[%s3584_s5 + $0xe0] sm:$0xff]  ;;  %v690_v27 = vld [vmem:[%s3584_s5 + $0xf0] sm:$0xff] }
  0x79   :  { %1549 = vmatpush1.bf16.msra.mxu0 %v1548_v31  ;;  %v203_v31 = vld [vmem:[%s3580_s1 + $0x500] sm:$0xff] }
  0x7a   :  { %1551 = vmatprep.subr.bf16.mxu0 %v1550_v32  ;;  %v205_v32 = vld [vmem:[%s3580_s1 + $0x510] sm:$0xff] }
  0x7b   :  { %v1592_v35 = vpack.c.bf16 %v205_v32, %v203_v31  ;;  %v661_v32 = vld [vmem:[%s3584_s5 + $0x8] sm:$0xff] }
  0x7c   :  { %v1658_v34 = vpack.c.bf16 %v663_v33, %v661_v32  ;;  %v895_v32 = vld [vmem:[%s3586_s7 + $0x3b0] sm:$0xff]  ;;  %v902_v33 = vld [vmem:[%s3586_s7 + $0x3e8] sm:$0xff] }
  0x7d   :  { %1553 = vmatpush1.bf16.msra.mxu0 %v1552_v37  ;;  %v207_v37 = vld [vmem:[%s3580_s1 + $0x520] sm:$0xff] }
  0x7e   :  { %1555 = vmatprep.subr.bf16.mxu0 %v1554_v38  ;;  %v209_v38 = vld [vmem:[%s3580_s1 + $0x530] sm:$0xff] }
  0x7f   :  { %v1596_v41 = vpack.c.bf16 %v209_v38, %v207_v37  ;;  %v241_v38 = vld [vmem:[%s3581_s2] sm:$0x3] }
  0x81   :  { %1557 = vmatpush1.bf16.msra.mxu0 %v1556_v43  ;;  %v211_v43 = vld [vmem:[%s3580_s1 + $0x540] sm:$0xff] }
  0x82   :  { %1559 = vmatprep.subr.bf16.mxu0 %v1558_v44  ;;  %v213_v44 = vld [vmem:[%s3580_s1 + $0x550] sm:$0xff] }
  0x83   :  { %v1600_v47 = vpack.c.bf16 %v213_v44, %v211_v43 }
  0x84   :  { %400 = vmatmul.mubr.f32.vlgmr.msra.gmra.mrb[0].mxu0 %v38_v49  ;;  %v215_v49 = vld [vmem:[%s3580_s1 + $0x560] sm:$0xff] }
  0x85   :  { %1561 = vmatpush1.bf16.msra.mxu0 %v1560_v50  ;;  %470 = vmatprep.mubr.f32.mxu0 %v41_v54  ;;  %v217_v50 = vld [vmem:[%s3580_s1 + $0x570] sm:$0xff] }
  0x86   :  { %1563 = vmatprep.subr.bf16.mxu0 %v1562_v51  ;;  %v220_v51 = vld [vmem:[%s3580_s1 + $0x588] sm:$0xff]  ;;  %v1604_v53 = vpack.c.bf16 %v217_v50, %v215_v49  ;;  %v667_v49 = vld [vmem:[%s3584_s5 + $0x38] sm:$0xff] }
  0x87   :  { %v1606_v54 = vpack.c.bf16 %v222_v52, %v220_v51  ;;  %v1660_v51 = vpack.c.bf16 %v662_v46, %v660_v45  ;;  %v804_v45 = vld [vmem:[%s3586_s7 + $0xd8] sm:$0xff] }
  0x89   :  { %1565 = vmatpush1.bf16.msra.mxu0 %v1564_v57  ;;  %v224_v57 = vld [vmem:[%s3580_s1 + $0x5a8] sm:$0xff] }
  0x8a   :  { %1567 = vmatprep.subr.bf16.mxu0 %v1566_v58  ;;  %v226_v58 = vld [vmem:[%s3580_s1 + $0x5b8] sm:$0xff] }
  0x8b   :  { %v1610_v60 = vpack.c.bf16 %v226_v58, %v224_v57  ;;  %v671_v57 = vld [vmem:[%s3584_s5 + $0x58] sm:$0xff] }
  0x8d   :  { %1569 = vmatpush1.bf16.msra.mxu0 %v1568_v63  ;;  %v228_v63 = vld [vmem:[%s3580_s1 + $0x5c8] sm:$0xff] }
  0x8e   :  { %1571 = vmatprep.subr.bf16.mxu0 %v1570_v0  ;;  %v230_v0 = vld [vmem:[%s3580_s1 + $0x5d8] sm:$0xff] }
  0x8f   :  { %v1614_v2 = vpack.c.bf16 %v230_v0, %v228_v63  ;;  %v675_v63 = vld [vmem:[%s3584_s5 + $0x78] sm:$0xff] }
  0x91   :  { %1573 = vmatpush1.bf16.msra.mxu0 %v1572_v5  ;;  %v232_v5 = vld [vmem:[%s3580_s1 + $0x5e8] sm:$0xff] }
  0x92   :  { %1575 = vmatprep.subr.bf16.mxu0 %v1574_v6  ;;  %v234_v6 = vld [vmem:[%s3580_s1 + $0x5f8] sm:$0xff] }
  0x93   :  { %v1618_v8 = vpack.c.bf16 %v234_v6, %v232_v5  ;;  %v679_v5 = vld [vmem:[%s3584_s5 + $0x98] sm:$0xff] }
  0x95   :  { %1577 = vmatpush1.bf16.msra.mxu0 %v1576_v11  ;;  %v236_v11 = vld [vmem:[%s3580_s1 + $0x608] sm:$0xff] }
  0x96   :  { %1579 = vmatprep.subr.bf16.mxu0 %v1578_v12  ;;  %v238_v12 = vld [vmem:[%s3580_s1 + $0x618] sm:$0xff] }
  0x97   :  { %v1622_v14 = vpack.c.bf16 %v238_v12, %v236_v11  ;;  %v683_v11 = vld [vmem:[%s3584_s5 + $0xb8] sm:$0xff] }
  0x99   :  { %1581 = vmatpush1.bf16.msra.mxu0 %v1580_v17  ;;  %v40_v17 = vld [vmem:[%s3579_s0 + $0x20] sm:$0xff] }
  0x9a   :  { %1583 = vmatprep.subr.bf16.mxu0 %v1582_v18  ;;  %v1624_v18 = vpack.c.bf16 %v237_v16, %v235_v15  ;;  %v682_v15 = vld [vmem:[%s3584_s5 + $0xb0] sm:$0xff]  ;;  %v685_v16 = vld [vmem:[%s3584_s5 + $0xc8] sm:$0xff] }
  0x9d   :  { %1585 = vmatpush1.bf16.msra.mxu0 %v1584_v23  ;;  %v562_v23 = vld [vmem:[%s3582_s3 + $0x60] sm:$0xff] }
  0x9e   :  { %1587 = vmatprep.subr.bf16.mxu0 %v1586_v24  ;;  %v563_v24 = vld [vmem:[%s3582_s3 + $0x68] sm:$0xff] }
  0x9f   :  { %v1652_v25 = vpack.c.bf16 %v563_v24, %v562_v23  ;;  %v689_v23 = vld [vmem:[%s3584_s5 + $0xe8] sm:$0xff]  ;;  %v691_v24 = vld [vmem:[%s3584_s5 + $0xf8] sm:$0xff] }
  0xa1   :  { %1589 = vmatpush1.bf16.msra.mxu0 %v1588_v29  ;;  %1653 = vmatpush3.bf16.msra.mxu1 %v1652_v25  ;;  %v564_v29 = vld [vmem:[%s3582_s3 + $0x70] sm:$0xff]  ;;  %v1686_v25 = vpack.c.bf16 %v691_v24, %v689_v23  ;;  %v806_v23 = vld [vmem:[%s3586_s7 + $0xe8] sm:$0xff]  ;;  %v813_v24 = vld [vmem:[%s3586_s7 + $0x120] sm:$0xff] }
  0xa2   :  { %1591 = vmatprep.subr.bf16.mxu0 %v1590_v30  ;;  %v565_v30 = vld [vmem:[%s3582_s3 + $0x78] sm:$0xff]  ;;  %1655 = vmatprep.subr.bf16.mxu1 %v1654_v28  ;;  %v1688_v28 = vpack.c.bf16 %v690_v27, %v688_v26  ;;  %v1698_v26 = vpack.c.bf16 %v813_v24, %v806_v23  ;;  %v805_v27 = vld [vmem:[%s3586_s7 + $0xe0] sm:$0xff] }
  0xa3   :  { %v1656_v31 = vpack.c.bf16 %v565_v30, %v564_v29  ;;  %v778_v29 = vld [vmem:[%s3586_s7 + $0x8] sm:$0xff]  ;;  %v785_v30 = vld [vmem:[%s3586_s7 + $0x40] sm:$0xff] }
  0xa4   :  { %v953_v23 = vld [vmem:[%s3586_s7 + $0x580] sm:$0xff] }
  0xa5   :  { %1593 = vmatpush1.bf16.msra.mxu0 %v1592_v35  ;;  %1657 = vmatpush3.bf16.msra.mxu1 %v1656_v31  ;;  %v243_v35 = vlaneseq  ;;  %v1690_v31 = vpack.c.bf16 %v785_v30, %v778_v29  ;;  %v820_v29 = vld [vmem:[%s3586_s7 + $0x158] sm:$0xff]  ;;  %v827_v30 = vld [vmem:[%s3586_s7 + $0x190] sm:$0xff] }
  0xa6   :  { %1595 = vmatprep.subr.bf16.mxu0 %v1594_v36  ;;  %1659 = vmatprep.subr.bf16.mxu1 %v1658_v34  ;;  %v783_v34 = vld [vmem:[%s3586_s7 + $0x30] sm:$0xff] }
  0xa7   :  { %v2749_v36 = vshrl.u32 %v243_v35, 7  ;;  %v1882_v35 = vpack.c.bf16 %v902_v33, %v895_v32  ;;  %v1702_v32 = vpack.c.bf16 %v827_v30, %v820_v29  ;;  %v819_v33 = vld [vmem:[%s3586_s7 + $0x150] sm:$0xff] }
  0xa8   :  { %v967_v29 = vld [vmem:[%s3586_s7 + $0x5f0] sm:$0xff] }
  0xa9   :  { %1597 = vmatpush1.bf16.msra.mxu0 %v1596_v41  ;;  %v2752_v37 = vsub.s32 0, %v2749_v36  ;;  %v2758_v39 = vsub.s32 1, %v2749_v36 }
  0xaa   :  { %1599 = vmatprep.subr.bf16.mxu0 %v1598_v42 }
  0xab   :  { %v246_v40 = vrot.slane %v241_v38, %v2752_v37  ;;  %v250_v41 = vrot.slane %v241_v38, %v2758_v39  ;;  %v790_v38 = vld [vmem:[%s3586_s7 + $0x68] sm:$0xff] }
  0xad   :  { %1601 = vmatpush1.bf16.msra.mxu0 %v1600_v47 }
  0xae   :  { %1603 = vmatprep.subr.bf16.mxu0 %v1602_v48  ;;  %v665_v48 = vld [vmem:[%s3584_s5 + $0x28] sm:$0xff] }
  0xb1   :  { %1605 = vmatpush1.bf16.msra.mxu0 %v1604_v53  ;;  %v1662_v53 = vpack.c.bf16 %v667_v49, %v665_v48  ;;  %v930_v48 = vld [vmem:[%s3586_s7 + $0x4c8] sm:$0xff]  ;;  %v811_v49 = vld [vmem:[%s3586_s7 + $0x110] sm:$0xff] }
  0xb2   :  { %1607 = vmatprep.subr.bf16.mxu0 %v1606_v54  ;;  %v664_v54 = vld [vmem:[%s3584_s5 + $0x20] sm:$0xff] }
  0xb3   :  { %v1664_v58 = vpack.c.bf16 %v666_v55, %v664_v54  ;;  %v944_v54 = vld [vmem:[%s3586_s7 + $0x538] sm:$0xff]  ;;  %v825_v55 = vld [vmem:[%s3586_s7 + $0x180] sm:$0xff] }
  0xb5   :  { %1609 = vmatpush1.bf16.msra.mxu0 %v1608_v59  ;;  %v1666_v59 = vpack.c.bf16 %v671_v57, %v669_v56  ;;  %v832_v57 = vld [vmem:[%s3586_s7 + $0x1b8] sm:$0xff] }
  0xb6   :  { %1611 = vmatprep.subr.bf16.mxu0 %v1610_v60  ;;  %v668_v60 = vld [vmem:[%s3584_s5 + $0x40] sm:$0xff] }
  0xb7   :  { %v1668_v0 = vpack.c.bf16 %v670_v61, %v668_v60  ;;  %v958_v60 = vld [vmem:[%s3586_s7 + $0x5a8] sm:$0xff]  ;;  %v839_v61 = vld [vmem:[%s3586_s7 + $0x1f0] sm:$0xff] }
  0xb9   :  { %1613 = vmatpush1.bf16.msra.mxu0 %v1612_v1  ;;  %v1670_v1 = vpack.c.bf16 %v675_v63, %v673_v62  ;;  %v846_v63 = vld [vmem:[%s3586_s7 + $0x228] sm:$0xff] }
  0xba   :  { %1615 = vmatprep.subr.bf16.mxu0 %v1614_v2  ;;  %v672_v2 = vld [vmem:[%s3584_s5 + $0x60] sm:$0xff] }
  0xbb   :  { %v1672_v6 = vpack.c.bf16 %v674_v3, %v672_v2  ;;  %v972_v2 = vld [vmem:[%s3586_s7 + $0x618] sm:$0xff]  ;;  %v853_v3 = vld [vmem:[%s3586_s7 + $0x260] sm:$0xff] }
  0xbd   :  { %1617 = vmatpush1.bf16.msra.mxu0 %v1616_v7  ;;  %v1674_v7 = vpack.c.bf16 %v679_v5, %v677_v4  ;;  %v860_v5 = vld [vmem:[%s3586_s7 + $0x298] sm:$0xff] }
  0xbe   :  { %1619 = vmatprep.subr.bf16.mxu0 %v1618_v8  ;;  %v676_v8 = vld [vmem:[%s3584_s5 + $0x80] sm:$0xff] }
  0xbf   :  { %v1676_v12 = vpack.c.bf16 %v678_v9, %v676_v8  ;;  %v986_v8 = vld [vmem:[%s3586_s7 + $0x688] sm:$0xff] }
  0xc1   :  { %1621 = vmatpush1.bf16.msra.mxu0 %v1620_v13  ;;  %v1678_v13 = vpack.c.bf16 %v683_v11, %v681_v10  ;;  %v777_v11 = vld [vmem:[%s3586_s7] sm:$0xff] }
  0xc2   :  { %1623 = vmatprep.subr.bf16.mxu0 %v1622_v14  ;;  %v680_v14 = vld [vmem:[%s3584_s5 + $0xa0] sm:$0xff] }
  0xc4   :  { %471 = vmatmul.mubr.f32.vlgmr.msra.gmra.mrb[0].mxu0 %v40_v17  ;;  %v687_v17 = vld [vmem:[%s3584_s5 + $0xd8] sm:$0xff] }
  0xc5   :  { %1625 = vmatpush1.bf16.msra.mxu0 %v1624_v18  ;;  %541 = vmatprep.mubr.f32.mxu0 %v1973_v20  ;;  %v1680_v18 = vpack.c.bf16 %v682_v15, %v680_v14  ;;  %v792_v15 = vld [vmem:[%s3586_s7 + $0x78] sm:$0xff] }
  0xc6   :  { %1356 = vmatprep.subr.msk.mxu0 %vm257_vm0, %v240_v19  ;;  %v1682_v19 = vpack.c.bf16 %v687_v17, %v685_v16  ;;  %v799_v16 = vld [vmem:[%s3586_s7 + $0xb0] sm:$0xff] }
  0xc9   :  { %1357 = vmatpush1.msk.msra.mxu0 %vm257_vm0, %v239_v21  ;;  %v686_v21 = vld [vmem:[%s3584_s5 + $0xd0] sm:$0xff] }
  0xca   :  { %1883 = vmatprep.subr.bf16.mxu0 %v1882_v35  ;;  %v834_v35 = vld [vmem:[%s3586_s7 + $0x1c8] sm:$0xff] }
  0xcc   :  { %1358 = vmatmul.mubr.msk.f32.vlgmr.msra.gmra.mrb[0].mxu0 %vm253_vm1, %v42_v22 }
 0x19f   :  { %v543_v42 = vpop.f32.mrb[0].mxu0 }
 0x1a0   :  { %v1914_v43 = vadd.f32 %v543_v42, %v246_v40  ;;  %v545_v44 = vpop.f32.mrb[1].mxu0  ;;  %v1884_v40 = vpack.c.bf16 %v790_v38, %v783_v34  ;;  %v916_v42 = vld [vmem:[%s3586_s7 + $0x458] sm:$0xff]  ;;  %v826_v34 = vld [vmem:[%s3586_s7 + $0x188] sm:$0xff]  ;;  %v841_v38 = vld [vmem:[%s3586_s7 + $0x200] sm:$0xff] }
 0x1a1   :  { %v1915_v47 = vadd.f32 %v545_v44, %v250_v41  ;;  %v909_v41 = vld [vmem:[%s3586_s7 + $0x420] sm:$0xff] }
 0x1a2   :  { %v548_v52 = vmax.f32 %v1914_v43, 0.0  ;;  %1885 = vmatpush3.bf16.msra.mxu0 %v1884_v40  ;;  %v797_v43 = vld [vmem:[%s3586_s7 + $0xa0] sm:$0xff]  ;;  %v1886_v44 = vpack.c.bf16 %v916_v42, %v909_v41  ;;  %v1704_v40 = vpack.c.bf16 %v826_v34, %v819_v33  ;;  %v1706_v41 = vpack.c.bf16 %v841_v38, %v834_v35  ;;  %v966_v33 = vld [vmem:[%s3586_s7 + $0x5e8] sm:$0xff] }
 0x1a3   :  { %v549_v50 = vmax.f32 %v1915_v47, 0.0  ;;  %v1888_v46 = vpack.c.bf16 %v804_v45, %v797_v43  ;;  %v923_v47 = vld [vmem:[%s3586_s7 + $0x490] sm:$0xff]  ;;  %v833_v42 = vld [vmem:[%s3586_s7 + $0x1c0] sm:$0xff]  ;;  %v840_v43 = vld [vmem:[%s3586_s7 + $0x1f8] sm:$0xff] }
 0x1a4   :  { %1887 = vmatprep.subr.bf16.mxu0 %v1886_v44  ;;  %v848_v44 = vld [vmem:[%s3586_s7 + $0x238] sm:$0xff]  ;;  %v855_v45 = vld [vmem:[%s3586_s7 + $0x270] sm:$0xff]  ;;  %v974_v34 = vld [vmem:[%s3586_s7 + $0x628] sm:$0xff] }
 0x1a5   :  { %653 = vmatprep.mubr.f32.mxu1 %v549_v50  ;;  %v1890_v50 = vpack.c.bf16 %v930_v48, %v923_v47  ;;  %v1710_v47 = vpack.c.bf16 %v855_v45, %v848_v44  ;;  %v847_v48 = vld [vmem:[%s3586_s7 + $0x230] sm:$0xff]  ;;  %v981_v35 = vld [vmem:[%s3586_s7 + $0x660] sm:$0xff]  ;;  %v874_v45 = vld [vmem:[%s3586_s7 + $0x308] sm:$0xff] }
 0x1a6   :  { %654 = vmatmul.mubr.f32.vlgmr.msra.gmra.mrb[0].mxu1 %v548_v52  ;;  %1889 = vmatpush3.bf16.msra.mxu0 %v1888_v46  ;;  %v1708_v46 = vpack.c.bf16 %v840_v43, %v833_v42  ;;  %v980_v42 = vld [vmem:[%s3586_s7 + $0x658] sm:$0xff]  ;;  %v867_v44 = vld [vmem:[%s3586_s7 + $0x2d0] sm:$0xff] }
 0x1a7   :  { %1661 = vmatpush1.bf16.msra.mxu1 %v1660_v51  ;;  %768 = vmatprep.mubr.f32.mxu1 %v1973_v20  ;;  %v684_v20 = vld [vmem:[%s3584_s5 + $0xc0] sm:$0xff]  ;;  %v818_v51 = vld [vmem:[%s3586_s7 + $0x148] sm:$0xff] }
 0x1a8   :  { %1663 = vmatprep.subr.bf16.mxu1 %v1662_v53  ;;  %v1684_v22 = vpack.c.bf16 %v686_v21, %v684_v20  ;;  %v1892_v52 = vpack.c.bf16 %v818_v51, %v811_v49  ;;  %1891 = vmatprep.subr.bf16.mxu0 %v1890_v50  ;;  %v937_v53 = vld [vmem:[%s3586_s7 + $0x500] sm:$0xff]  ;;  %v1694_v20 = vpack.c.bf16 %v799_v16, %v792_v15  ;;  %v791_v21 = vld [vmem:[%s3586_s7 + $0x70] sm:$0xff]  ;;  %v854_v49 = vld [vmem:[%s3586_s7 + $0x268] sm:$0xff] }
 0x1a9   :  { %v1894_v56 = vpack.c.bf16 %v944_v54, %v937_v53  ;;  %v862_v50 = vld [vmem:[%s3586_s7 + $0x2a8] sm:$0xff]  ;;  %v869_v51 = vld [vmem:[%s3586_s7 + $0x2e0] sm:$0xff]  ;;  %v924_v15 = vld [vmem:[%s3586_s7 + $0x498] sm:$0xff] }
 0x1aa   :  { %1893 = vmatpush3.bf16.msra.mxu0 %v1892_v52  ;;  %v1712_v52 = vpack.c.bf16 %v854_v49, %v847_v48  ;;  %v1714_v53 = vpack.c.bf16 %v869_v51, %v862_v50  ;;  %v861_v54 = vld [vmem:[%s3586_s7 + $0x2a0] sm:$0xff]  ;;  %v932_v16 = vld [vmem:[%s3586_s7 + $0x4d8] sm:$0xff]  ;;  %v995_v48 = vld [vmem:[%s3586_s7 + $0x6d0] sm:$0xff] }
 0x1ab   :  { %1665 = vmatpush1.bf16.msra.mxu1 %v1664_v58  ;;  %v1896_v58 = vpack.c.bf16 %v832_v57, %v825_v55  ;;  %1895 = vmatprep.subr.bf16.mxu0 %v1894_v56  ;;  %v868_v55 = vld [vmem:[%s3586_s7 + $0x2d8] sm:$0xff]  ;;  %v883_v57 = vld [vmem:[%s3586_s7 + $0x350] sm:$0xff]  ;;  %v994_v51 = vld [vmem:[%s3586_s7 + $0x6c8] sm:$0xff] }
 0x1ac   :  { %1667 = vmatprep.subr.bf16.mxu1 %v1666_v59  ;;  %v951_v59 = vld [vmem:[%s3586_s7 + $0x570] sm:$0xff]  ;;  %v876_v56 = vld [vmem:[%s3586_s7 + $0x318] sm:$0xff] }
 0x1ad   :  { %v1898_v62 = vpack.c.bf16 %v958_v60, %v951_v59  ;;  %v1718_v59 = vpack.c.bf16 %v883_v57, %v876_v56  ;;  %v875_v60 = vld [vmem:[%s3586_s7 + $0x310] sm:$0xff]  ;;  %v888_v56 = vld [vmem:[%s3586_s7 + $0x378] sm:$0xff] }
 0x1ae   :  { %1897 = vmatpush3.bf16.msra.mxu0 %v1896_v58  ;;  %v1716_v58 = vpack.c.bf16 %v868_v55, %v861_v54  ;;  %v987_v50 = vld [vmem:[%s3586_s7 + $0x690] sm:$0xff]  ;;  %v1000_v54 = vld [vmem:[%s3586_s7 + $0x6f8] sm:$0xff]  ;;  %v881_v55 = vld [vmem:[%s3586_s7 + $0x340] sm:$0xff] }
 0x1af   :  { %1669 = vmatpush1.bf16.msra.mxu1 %v1668_v0  ;;  %v1900_v0 = vpack.c.bf16 %v846_v63, %v839_v61  ;;  %1899 = vmatprep.subr.bf16.mxu0 %v1898_v62  ;;  %v882_v61 = vld [vmem:[%s3586_s7 + $0x348] sm:$0xff]  ;;  %v897_v63 = vld [vmem:[%s3586_s7 + $0x3c0] sm:$0xff] }
 0x1b0   :  { %1671 = vmatprep.subr.bf16.mxu1 %v1670_v1  ;;  %v965_v1 = vld [vmem:[%s3586_s7 + $0x5e0] sm:$0xff]  ;;  %v890_v62 = vld [vmem:[%s3586_s7 + $0x388] sm:$0xff] }
 0x1b1   :  { %v1902_v4 = vpack.c.bf16 %v972_v2, %v965_v1  ;;  %v1722_v1 = vpack.c.bf16 %v897_v63, %v890_v62  ;;  %v889_v2 = vld [vmem:[%s3586_s7 + $0x380] sm:$0xff] }
 0x1b2   :  { %1901 = vmatpush3.bf16.msra.mxu0 %v1900_v0  ;;  %v1720_v0 = vpack.c.bf16 %v882_v61, %v875_v60  ;;  %v787_v60 = vld [vmem:[%s3586_s7 + $0x50] sm:$0xff]  ;;  %v692_v62 = vld [vmem:[%s3585_s6] sm:$0x3] }
 0x1b3   :  { %1673 = vmatpush1.bf16.msra.mxu1 %v1672_v6  ;;  %v1904_v6 = vpack.c.bf16 %v860_v5, %v853_v3  ;;  %1903 = vmatprep.subr.bf16.mxu0 %v1902_v4  ;;  %v896_v3 = vld [vmem:[%s3586_s7 + $0x3b8] sm:$0xff]  ;;  %v911_v5 = vld [vmem:[%s3586_s7 + $0x430] sm:$0xff]  ;;  %v697_v63 = vrot.slane %v692_v62, %v2752_v37 }
 0x1b4   :  { %1675 = vmatprep.subr.bf16.mxu1 %v1674_v7  ;;  %v979_v7 = vld [vmem:[%s3586_s7 + $0x650] sm:$0xff]  ;;  %v904_v4 = vld [vmem:[%s3586_s7 + $0x3f8] sm:$0xff] }
 0x1b5   :  { %v1906_v9 = vpack.c.bf16 %v986_v8, %v979_v7  ;;  %v1726_v7 = vpack.c.bf16 %v911_v5, %v904_v4  ;;  %v903_v8 = vld [vmem:[%s3586_s7 + $0x3f0] sm:$0xff]  ;;  %v786_v5 = vld [vmem:[%s3586_s7 + $0x48] sm:$0xff] }
 0x1b6   :  { %1905 = vmatpush3.bf16.msra.mxu0 %v1904_v6  ;;  %v1724_v6 = vpack.c.bf16 %v896_v3, %v889_v2  ;;  %v779_v4 = vld [vmem:[%s3586_s7 + $0x10] sm:$0xff] }
 0x1b7   :  { %1677 = vmatpush1.bf16.msra.mxu1 %v1676_v12  ;;  %1907 = vmatprep.subr.bf16.mxu0 %v1906_v9  ;;  %v784_v12 = vld [vmem:[%s3586_s7 + $0x38] sm:$0xff]  ;;  %v910_v9 = vld [vmem:[%s3586_s7 + $0x428] sm:$0xff] }
 0x1b8   :  { %1679 = vmatprep.subr.bf16.mxu1 %v1678_v13  ;;  %v1359_v13 = vld [vmem:[%s3583_s4] ss:$0 sm:$0xff] }
 0x1bb   :  { %1681 = vmatpush1.bf16.msra.mxu1 %v1680_v18  ;;  %v1692_v18 = vpack.c.bf16 %v784_v12, %v777_v11  ;;  %v925_v11 = vld [vmem:[%s3586_s7 + $0x4a0] sm:$0xff]  ;;  %v1728_v12 = vpack.c.bf16 %v910_v9, %v903_v8 }
 0x1bc   :  { %1683 = vmatprep.subr.bf16.mxu1 %v1682_v19  ;;  %v801_v8 = vld [vmem:[%s3586_s7 + $0xc0] sm:$0xff] }
 0x1bf   :  { %1685 = vmatpush1.bf16.msra.mxu1 %v1684_v22  ;;  %v798_v22 = vld [vmem:[%s3586_s7 + $0xa8] sm:$0xff] }
 0x1c0   :  { %1687 = vmatprep.subr.bf16.mxu1 %v1686_v25  ;;  %v1696_v25 = vpack.c.bf16 %v798_v22, %v791_v21  ;;  %v938_v21 = vld [vmem:[%s3586_s7 + $0x508] sm:$0xff] }
 0x1c1   :  { %v946_v22 = vld [vmem:[%s3586_s7 + $0x548] sm:$0xff] }
 0x1c3   :  { %1689 = vmatpush1.bf16.msra.mxu1 %v1688_v28  ;;  %v812_v28 = vld [vmem:[%s3586_s7 + $0x118] sm:$0xff] }
 0x1c4   :  { %1691 = vmatprep.subr.bf16.mxu1 %v1690_v31  ;;  %v1700_v31 = vpack.c.bf16 %v812_v28, %v805_v27  ;;  %v952_v27 = vld [vmem:[%s3586_s7 + $0x578] sm:$0xff] }
 0x1c5   :  { %v960_v28 = vld [vmem:[%s3586_s7 + $0x5b8] sm:$0xff] }
 0x279   :  { %v1392_v10 = vpop.f32.mrb[0].mxu1 }
 0x27a   :  { %v1393_v14 = vpop.f32.mrb[1].mxu1 }
 0x27b   :  { %v1394_v17 = vadd.f32 %v1393_v14, %v1392_v10  ;;  %v918_v10 = vld [vmem:[%s3586_s7 + $0x468] sm:$0xff]  ;;  %v917_v14 = vld [vmem:[%s3586_s7 + $0x460] sm:$0xff] }
 0x27d   :  { %v656_v19 = vadd.f32 %v1394_v17, %v1359_v13  ;;  %v1730_v13 = vpack.c.bf16 %v925_v11, %v918_v10  ;;  %v939_v17 = vld [vmem:[%s3586_s7 + $0x510] sm:$0xff]  ;;  %v1756_v10 = vpack.c.bf16 %v786_v5, %v779_v4 }
 0x27f   :  { %659 = vst [vmem:[#allocation2] sm:$0xff] %v656_v19  ;;  %769 = vmatmul.mubr.f32.vlgmr.msra.gmra.mrb[2].mxu1 %v656_v19  ;;  %v1734_v19 = vpack.c.bf16 %v939_v17, %v932_v16  ;;  %v815_v16 = vld [vmem:[%s3586_s7 + $0x130] sm:$0xff] }
 0x280   :  { %1693 = vmatpush1.bf16.msra.mxu1 %v1692_v18  ;;  %v1732_v18 = vpack.c.bf16 %v924_v15, %v917_v14  ;;  %v800_v14 = vld [vmem:[%s3586_s7 + $0xb8] sm:$0xff] }
 0x281   :  { %1695 = vmatprep.subr.bf16.mxu1 %v1694_v20  ;;  %v931_v20 = vld [vmem:[%s3586_s7 + $0x4d0] sm:$0xff]  ;;  %v808_v15 = vld [vmem:[%s3586_s7 + $0xf8] sm:$0xff] }
 0x282   :  { %v1736_v24 = vpack.c.bf16 %v938_v21, %v931_v20  ;;  %v814_v20 = vld [vmem:[%s3586_s7 + $0x128] sm:$0xff] }
 0x283   :  { %v822_v21 = vld [vmem:[%s3586_s7 + $0x168] sm:$0xff] }
 0x284   :  { %1697 = vmatpush1.bf16.msra.mxu1 %v1696_v25  ;;  %v1738_v25 = vpack.c.bf16 %v953_v23, %v946_v22  ;;  %v829_v22 = vld [vmem:[%s3586_s7 + $0x1a0] sm:$0xff] }
 0x285   :  { %1699 = vmatprep.subr.bf16.mxu1 %v1698_v26  ;;  %v945_v26 = vld [vmem:[%s3586_s7 + $0x540] sm:$0xff] }
 0x286   :  { %v1740_v30 = vpack.c.bf16 %v952_v27, %v945_v26  ;;  %v828_v26 = vld [vmem:[%s3586_s7 + $0x198] sm:$0xff] }
 0x287   :  { %v836_v27 = vld [vmem:[%s3586_s7 + $0x1d8] sm:$0xff] }
 0x288   :  { %1701 = vmatpush1.bf16.msra.mxu1 %v1700_v31  ;;  %v1742_v31 = vpack.c.bf16 %v967_v29, %v960_v28  ;;  %v843_v28 = vld [vmem:[%s3586_s7 + $0x210] sm:$0xff] }
 0x289   :  { %1703 = vmatprep.subr.bf16.mxu1 %v1702_v32  ;;  %v959_v32 = vld [vmem:[%s3586_s7 + $0x5b0] sm:$0xff] }
 0x28a   :  { %v1744_v38 = vpack.c.bf16 %v966_v33, %v959_v32  ;;  %v842_v32 = vld [vmem:[%s3586_s7 + $0x208] sm:$0xff] }
 0x28b   :  { %v850_v33 = vld [vmem:[%s3586_s7 + $0x248] sm:$0xff] }
 0x28c   :  { %1705 = vmatpush1.bf16.msra.mxu1 %v1704_v40  ;;  %v1746_v40 = vpack.c.bf16 %v981_v35, %v974_v34  ;;  %v857_v34 = vld [vmem:[%s3586_s7 + $0x280] sm:$0xff] }
 0x28d   :  { %1707 = vmatprep.subr.bf16.mxu1 %v1706_v41  ;;  %v973_v41 = vld [vmem:[%s3586_s7 + $0x620] sm:$0xff] }
 0x28e   :  { %v1748_v43 = vpack.c.bf16 %v980_v42, %v973_v41  ;;  %v856_v41 = vld [vmem:[%s3586_s7 + $0x278] sm:$0xff] }
 0x28f   :  { %v864_v42 = vld [vmem:[%s3586_s7 + $0x2b8] sm:$0xff] }
 0x290   :  { %1709 = vmatpush1.bf16.msra.mxu1 %v1708_v46  ;;  %v1908_v46 = vpack.c.bf16 %v874_v45, %v867_v44 }
 0x291   :  { %1711 = vmatprep.subr.bf16.mxu1 %v1710_v47  ;;  %v988_v47 = vld [vmem:[%s3586_s7 + $0x698] sm:$0xff] }
 0x292   :  { %1909 = vmatpush3.bf16.msra.mxu0 %v1908_v46  ;;  %v1750_v49 = vpack.c.bf16 %v995_v48, %v988_v47  ;;  %v863_v46 = vld [vmem:[%s3586_s7 + $0x2b0] sm:$0xff]  ;;  %v870_v47 = vld [vmem:[%s3586_s7 + $0x2e8] sm:$0xff] }
 0x293   :  { %v878_v48 = vld [vmem:[%s3586_s7 + $0x328] sm:$0xff] }
 0x294   :  { %1713 = vmatpush1.bf16.msra.mxu1 %v1712_v52  ;;  %v993_v52 = vld [vmem:[%s3586_s7 + $0x6c0] sm:$0xff] }
 0x295   :  { %1715 = vmatprep.subr.bf16.mxu1 %v1714_v53  ;;  %v1752_v53 = vpack.c.bf16 %v994_v51, %v987_v50  ;;  %v1910_v57 = vpack.c.bf16 %v1000_v54, %v993_v52  ;;  %v1780_v50 = vpack.c.bf16 %v870_v47, %v863_v46  ;;  %v877_v52 = vld [vmem:[%s3586_s7 + $0x320] sm:$0xff]  ;;  %v892_v54 = vld [vmem:[%s3586_s7 + $0x398] sm:$0xff] }
 0x296   :  { %v781_v47 = vld [vmem:[%s3586_s7 + $0x20] sm:$0xff] }
 0x297   :  { %1911 = vmatprep.subr.bf16.mxu0 %v1910_v57 }
 0x298   :  { %1717 = vmatpush1.bf16.msra.mxu1 %v1716_v58  ;;  %v1912_v58 = vpack.c.bf16 %v888_v56, %v881_v55  ;;  %v899_v55 = vld [vmem:[%s3586_s7 + $0x3d0] sm:$0xff] }
 0x299   :  { %1719 = vmatprep.subr.bf16.mxu1 %v1718_v59  ;;  %v780_v59 = vld [vmem:[%s3586_s7 + $0x18] sm:$0xff]  ;;  %v1786_v57 = vpack.c.bf16 %v899_v55, %v892_v54  ;;  %v802_v54 = vld [vmem:[%s3586_s7 + $0xc8] sm:$0xff] }
 0x29a   :  { %v1754_v61 = vpack.c.bf16 %v787_v60, %v780_v59  ;;  %1913 = vmatpush3.bf16.msra.mxu0 %v1912_v58  ;;  %v891_v58 = vld [vmem:[%s3586_s7 + $0x390] sm:$0xff]  ;;  %v898_v59 = vld [vmem:[%s3586_s7 + $0x3c8] sm:$0xff] }
 0x29b   :  { %v906_v60 = vld [vmem:[%s3586_s7 + $0x408] sm:$0xff] }
 0x29c   :  { %1721 = vmatpush1.bf16.msra.mxu1 %v1720_v0  ;;  %v701_v0 = vrot.slane %v692_v62, %v2758_v39  ;;  %v1788_v62 = vpack.c.bf16 %v898_v59, %v891_v58  ;;  %v810_v55 = vld [vmem:[%s3586_s7 + $0x108] sm:$0xff]  ;;  %v809_v59 = vld [vmem:[%s3586_s7 + $0x100] sm:$0xff] }
 0x29d   :  { %1723 = vmatprep.subr.bf16.mxu1 %v1722_v1 }
 0x2a0   :  { %1725 = vmatpush1.bf16.msra.mxu1 %v1724_v6 }
 0x2a1   :  { %1727 = vmatprep.subr.bf16.mxu1 %v1726_v7  ;;  %v794_v7 = vld [vmem:[%s3586_s7 + $0x88] sm:$0xff] }
 0x2a4   :  { %1729 = vmatpush1.bf16.msra.mxu1 %v1728_v12  ;;  %v1758_v12 = vpack.c.bf16 %v801_v8, %v794_v7  ;;  %v926_v7 = vld [vmem:[%s3586_s7 + $0x4a8] sm:$0xff] }
 0x2a5   :  { %1731 = vmatprep.subr.bf16.mxu1 %v1730_v13  ;;  %v793_v13 = vld [vmem:[%s3586_s7 + $0x80] sm:$0xff]  ;;  %v934_v8 = vld [vmem:[%s3586_s7 + $0x4e8] sm:$0xff] }
 0x2a6   :  { %v1760_v17 = vpack.c.bf16 %v800_v14, %v793_v13  ;;  %v933_v14 = vld [vmem:[%s3586_s7 + $0x4e0] sm:$0xff] }
 0x2a8   :  { %1733 = vmatpush1.bf16.msra.mxu1 %v1732_v18  ;;  %v1762_v18 = vpack.c.bf16 %v815_v16, %v808_v15  ;;  %v940_v15 = vld [vmem:[%s3586_s7 + $0x518] sm:$0xff] }
 0x2a9   :  { %1735 = vmatprep.subr.bf16.mxu1 %v1734_v19  ;;  %v807_v19 = vld [vmem:[%s3586_s7 + $0xf0] sm:$0xff]  ;;  %v948_v16 = vld [vmem:[%s3586_s7 + $0x558] sm:$0xff] }
 0x2aa   :  { %v1764_v23 = vpack.c.bf16 %v814_v20, %v807_v19  ;;  %v947_v20 = vld [vmem:[%s3586_s7 + $0x550] sm:$0xff] }
 0x2ac   :  { %1737 = vmatpush1.bf16.msra.mxu1 %v1736_v24  ;;  %v1766_v24 = vpack.c.bf16 %v829_v22, %v822_v21  ;;  %v954_v21 = vld [vmem:[%s3586_s7 + $0x588] sm:$0xff] }
 0x2ad   :  { %1739 = vmatprep.subr.bf16.mxu1 %v1738_v25  ;;  %v821_v25 = vld [vmem:[%s3586_s7 + $0x160] sm:$0xff]  ;;  %v962_v22 = vld [vmem:[%s3586_s7 + $0x5c8] sm:$0xff] }
 0x2ae   :  { %v1768_v29 = vpack.c.bf16 %v828_v26, %v821_v25  ;;  %v961_v26 = vld [vmem:[%s3586_s7 + $0x5c0] sm:$0xff] }
 0x2b0   :  { %1741 = vmatpush1.bf16.msra.mxu1 %v1740_v30  ;;  %v1770_v30 = vpack.c.bf16 %v843_v28, %v836_v27  ;;  %v968_v27 = vld [vmem:[%s3586_s7 + $0x5f8] sm:$0xff] }
 0x2b1   :  { %1743 = vmatprep.subr.bf16.mxu1 %v1742_v31  ;;  %v835_v31 = vld [vmem:[%s3586_s7 + $0x1d0] sm:$0xff]  ;;  %v976_v28 = vld [vmem:[%s3586_s7 + $0x638] sm:$0xff] }
 0x2b2   :  { %v1772_v35 = vpack.c.bf16 %v842_v32, %v835_v31  ;;  %v975_v32 = vld [vmem:[%s3586_s7 + $0x630] sm:$0xff] }
 0x2b4   :  { %1745 = vmatpush1.bf16.msra.mxu1 %v1744_v38  ;;  %v1774_v38 = vpack.c.bf16 %v857_v34, %v850_v33  ;;  %v982_v33 = vld [vmem:[%s3586_s7 + $0x668] sm:$0xff] }
 0x2b5   :  { %1747 = vmatprep.subr.bf16.mxu1 %v1746_v40  ;;  %v849_v40 = vld [vmem:[%s3586_s7 + $0x240] sm:$0xff]  ;;  %v990_v34 = vld [vmem:[%s3586_s7 + $0x6a8] sm:$0xff] }
 0x2b6   :  { %v1776_v44 = vpack.c.bf16 %v856_v41, %v849_v40  ;;  %v989_v41 = vld [vmem:[%s3586_s7 + $0x6a0] sm:$0xff] }
 0x2b8   :  { %1749 = vmatpush1.bf16.msra.mxu1 %v1748_v43  ;;  %v871_v43 = vld [vmem:[%s3586_s7 + $0x2f0] sm:$0xff] }
 0x2b9   :  { %1751 = vmatprep.subr.bf16.mxu1 %v1750_v49  ;;  %v1778_v45 = vpack.c.bf16 %v871_v43, %v864_v42  ;;  %v885_v49 = vld [vmem:[%s3586_s7 + $0x360] sm:$0xff]  ;;  %v996_v42 = vld [vmem:[%s3586_s7 + $0x6d8] sm:$0xff]  ;;  %v782_v43 = vld [vmem:[%s3586_s7 + $0x28] sm:$0xff] }
 0x2ba   :  { %v1782_v51 = vpack.c.bf16 %v885_v49, %v878_v48  ;;  %v788_v48 = vld [vmem:[%s3586_s7 + $0x58] sm:$0xff] }
 0x2bb   :  { %v796_v49 = vld [vmem:[%s3586_s7 + $0x98] sm:$0xff] }
 0x2bc   :  { %1753 = vmatpush1.bf16.msra.mxu1 %v1752_v53  ;;  %v884_v53 = vld [vmem:[%s3586_s7 + $0x358] sm:$0xff] }
 0x2bd   :  { %1755 = vmatprep.subr.bf16.mxu1 %v1754_v61  ;;  %v1784_v56 = vpack.c.bf16 %v884_v53, %v877_v52  ;;  %v913_v61 = vld [vmem:[%s3586_s7 + $0x440] sm:$0xff]  ;;  %v795_v53 = vld [vmem:[%s3586_s7 + $0x90] sm:$0xff] }
 0x352   :  { %v770_v1 = vpop.f32.mrb[2].mxu1 }
 0x353   :  { %v771_v2 = vadd.f32 %v770_v1, %v697_v63  ;;  %v772_v3 = vpop.f32.mrb[3].mxu1  ;;  %v1790_v63 = vpack.c.bf16 %v913_v61, %v906_v60  ;;  %v912_v1 = vld [vmem:[%s3586_s7 + $0x438] sm:$0xff] }
 0x354   :  { %v773_v6 = vadd.f32 %v772_v3, %v701_v0  ;;  %v905_v0 = vld [vmem:[%s3586_s7 + $0x400] sm:$0xff]  ;;  %v927_v3 = vld [vmem:[%s3586_s7 + $0x4b0] sm:$0xff]  ;;  %v816_v60 = vld [vmem:[%s3586_s7 + $0x138] sm:$0xff] }
 0x355   :  { %v3168_v11 = vmax.f32 %v771_v2, 0.0  ;;  %v920_v2 = vld [vmem:[%s3586_s7 + $0x478] sm:$0xff]  ;;  %v1792_v4 = vpack.c.bf16 %v912_v1, %v905_v0  ;;  %v823_v0 = vld [vmem:[%s3586_s7 + $0x170] sm:$0xff]  ;;  %v830_v1 = vld [vmem:[%s3586_s7 + $0x1a8] sm:$0xff] }
 0x356   :  { %v3166_v9 = vmax.f32 %v773_v6, 0.0  ;;  %v1794_v5 = vpack.c.bf16 %v927_v3, %v920_v2  ;;  %v919_v6 = vld [vmem:[%s3586_s7 + $0x470] sm:$0xff]  ;;  %v824_v61 = vld [vmem:[%s3586_s7 + $0x178] sm:$0xff]  ;;  %v838_v2 = vld [vmem:[%s3586_s7 + $0x1e8] sm:$0xff] }
 0x357   :  { %v845_v3 = vld [vmem:[%s3586_s7 + $0x220] sm:$0xff] }
 0x358   :  { %1102 = vmatprep.mubr.f32.mxu1 %v3166_v9  ;;  %1315 = vmatprep.mubr.f32.mxu0 %v3166_v9 }
 0x359   :  { %1103 = vmatmul.mubr.f32.vlgmr.msra.gmra.mrb[4].mxu1 %v3168_v11  ;;  %1316 = vmatmul.mubr.f32.vlgmr.msra.gmra.mrb[2].mxu0 %v3168_v11 }
 0x35a   :  { %1757 = vmatpush1.bf16.msra.mxu1 %v1756_v10  ;;  %1173 = vmatprep.mubr.f32.mxu1 %v3166_v9  ;;  %v941_v10 = vld [vmem:[%s3586_s7 + $0x520] sm:$0xff] }
 0x35b   :  { %1759 = vmatprep.subr.bf16.mxu1 %v1758_v12  ;;  %v1796_v12 = vpack.c.bf16 %v926_v7, %v919_v6  ;;  %v1798_v13 = vpack.c.bf16 %v941_v10, %v934_v8  ;;  %v837_v6 = vld [vmem:[%s3586_s7 + $0x1e0] sm:$0xff]  ;;  %v844_v7 = vld [vmem:[%s3586_s7 + $0x218] sm:$0xff]  ;;  %v859_v10 = vld [vmem:[%s3586_s7 + $0x290] sm:$0xff] }
 0x35c   :  { %v852_v8 = vld [vmem:[%s3586_s7 + $0x258] sm:$0xff] }
 0x35e   :  { %1761 = vmatpush1.bf16.msra.mxu1 %v1760_v17  ;;  %v955_v17 = vld [vmem:[%s3586_s7 + $0x590] sm:$0xff] }
 0x35f   :  { %1763 = vmatprep.subr.bf16.mxu1 %v1762_v18  ;;  %v1800_v18 = vpack.c.bf16 %v940_v15, %v933_v14  ;;  %v1802_v19 = vpack.c.bf16 %v955_v17, %v948_v16  ;;  %v851_v14 = vld [vmem:[%s3586_s7 + $0x250] sm:$0xff]  ;;  %v858_v15 = vld [vmem:[%s3586_s7 + $0x288] sm:$0xff]  ;;  %v873_v17 = vld [vmem:[%s3586_s7 + $0x300] sm:$0xff] }
 0x360   :  { %v866_v16 = vld [vmem:[%s3586_s7 + $0x2c8] sm:$0xff] }
 0x362   :  { %1765 = vmatpush1.bf16.msra.mxu1 %v1764_v23  ;;  %v969_v23 = vld [vmem:[%s3586_s7 + $0x600] sm:$0xff] }
 0x363   :  { %1767 = vmatprep.subr.bf16.mxu1 %v1766_v24  ;;  %v1804_v24 = vpack.c.bf16 %v954_v21, %v947_v20  ;;  %v1806_v25 = vpack.c.bf16 %v969_v23, %v962_v22  ;;  %v865_v20 = vld [vmem:[%s3586_s7 + $0x2c0] sm:$0xff]  ;;  %v872_v21 = vld [vmem:[%s3586_s7 + $0x2f8] sm:$0xff]  ;;  %v887_v23 = vld [vmem:[%s3586_s7 + $0x370] sm:$0xff] }
 0x364   :  { %v880_v22 = vld [vmem:[%s3586_s7 + $0x338] sm:$0xff] }
 0x366   :  { %1769 = vmatpush1.bf16.msra.mxu1 %v1768_v29  ;;  %v983_v29 = vld [vmem:[%s3586_s7 + $0x670] sm:$0xff] }
 0x367   :  { %1771 = vmatprep.subr.bf16.mxu1 %v1770_v30  ;;  %v1808_v30 = vpack.c.bf16 %v968_v27, %v961_v26  ;;  %v1810_v31 = vpack.c.bf16 %v983_v29, %v976_v28  ;;  %v879_v26 = vld [vmem:[%s3586_s7 + $0x330] sm:$0xff]  ;;  %v886_v27 = vld [vmem:[%s3586_s7 + $0x368] sm:$0xff]  ;;  %v901_v29 = vld [vmem:[%s3586_s7 + $0x3e0] sm:$0xff] }
 0x368   :  { %v894_v28 = vld [vmem:[%s3586_s7 + $0x3a8] sm:$0xff] }
 0x36a   :  { %1773 = vmatpush1.bf16.msra.mxu1 %v1772_v35  ;;  %v997_v35 = vld [vmem:[%s3586_s7 + $0x6e0] sm:$0xff] }
 0x36b   :  { %1775 = vmatprep.subr.bf16.mxu1 %v1774_v38  ;;  %v1812_v38 = vpack.c.bf16 %v982_v33, %v975_v32  ;;  %v1814_v40 = vpack.c.bf16 %v997_v35, %v990_v34  ;;  %v893_v32 = vld [vmem:[%s3586_s7 + $0x3a0] sm:$0xff]  ;;  %v900_v33 = vld [vmem:[%s3586_s7 + $0x3d8] sm:$0xff]  ;;  %v915_v35 = vld [vmem:[%s3586_s7 + $0x450] sm:$0xff] }
 0x36c   :  { %v908_v34 = vld [vmem:[%s3586_s7 + $0x418] sm:$0xff] }
 0x36e   :  { %1777 = vmatpush1.bf16.msra.mxu1 %v1776_v44  ;;  %v789_v44 = vld [vmem:[%s3586_s7 + $0x60] sm:$0xff] }
 0x36f   :  { %1779 = vmatprep.subr.bf16.mxu1 %v1778_v45  ;;  %v1816_v45 = vpack.c.bf16 %v996_v42, %v989_v41  ;;  %v1818_v46 = vpack.c.bf16 %v789_v44, %v782_v43  ;;  %v907_v41 = vld [vmem:[%s3586_s7 + $0x410] sm:$0xff]  ;;  %v914_v42 = vld [vmem:[%s3586_s7 + $0x448] sm:$0xff]  ;;  %v929_v44 = vld [vmem:[%s3586_s7 + $0x4c0] sm:$0xff] }
 0x370   :  { %v922_v43 = vld [vmem:[%s3586_s7 + $0x488] sm:$0xff] }
 0x372   :  { %1781 = vmatpush1.bf16.msra.mxu1 %v1780_v50  ;;  %v803_v50 = vld [vmem:[%s3586_s7 + $0xd0] sm:$0xff] }
 0x373   :  { %1783 = vmatprep.subr.bf16.mxu1 %v1782_v51  ;;  %v1820_v51 = vpack.c.bf16 %v788_v48, %v781_v47  ;;  %v1822_v52 = vpack.c.bf16 %v803_v50, %v796_v49  ;;  %v921_v47 = vld [vmem:[%s3586_s7 + $0x480] sm:$0xff]  ;;  %v928_v48 = vld [vmem:[%s3586_s7 + $0x4b8] sm:$0xff]  ;;  %v943_v50 = vld [vmem:[%s3586_s7 + $0x530] sm:$0xff] }
 0x374   :  { %v936_v49 = vld [vmem:[%s3586_s7 + $0x4f8] sm:$0xff] }
 0x376   :  { %1785 = vmatpush1.bf16.msra.mxu1 %v1784_v56  ;;  %v817_v56 = vld [vmem:[%s3586_s7 + $0x140] sm:$0xff] }
 0x377   :  { %1787 = vmatprep.subr.bf16.mxu1 %v1786_v57  ;;  %v1824_v57 = vpack.c.bf16 %v802_v54, %v795_v53  ;;  %v1826_v58 = vpack.c.bf16 %v817_v56, %v810_v55  ;;  %v935_v53 = vld [vmem:[%s3586_s7 + $0x4f0] sm:$0xff]  ;;  %v942_v54 = vld [vmem:[%s3586_s7 + $0x528] sm:$0xff]  ;;  %v957_v56 = vld [vmem:[%s3586_s7 + $0x5a0] sm:$0xff] }
 0x378   :  { %v950_v55 = vld [vmem:[%s3586_s7 + $0x568] sm:$0xff] }
 0x37a   :  { %1789 = vmatpush1.bf16.msra.mxu1 %v1788_v62  ;;  %v831_v62 = vld [vmem:[%s3586_s7 + $0x1b0] sm:$0xff] }
 0x37b   :  { %1791 = vmatprep.subr.bf16.mxu1 %v1790_v63  ;;  %v1830_v63 = vpack.c.bf16 %v831_v62, %v824_v61  ;;  %v964_v61 = vld [vmem:[%s3586_s7 + $0x5d8] sm:$0xff]  ;;  %v971_v62 = vld [vmem:[%s3586_s7 + $0x610] sm:$0xff] }
 0x37e   :  { %1793 = vmatpush1.bf16.msra.mxu1 %v1792_v4  ;;  %v1832_v4 = vpack.c.bf16 %v830_v1, %v823_v0  ;;  %v963_v0 = vld [vmem:[%s3586_s7 + $0x5d0] sm:$0xff]  ;;  %v970_v1 = vld [vmem:[%s3586_s7 + $0x608] sm:$0xff] }
 0x37f   :  { %1795 = vmatprep.subr.bf16.mxu1 %v1794_v5  ;;  %v1834_v5 = vpack.c.bf16 %v845_v3, %v838_v2  ;;  %v978_v2 = vld [vmem:[%s3586_s7 + $0x648] sm:$0xff]  ;;  %v985_v3 = vld [vmem:[%s3586_s7 + $0x680] sm:$0xff] }
 0x382   :  { %1797 = vmatpush1.bf16.msra.mxu1 %v1796_v12  ;;  %v1836_v12 = vpack.c.bf16 %v844_v7, %v837_v6  ;;  %v977_v6 = vld [vmem:[%s3586_s7 + $0x640] sm:$0xff]  ;;  %v984_v7 = vld [vmem:[%s3586_s7 + $0x678] sm:$0xff] }
 0x383   :  { %1799 = vmatprep.subr.bf16.mxu1 %v1798_v13  ;;  %v1838_v13 = vpack.c.bf16 %v859_v10, %v852_v8  ;;  %v992_v8 = vld [vmem:[%s3586_s7 + $0x6b8] sm:$0xff]  ;;  %v999_v10 = vld [vmem:[%s3586_s7 + $0x6f0] sm:$0xff] }
 0x386   :  { %1801 = vmatpush1.bf16.msra.mxu1 %v1800_v18  ;;  %v1840_v18 = vpack.c.bf16 %v858_v15, %v851_v14  ;;  %v991_v14 = vld [vmem:[%s3586_s7 + $0x6b0] sm:$0xff]  ;;  %v998_v15 = vld [vmem:[%s3586_s7 + $0x6e8] sm:$0xff] }
 0x387   :  { %1803 = vmatprep.subr.bf16.mxu1 %v1802_v19  ;;  %v1842_v19 = vpack.c.bf16 %v873_v17, %v866_v16  ;;  %v1880_v16 = vpack.c.bf16 %v998_v15, %v991_v14  ;;  %v1001_v17 = vld [vmem:[%s3587_s8] sm:$0x7f] }
 0x38a   :  { %1805 = vmatpush1.bf16.msra.mxu1 %v1804_v24  ;;  %v1844_v24 = vpack.c.bf16 %v872_v21, %v865_v20  ;;  %v1010_v20 = vrot.slane %v1001_v17, %v2758_v39 }
 0x38b   :  { %1807 = vmatprep.subr.bf16.mxu1 %v1806_v25  ;;  %v1846_v25 = vpack.c.bf16 %v887_v23, %v880_v22 }
 0x38e   :  { %1809 = vmatpush1.bf16.msra.mxu1 %v1808_v30  ;;  %v1848_v30 = vpack.c.bf16 %v886_v27, %v879_v26 }
 0x38f   :  { %1811 = vmatprep.subr.bf16.mxu1 %v1810_v31  ;;  %v1850_v31 = vpack.c.bf16 %v901_v29, %v894_v28 }
 0x392   :  { %1813 = vmatpush1.bf16.msra.mxu1 %v1812_v38  ;;  %v1852_v38 = vpack.c.bf16 %v900_v33, %v893_v32 }
 0x393   :  { %1815 = vmatprep.subr.bf16.mxu1 %v1814_v40  ;;  %v1854_v40 = vpack.c.bf16 %v915_v35, %v908_v34 }
 0x396   :  { %1817 = vmatpush1.bf16.msra.mxu1 %v1816_v45  ;;  %v1856_v45 = vpack.c.bf16 %v914_v42, %v907_v41 }
 0x397   :  { %1819 = vmatprep.subr.bf16.mxu1 %v1818_v46  ;;  %v1858_v46 = vpack.c.bf16 %v929_v44, %v922_v43 }
 0x399   :  { %1174 = vmatmul.mubr.f32.vlgmr.msra.gmra.mrb[6].mxu1 %v3168_v11 }
 0x39a   :  { %1821 = vmatpush1.bf16.msra.mxu1 %v1820_v51  ;;  %1244 = vmatprep.mubr.f32.mxu1 %v3166_v9  ;;  %v1828_v9 = vpack.c.bf16 %v816_v60, %v809_v59  ;;  %v1860_v51 = vpack.c.bf16 %v928_v48, %v921_v47  ;;  %v949_v59 = vld [vmem:[%s3586_s7 + $0x560] sm:$0xff]  ;;  %v956_v60 = vld [vmem:[%s3586_s7 + $0x598] sm:$0xff]  ;;  %s1974_s7 = smov [#allocation2]  }
 0x39b   :  { %1823 = vmatprep.subr.bf16.mxu1 %v1822_v52  ;;  %v1862_v52 = vpack.c.bf16 %v943_v50, %v936_v49  ;;  %s1334_s23 = sshll.u32 %s1974_s7, 4  ;;  %s1335_s23 = int_to_ptr.vmem [resolvable:$true] %s1334_s23 }
 0x39c   :  { %s1925_s8 = scalar_lea.vmem %s1335_s23, 128  ;;  %p1930_p1 = scmp.lt.s32.totalorder %s1335_s23, %s1335_s23 }
 0x39d   :  { %p1926_p0 = scmp.ne.s32.totalorder %s1335_s23, %s1925_s8  ;;  %p1931_p2 = scmp.lt.s32.totalorder %s1925_s8, %s1925_s8 }
 0x39e   :  { %1825 = vmatpush1.bf16.msra.mxu1 %v1824_v57  ;;  %v1864_v57 = vpack.c.bf16 %v942_v54, %v935_v53 }
 0x39f   :  { %1827 = vmatprep.subr.bf16.mxu1 %v1826_v58  ;;  %v1866_v58 = vpack.c.bf16 %v957_v56, %v950_v55  ;;  %p1932_p3 = por %p1931_p2, %p1930_p1 }
 0x3a1   :  { %p1933_p4 = pnand %p1932_p3, %p1926_p0 }
 0x3a2   :  { %1829 = vmatpush1.bf16.msra.mxu1 %v1828_v9  ;;  %v1868_v9 = vpack.c.bf16 %v956_v60, %v949_v59 }
 0x3a3   :  { %1831 = vmatprep.subr.bf16.mxu1 %v1830_v63  ;;  %v1870_v63 = vpack.c.bf16 %v971_v62, %v964_v61 }
 0x3a6   :  { %1833 = vmatpush1.bf16.msra.mxu1 %v1832_v4  ;;  %v1872_v4 = vpack.c.bf16 %v970_v1, %v963_v0 }
 0x3a7   :  { %1835 = vmatprep.subr.bf16.mxu1 %v1834_v5  ;;  %v1874_v5 = vpack.c.bf16 %v985_v3, %v978_v2 }
 0x3aa   :  { %1837 = vmatpush1.bf16.msra.mxu1 %v1836_v12  ;;  %v1876_v12 = vpack.c.bf16 %v984_v7, %v977_v6 }
 0x3ab   :  { %1839 = vmatprep.subr.bf16.mxu1 %v1838_v13  ;;  %v1878_v13 = vpack.c.bf16 %v999_v10, %v992_v8 }
 0x3ae   :  { %1841 = vmatpush1.bf16.msra.mxu1 %v1840_v18  ;;  %v1029_v18 = vsub.s32 6, %v2749_v36 }
 0x3af   :  { %1843 = vmatprep.subr.bf16.mxu1 %v1842_v19  ;;  %v1006_v19 = vrot.slane %v1001_v17, %v2752_v37 }
 0x3b0   :  { %v1030_v23 = vrot.slane %v1001_v17, %v1029_v18 }
 0x3b2   :  { %1845 = vmatpush1.bf16.msra.mxu1 %v1844_v24 }
 0x3b3   :  { %1847 = vmatprep.subr.bf16.mxu1 %v1846_v25 }
 0x3b6   :  { %1849 = vmatpush1.bf16.msra.mxu1 %v1848_v30 }
 0x3b7   :  { %1851 = vmatprep.subr.bf16.mxu1 %v1850_v31 }
 0x3ba   :  { %1853 = vmatpush1.bf16.msra.mxu1 %v1852_v38 }
 0x3bb   :  { %1855 = vmatprep.subr.bf16.mxu1 %v1854_v40 }
 0x3be   :  { %1857 = vmatpush1.bf16.msra.mxu1 %v1856_v45 }
 0x3bf   :  { %1859 = vmatprep.subr.bf16.mxu1 %v1858_v46 }
 0x3c2   :  { %1861 = vmatpush1.bf16.msra.mxu1 %v1860_v51 }
 0x3c3   :  { %1863 = vmatprep.subr.bf16.mxu1 %v1862_v52 }
 0x3c6   :  { %1865 = vmatpush1.bf16.msra.mxu1 %v1864_v57 }
 0x3c7   :  { %1867 = vmatprep.subr.bf16.mxu1 %v1866_v58 }
 0x3ca   :  { %1869 = vmatpush1.bf16.msra.mxu1 %v1868_v9 }
 0x3cb   :  { %1871 = vmatprep.subr.bf16.mxu1 %v1870_v63 }
 0x3ce   :  { %1873 = vmatpush1.bf16.msra.mxu1 %v1872_v4 }
 0x3cf   :  { %1875 = vmatprep.subr.bf16.mxu1 %v1874_v5 }
 0x3d2   :  { %1877 = vmatpush1.bf16.msra.mxu1 %v1876_v12 }
 0x3d3   :  { %1879 = vmatprep.subr.bf16.mxu1 %v1878_v13 }
 0x3d6   :  { %1881 = vmatpush1.bf16.msra.mxu1 %v1880_v16 }
 0x3d9   :  { %1245 = vmatmul.mubr.f32.vlgmr.msra.gmra.mrb[8].mxu1 %v3168_v11 }
 0x42c   :  { %v1104_v21 = vpop.f32.mrb[4].mxu1  ;;  %v1427_v22 = vpop.f32.mrb[2].mxu0 }
 0x42d   :  { %v1105_v24 = vadd.f32 %v1104_v21, %v1006_v19  ;;  %v1106_v25 = vpop.f32.mrb[5].mxu1  ;;  %v1428_v26 = vpop.f32.mrb[3].mxu0 }
 0x42e   :  { %v1107_v27 = vadd.f32 %v1106_v25, %v1010_v20  ;;  %v1429_v28 = vadd.f32 %v1428_v26, %v1427_v22 }
 0x42f   :  { %1321 = vst [vmem:[#allocation4] sm:$0xff] %v1105_v24 }
 0x430   :  { %1322 = vst [vmem:[#allocation4 + $0x8] sm:$0xff] %v1107_v27  ;;  %v1318_v11 = vadd.f32 %v1429_v28, %v1030_v23 }
 0x431   :  { %1936 = shalt.err (!%p1933_p4)
}
 0x432   :  { %s1937_s26 = scalar_lea.hbm %s3588_s9, 128 }
 0x433   :  { %p1938_p5 = scmp.ne.s32.totalorder %s3588_s9, %s1937_s26  ;;  %p1941_p6 = scmp.lt.u32.totalorder %s1937_s26, %s3588_s9 }
 0x435   :  { %p1943_p7 = pnand %p1941_p6, %p1938_p5 }
 0x437   :  { %1946 = shalt.err (!%p1943_p7)
}
 0x438   :  { %1337 = dma.vmem_to_hbm [thread:$0]  %s1335_s23, 128, %s3588_s9, [#allocation3]   ;;  %1327 = vst.msk [vmem:[#allocation4 + $0x30] sm:$0xff] %vm253_vm1, %v1318_v11  ;;  %v1013_v37 = vsub.s32 2, %v2749_v36  ;;  %v1017_v39 = vsub.s32 3, %v2749_v36  ;;  %v1021_v35 = vsub.s32 4, %v2749_v36 }
 0x439   :  { %v1025_v38 = vsub.s32 5, %v2749_v36  ;;  %s1975_s9 = smov [#allocation4]  }
 0x43a   :  { %v1014_v29 = vrot.slane %v1001_v17, %v1013_v37  ;;  %v1018_v30 = vrot.slane %v1001_v17, %v1017_v39  ;;  %v1022_v40 = vrot.slane %v1001_v17, %v1021_v35  ;;  %s1344_s11 = sshll.u32 %s1975_s9, 4  ;;  %s1345_s11 = int_to_ptr.vmem [resolvable:$true] %s1344_s11 }
 0x43b   :  { %v1026_v41 = vrot.slane %v1001_v17, %v1025_v38  ;;  %s1947_s12 = scalar_lea.vmem %s1345_s11, 896  ;;  %p1952_p9 = scmp.lt.s32.totalorder %s1345_s11, %s1345_s11 }
 0x43c   :  { %p1948_p8 = scmp.ne.s32.totalorder %s1345_s11, %s1947_s12  ;;  %p1953_p10 = scmp.lt.s32.totalorder %s1947_s12, %s1947_s12 }
 0x43e   :  { %p1954_p11 = por %p1953_p10, %p1952_p9 }
 0x440   :  { %p1955_p12 = pnand %p1954_p11, %p1948_p8 }
 0x46c   :  { %v1175_v31 = vpop.f32.mrb[6].mxu1 }
 0x46d   :  { %v1176_v32 = vadd.f32 %v1175_v31, %v1014_v29  ;;  %v1177_v33 = vpop.f32.mrb[7].mxu1 }
 0x46e   :  { %v1178_v34 = vadd.f32 %v1177_v33, %v1018_v30 }
 0x46f   :  { %1323 = vst [vmem:[#allocation4 + $0x10] sm:$0xff] %v1176_v32 }
 0x470   :  { %1324 = vst [vmem:[#allocation4 + $0x18] sm:$0xff] %v1178_v34 }
 0x4ac   :  { %v1246_v42 = vpop.f32.mrb[8].mxu1 }
 0x4ad   :  { %v1247_v43 = vadd.f32 %v1246_v42, %v1022_v40  ;;  %v1248_v44 = vpop.f32.mrb[9].mxu1 }
 0x4ae   :  { %v1249_v45 = vadd.f32 %v1248_v44, %v1026_v41 }
 0x4af   :  { %1325 = vst [vmem:[#allocation4 + $0x20] sm:$0xff] %v1247_v43 }
 0x4b0   :  { %1326 = vst [vmem:[#allocation4 + $0x28] sm:$0xff] %v1249_v45 }
 0x4b1   :  { %1958 = shalt.err (!%p1955_p12)
}
 0x4b2   :  { %s1959_s14 = scalar_lea.hbm %s3589_s10, 896 }
 0x4b3   :  { %p1960_p13 = scmp.ne.s32.totalorder %s3589_s10, %s1959_s14  ;;  %p1963_p0 = scmp.lt.u32.totalorder %s1959_s14, %s3589_s10 }
 0x4b5   :  { %p1965_p1 = pnand %p1963_p0, %p1960_p13 }
 0x4b7   :  { %1968 = shalt.err (!%p1965_p1)
}
 0x4b8   :  { %1347 = dma.vmem_to_hbm [thread:$0]  %s1345_s11, 896, %s3589_s10, [#allocation5]  }
 0x4b9   :  { %1969 = dma.done.wait [#allocation3], 128  }
 0x4ba   :  { %1970 = vsyncadd [#allocation3], 4294967168 }
 0x4bb   :  { %1971 = dma.done.wait [#allocation5], 896  }
 0x4bc   :  { %1972 = vsyncadd [#allocation5], 4294966400 }
 0x4bd   :  { %1354 = vsyncpa [#allocation3], 1 }
 0x4be   :  { %1355 = vsyncpa [#allocation5], 1 }

</bundles_post_ra>
